<compile_context>
chip_gen: v6e
topology: v6e:2x2x1
jax: 0.10.0
libtpu: 0.0.40
codegen_flags: <defaults>
</compile_context>

<pallas_src>
import functools
import math

import jax
import jax.numpy as jnp
from jax import lax
from jax.experimental import pallas as pl
from jax.experimental.pallas import tpu as pltpu

# Deterministic f32 matmuls on both the Pallas and the reference path.
jax.config.update("jax_default_matmul_precision", "highest")


# ---------------------------------------------------------------------------
# Fused multihead-attention kernel (single grid step, whole problem in VMEM)
# ---------------------------------------------------------------------------
def _fused_mha_kernel(q_in_ref, k_in_ref, v_in_ref, id_ref, w_ref, b_ref,
                      out_ref, attn_ref, *, num_heads, head_dim):
    # q_in_ref / id_ref: (L, B, E)   k_in_ref / v_in_ref: (S, B, E)
    # w_ref: (4, E, E) = [wq*scale, wk, wv, wo] already transposed (x @ w)
    # b_ref: (4, 1, E) = [bq*scale, bk, bv, bo]
    # out_ref: (L, B, E)             attn_ref: (B, L, S)
    L, B, E = q_in_ref.shape
    S = k_in_ref.shape[0]
    H, Dh = num_heads, head_dim

    def fold_batch(ref):
        # (R, B, E) -> batch-major (B*R, E); B is tiny and static so this is a
        # couple of sublane relayouts, much cheaper than an XLA transpose op.
        x = ref[...]
        return jnp.concatenate([x[:, b, :] for b in range(B)], axis=0)

    q_in = fold_batch(q_in_ref)          # (B*L, E)
    k_in = fold_batch(k_in_ref)          # (B*S, E)
    v_in = fold_batch(v_in_ref)          # (B*S, E)
    ident = fold_batch(id_ref)           # (B*L, E)

    wq, wk, wv, wo = w_ref[0], w_ref[1], w_ref[2], w_ref[3]   # (E, E) each
    bq, bk, bv, bo = b_ref[0], b_ref[1], b_ref[2], b_ref[3]   # (1, E) each

    # In-projections: batch folded into rows -> one MXU pass each.
    # (1/sqrt(head_dim) is pre-folded into wq / bq at __init__.)
    q = jnp.dot(q_in, wq, preferred_element_type=jnp.float32) + bq   # (B*L, E)
    k = jnp.dot(k_in, wk, preferred_element_type=jnp.float32) + bk   # (B*S, E)
    v = jnp.dot(v_in, wv, preferred_element_type=jnp.float32) + bv   # (B*S, E)

    inv_heads = 1.0 / float(H)
    o_rows = []
    # Static unroll over batch and heads (both tiny); per-batch rows are
    # contiguous, sublane-aligned slices of the folded slabs.
    for b in range(B):
        q_b = q[b * L:(b + 1) * L]       # (L, E)
        k_b = k[b * S:(b + 1) * S]       # (S, E)
        v_b = v[b * S:(b + 1) * S]       # (S, E)

        attn_sum = jnp.zeros((L, S), jnp.float32)
        o_heads = []
        for h in range(H):
            lo = h * Dh
            q_h = q_b[:, lo:lo + Dh]     # (L, Dh)
            k_h = k_b[:, lo:lo + Dh]     # (S, Dh)
            v_h = v_b[:, lo:lo + Dh]     # (S, Dh)

            # scores: contract head_dim of q_h and k_h (q_h @ k_h.T)
            s = lax.dot_general(q_h, k_h, (((1,), (1,)), ((), ())),
                                preferred_element_type=jnp.float32)  # (L, S)
            m = jnp.max(s, axis=-1, keepdims=True)
            p = jnp.exp(s - m)
            denom = jnp.sum(p, axis=-1, keepdims=True)
            # exact reciprocal (attention map is consumed as probabilities)
            attn = p * pl.reciprocal(denom, approx=False)            # (L, S)

            attn_sum = attn_sum + attn
            o_heads.append(jnp.dot(attn, v_h,
                                   preferred_element_type=jnp.float32))  # (L, Dh)

        attn_ref[b] = (attn_sum * inv_heads).astype(attn_ref.dtype)
        o_rows.append(jnp.concatenate(o_heads, axis=-1))              # (L, E)

    # Single out-projection matmul over all batches' head-concatenated rows,
    # fused with the out-proj bias and the residual (identity) add.
    o_all = jnp.concatenate(o_rows, axis=0)                           # (B*L, E)
    out_all = ident + bo + jnp.dot(o_all, wo,
                                   preferred_element_type=jnp.float32)

    # Scatter rows back to the native (L, B, E) layout (one store per batch).
    for b in range(B):
        out_ref[:, b:b + 1, :] = (
            out_all[b * L:(b + 1) * L][:, None, :].astype(out_ref.dtype))


def fused_mha(q_in, k_in, v_in, identity, w_stack, b_stack, *, num_heads):
    """q_in/identity: (L, B, E), k_in/v_in: (S, B, E) (native, NO transposes).

    w_stack: (4, E, E) = [wq*scale, wk, wv, wo] (transposed), b_stack: (4, 1, E).
    Returns (out (L, B, E), attn_map (B, L, S)).
    """
    L, B, E = q_in.shape
    S = k_in.shape[0]
    head_dim = E // num_heads

    # Advisory cost hint so XLA schedules this tiny custom call sensibly.
    flops = int(2 * B * L * E * E                       # Q projection
                + 2 * (2 * B * S * E * E)               # K, V projections
                + num_heads * B * 2 * (2 * L * S * head_dim)  # scores + AV
                + 2 * B * L * E * E)                    # out projection
    transcendentals = int(B * num_heads * L * S)        # exp in softmax
    bytes_accessed = int(4 * (q_in.size + k_in.size + v_in.size + identity.size
                              + w_stack.size + b_stack.size
                              + B * L * E + B * L * S))

    kernel = functools.partial(_fused_mha_kernel,
                               num_heads=num_heads, head_dim=head_dim)
    zero3 = lambda i: (0, 0, 0)   # single grid step, whole arrays in VMEM

    return pl.pallas_call(
        kernel,
        out_shape=(
            jax.ShapeDtypeStruct((L, B, E), jnp.float32),
            jax.ShapeDtypeStruct((B, L, S), jnp.float32),
        ),
        grid=(1,),
        in_specs=[
            pl.BlockSpec((L, B, E), zero3),     # q_in   (native layout)
            pl.BlockSpec((S, B, E), zero3),     # k_in
            pl.BlockSpec((S, B, E), zero3),     # v_in
            pl.BlockSpec((L, B, E), zero3),     # identity
            pl.BlockSpec((4, E, E), zero3),     # packed weights
            pl.BlockSpec((4, 1, E), zero3),     # packed biases
        ],
        out_specs=(
            pl.BlockSpec((L, B, E), zero3),
            pl.BlockSpec((B, L, S), zero3),
        ),
        cost_estimate=pl.CostEstimate(flops=flops,
                                      transcendentals=transcendentals,
                                      bytes_accessed=bytes_accessed),
        compiler_params=pltpu.CompilerParams(
            dimension_semantics=("arbitrary",)),
    )(q_in, k_in, v_in, identity, w_stack, b_stack)


# ---------------------------------------------------------------------------
# Module wrapper (parameter setup + defaults handling in plain JAX)
# ---------------------------------------------------------------------------
class MultiheadAttentionPallas:
    def __init__(self, embed_dim, num_heads, attn_drop=0.0, proj_drop=0.0,
                 batch_first=False, rng=None):
        assert embed_dim % num_heads == 0
        if attn_drop != 0.0 or proj_drop != 0.0:
            # TODO(synk): training-mode dropout not implemented (eval / p=0 only).
            raise NotImplementedError(
                "MultiheadAttentionPallas implements eval-mode forward only "
                "(attn_drop / proj_drop must be 0.0).")
        self.embed_dim = embed_dim
        self.num_heads = num_heads
        self.head_dim = embed_dim // num_heads
        self.batch_first = batch_first

        rng = jax.random.PRNGKey(0) if rng is None else rng
        k1, k2, k3, k4 = jax.random.split(rng, 4)
        E = embed_dim
        # torch nn.MultiheadAttention params: in_proj (3E, E) + bias (3E,),
        # out_proj Linear(E, E). Deterministic synthetic init.
        self.in_proj_weight = 0.05 * jax.random.normal(k1, (3 * E, E), jnp.float32)
        self.in_proj_bias = 0.02 * jax.random.normal(k3, (3 * E,), jnp.float32)
        self.out_proj_weight = 0.05 * jax.random.normal(k2, (E, E), jnp.float32)
        self.out_proj_bias = 0.02 * jax.random.normal(k4, (E,), jnp.float32)

        # Kernel-ready parameters, prepared ONCE:
        #  * transposed so the kernel does x @ W
        #  * 1/sqrt(head_dim) folded into the Q projection weight + bias
        #  * packed into single stacks (fewer DMA operands per call)
        scale = 1.0 / math.sqrt(self.head_dim)
        W, b = self.in_proj_weight, self.in_proj_bias
        self.w_stack = jnp.stack(
            [(W[:E] * scale).T, W[E:2 * E].T, W[2 * E:].T,
             self.out_proj_weight.T], axis=0)                     # (4, E, E)
        self.b_stack = jnp.stack(
            [b[:E] * scale, b[E:2 * E], b[2 * E:],
             self.out_proj_bias], axis=0).reshape(4, 1, E)        # (4, 1, E)

    def __call__(self, query, key=None, value=None, identity=None,
                 query_pos=None, key_pos=None, attn_mask=None,
                 key_padding_mask=None):
        if attn_mask is not None or key_padding_mask is not None:
            # TODO(synk): attn_mask / key_padding_mask not supported in the kernel.
            raise NotImplementedError(
                "attn_mask / key_padding_mask are not supported by the Pallas "
                "MultiheadAttention kernel.")
        if key is None:
            key = query
        if value is None:
            value = key
        if identity is None:
            identity = query
        if key_pos is None and query_pos is not None:
            if query_pos.shape == key.shape:
                key_pos = query_pos
        if query_pos is not None:
            query = query + query_pos
        if key_pos is not None:
            key = key + key_pos

        if self.batch_first:
            # Untested convenience path: kernel is (L, B, E)-native, so pay two
            # layout transposes here (the default batch_first=False path has none).
            q_n = jnp.transpose(query, (1, 0, 2))
            k_n = jnp.transpose(key, (1, 0, 2))
            v_n = jnp.transpose(value, (1, 0, 2))
            id_n = jnp.transpose(identity, (1, 0, 2))
        else:
            q_n, k_n, v_n, id_n = query, key, value, identity

        out_n, attn_avg = fused_mha(
            q_n, k_n, v_n, id_n, self.w_stack, self.b_stack,
            num_heads=self.num_heads)

        # residual + out-proj bias already fused in the kernel; proj_drop(p=0,
        # eval) is the identity.
        if self.batch_first:
            out = jnp.transpose(out_n, (1, 0, 2))
        else:
            out = out_n
        return out, attn_avg


# ---------------------------------------------------------------------------
# Pure-JAX reference (for correctness check)
# ---------------------------------------------------------------------------
def reference_forward(mod, query, query_pos):
    E, H = mod.embed_dim, mod.num_heads
    Dh = E // H
    q_in = query + query_pos
    k_in = query + query_pos
    v_in = query            # value binds before positional additions
    L, B, _ = query.shape
    S = L
    W, bias = mod.in_proj_weight, mod.in_proj_bias
    q = q_in @ W[:E].T + bias[:E]
    k = k_in @ W[E:2 * E].T + bias[E:2 * E]
    v = v_in @ W[2 * E:].T + bias[2 * E:]
    q = (q / math.sqrt(Dh)).reshape(L, B, H, Dh).transpose(1, 2, 0, 3)
    k = k.reshape(S, B, H, Dh).transpose(1, 2, 0, 3)
    v = v.reshape(S, B, H, Dh).transpose(1, 2, 0, 3)
    s = jnp.einsum("bhld,bhsd->bhls", q, k)
    w = jax.nn.softmax(s, axis=-1)
    o = jnp.einsum("bhls,bhsd->bhld", w, v)
    o = o.transpose(2, 0, 1, 3).reshape(L, B, E)
    o = o @ mod.out_proj_weight.T + mod.out_proj_bias
    return query + o, w.mean(axis=1)


if __name__ == "__main__":
    # small shapes: num_query=8, batch=2, embed_dim=32, num_heads=4
    L, B, E, H = 8, 2, 32, 4
    root = jax.random.PRNGKey(0)
    kq, kp, kw = jax.random.split(root, 3)

    query = jax.random.normal(kq, (L, B, E), jnp.float32)
    query_pos = jax.random.normal(kp, (L, B, E), jnp.float32)

    mod = MultiheadAttentionPallas(embed_dim=E, num_heads=H, batch_first=False,
                                   rng=kw)

    out, attn_map = mod(query, query_pos=query_pos)
    out = jax.block_until_ready(out)
    attn_map = jax.block_until_ready(attn_map)

    ref_out, ref_attn = reference_forward(mod, query, query_pos)

    assert out.shape == (L, B, E)
    assert attn_map.shape == (B, L, L)
    assert jnp.allclose(out, ref_out, atol=2e-3, rtol=2e-3), \
        float(jnp.max(jnp.abs(out - ref_out)))
    assert jnp.allclose(attn_map, ref_attn, atol=2e-3, rtol=2e-3), \
        float(jnp.max(jnp.abs(attn_map - ref_attn)))

    print("KERNEL_OK")
</pallas_src>

<mosaic_0001>
module attributes {stable_mosaic.version = 11 : i64} {
  func.func @_fused_mha_kernel(%arg0: i32, %arg1: memref<8x2x32xf32, #tpu.memory_space<vmem>>, %arg2: memref<8x2x32xf32, #tpu.memory_space<vmem>>, %arg3: memref<8x2x32xf32, #tpu.memory_space<vmem>>, %arg4: memref<8x2x32xf32, #tpu.memory_space<vmem>>, %arg5: memref<4x32x32xf32, #tpu.memory_space<vmem>>, %arg6: memref<4x1x32xf32, #tpu.memory_space<vmem>>, %arg7: memref<8x2x32xf32, #tpu.memory_space<vmem>>, %arg8: memref<2x8x8xf32, #tpu.memory_space<vmem>>) attributes {dimension_semantics = [#tpu.dimension_semantics<arbitrary>], iteration_bounds = array<i64: 1>, scalar_prefetch = 0 : i64, scratch_operands = 0 : i64, tpu.core_type = #tpu.core_type<tc>, window_params = [{pipeline_mode = #tpu.pipeline_mode<synchronous>, transform_indices = @transform_0, window_bounds = array<i64: 8, 2, 32>}, {pipeline_mode = #tpu.pipeline_mode<synchronous>, transform_indices = @transform_1, window_bounds = array<i64: 8, 2, 32>}, {pipeline_mode = #tpu.pipeline_mode<synchronous>, transform_indices = @transform_2, window_bounds = array<i64: 8, 2, 32>}, {pipeline_mode = #tpu.pipeline_mode<synchronous>, transform_indices = @transform_3, window_bounds = array<i64: 8, 2, 32>}, {pipeline_mode = #tpu.pipeline_mode<synchronous>, transform_indices = @transform_4, window_bounds = array<i64: 4, 32, 32>}, {pipeline_mode = #tpu.pipeline_mode<synchronous>, transform_indices = @transform_5, window_bounds = array<i64: 4, 1, 32>}, {pipeline_mode = #tpu.pipeline_mode<synchronous>, transform_indices = @transform_6, window_bounds = array<i64: 8, 2, 32>}, {pipeline_mode = #tpu.pipeline_mode<synchronous>, transform_indices = @transform_7, window_bounds = array<i64: 2, 8, 8>}]} {
    %c0 = arith.constant 0 : index
    %c0_0 = arith.constant 0 : index
    %c0_1 = arith.constant 0 : index
    %0 = vector.load %arg1[%c0, %c0_0, %c0_1] : memref<8x2x32xf32, #tpu.memory_space<vmem>>, vector<8x2x32xf32>
    %1 = vector.extract_strided_slice %0 {offsets = [0, 0, 0], sizes = [8, 1, 32], strides = [1, 1, 1]} : vector<8x2x32xf32> to vector<8x1x32xf32>
    %2 = vector.shape_cast %1 : vector<8x1x32xf32> to vector<8x32xf32>
    %3 = vector.extract_strided_slice %0 {offsets = [0, 1, 0], sizes = [8, 1, 32], strides = [1, 1, 1]} : vector<8x2x32xf32> to vector<8x1x32xf32>
    %4 = vector.shape_cast %3 : vector<8x1x32xf32> to vector<8x32xf32>
    %5 = tpu.concatenate %2, %4 in 0 : vector<8x32xf32>, vector<8x32xf32> -> vector<16x32xf32>
    %c0_2 = arith.constant 0 : index
    %c0_3 = arith.constant 0 : index
    %c0_4 = arith.constant 0 : index
    %6 = vector.load %arg2[%c0_2, %c0_3, %c0_4] : memref<8x2x32xf32, #tpu.memory_space<vmem>>, vector<8x2x32xf32>
    %7 = vector.extract_strided_slice %6 {offsets = [0, 0, 0], sizes = [8, 1, 32], strides = [1, 1, 1]} : vector<8x2x32xf32> to vector<8x1x32xf32>
    %8 = vector.shape_cast %7 : vector<8x1x32xf32> to vector<8x32xf32>
    %9 = vector.extract_strided_slice %6 {offsets = [0, 1, 0], sizes = [8, 1, 32], strides = [1, 1, 1]} : vector<8x2x32xf32> to vector<8x1x32xf32>
    %10 = vector.shape_cast %9 : vector<8x1x32xf32> to vector<8x32xf32>
    %11 = tpu.concatenate %8, %10 in 0 : vector<8x32xf32>, vector<8x32xf32> -> vector<16x32xf32>
    %c0_5 = arith.constant 0 : index
    %c0_6 = arith.constant 0 : index
    %c0_7 = arith.constant 0 : index
    %12 = vector.load %arg3[%c0_5, %c0_6, %c0_7] : memref<8x2x32xf32, #tpu.memory_space<vmem>>, vector<8x2x32xf32>
    %13 = vector.extract_strided_slice %12 {offsets = [0, 0, 0], sizes = [8, 1, 32], strides = [1, 1, 1]} : vector<8x2x32xf32> to vector<8x1x32xf32>
    %14 = vector.shape_cast %13 : vector<8x1x32xf32> to vector<8x32xf32>
    %15 = vector.extract_strided_slice %12 {offsets = [0, 1, 0], sizes = [8, 1, 32], strides = [1, 1, 1]} : vector<8x2x32xf32> to vector<8x1x32xf32>
    %16 = vector.shape_cast %15 : vector<8x1x32xf32> to vector<8x32xf32>
    %17 = tpu.concatenate %14, %16 in 0 : vector<8x32xf32>, vector<8x32xf32> -> vector<16x32xf32>
    %c0_8 = arith.constant 0 : index
    %c0_9 = arith.constant 0 : index
    %c0_10 = arith.constant 0 : index
    %18 = vector.load %arg4[%c0_8, %c0_9, %c0_10] : memref<8x2x32xf32, #tpu.memory_space<vmem>>, vector<8x2x32xf32>
    %19 = vector.extract_strided_slice %18 {offsets = [0, 0, 0], sizes = [8, 1, 32], strides = [1, 1, 1]} : vector<8x2x32xf32> to vector<8x1x32xf32>
    %20 = vector.shape_cast %19 : vector<8x1x32xf32> to vector<8x32xf32>
    %21 = vector.extract_strided_slice %18 {offsets = [0, 1, 0], sizes = [8, 1, 32], strides = [1, 1, 1]} : vector<8x2x32xf32> to vector<8x1x32xf32>
    %22 = vector.shape_cast %21 : vector<8x1x32xf32> to vector<8x32xf32>
    %23 = tpu.concatenate %20, %22 in 0 : vector<8x32xf32>, vector<8x32xf32> -> vector<16x32xf32>
    %c0_11 = arith.constant 0 : index
    %c0_12 = arith.constant 0 : index
    %c0_13 = arith.constant 0 : index
    %24 = vector.load %arg5[%c0_11, %c0_12, %c0_13] : memref<4x32x32xf32, #tpu.memory_space<vmem>>, vector<1x32x32xf32>
    %25 = vector.shape_cast %24 : vector<1x32x32xf32> to vector<32x32xf32>
    %c1 = arith.constant 1 : index
    %c0_14 = arith.constant 0 : index
    %c0_15 = arith.constant 0 : index
    %26 = vector.load %arg5[%c1, %c0_14, %c0_15] : memref<4x32x32xf32, #tpu.memory_space<vmem>>, vector<1x32x32xf32>
    %27 = vector.shape_cast %26 : vector<1x32x32xf32> to vector<32x32xf32>
    %c2 = arith.constant 2 : index
    %c0_16 = arith.constant 0 : index
    %c0_17 = arith.constant 0 : index
    %28 = vector.load %arg5[%c2, %c0_16, %c0_17] : memref<4x32x32xf32, #tpu.memory_space<vmem>>, vector<1x32x32xf32>
    %29 = vector.shape_cast %28 : vector<1x32x32xf32> to vector<32x32xf32>
    %c3 = arith.constant 3 : index
    %c0_18 = arith.constant 0 : index
    %c0_19 = arith.constant 0 : index
    %30 = vector.load %arg5[%c3, %c0_18, %c0_19] : memref<4x32x32xf32, #tpu.memory_space<vmem>>, vector<1x32x32xf32>
    %31 = vector.shape_cast %30 : vector<1x32x32xf32> to vector<32x32xf32>
    %c0_20 = arith.constant 0 : index
    %c0_21 = arith.constant 0 : index
    %c0_22 = arith.constant 0 : index
    %32 = vector.load %arg6[%c0_20, %c0_21, %c0_22] : memref<4x1x32xf32, #tpu.memory_space<vmem>>, vector<1x1x32xf32>
    %33 = vector.shape_cast %32 : vector<1x1x32xf32> to vector<1x32xf32>
    %c1_23 = arith.constant 1 : index
    %c0_24 = arith.constant 0 : index
    %c0_25 = arith.constant 0 : index
    %34 = vector.load %arg6[%c1_23, %c0_24, %c0_25] : memref<4x1x32xf32, #tpu.memory_space<vmem>>, vector<1x1x32xf32>
    %35 = vector.shape_cast %34 : vector<1x1x32xf32> to vector<1x32xf32>
    %c2_26 = arith.constant 2 : index
    %c0_27 = arith.constant 0 : index
    %c0_28 = arith.constant 0 : index
    %36 = vector.load %arg6[%c2_26, %c0_27, %c0_28] : memref<4x1x32xf32, #tpu.memory_space<vmem>>, vector<1x1x32xf32>
    %37 = vector.shape_cast %36 : vector<1x1x32xf32> to vector<1x32xf32>
    %c3_29 = arith.constant 3 : index
    %c0_30 = arith.constant 0 : index
    %c0_31 = arith.constant 0 : index
    %38 = vector.load %arg6[%c3_29, %c0_30, %c0_31] : memref<4x1x32xf32, #tpu.memory_space<vmem>>, vector<1x1x32xf32>
    %39 = vector.shape_cast %38 : vector<1x1x32xf32> to vector<1x32xf32>
    %cst = arith.constant dense<0.000000e+00> : vector<16x32xf32>
    %40 = tpu.matmul %5, %25, %cst {dimension_numbers = #tpu.dot_dimension_numbers<[1], [0], [0], [1], [0, 0, 1, 1], [], []>, precision = #tpu.contract_precision<fp32>} : vector<16x32xf32>, vector<32x32xf32>, vector<16x32xf32> -> vector<16x32xf32>
    %41 = vector.broadcast %33 : vector<1x32xf32> to vector<16x32xf32>
    %42 = arith.addf %40, %41 : vector<16x32xf32>
    %cst_32 = arith.constant dense<0.000000e+00> : vector<16x32xf32>
    %43 = tpu.matmul %11, %27, %cst_32 {dimension_numbers = #tpu.dot_dimension_numbers<[1], [0], [0], [1], [0, 0, 1, 1], [], []>, precision = #tpu.contract_precision<fp32>} : vector<16x32xf32>, vector<32x32xf32>, vector<16x32xf32> -> vector<16x32xf32>
    %44 = vector.broadcast %35 : vector<1x32xf32> to vector<16x32xf32>
    %45 = arith.addf %43, %44 : vector<16x32xf32>
    %cst_33 = arith.constant dense<0.000000e+00> : vector<16x32xf32>
    %46 = tpu.matmul %17, %29, %cst_33 {dimension_numbers = #tpu.dot_dimension_numbers<[1], [0], [0], [1], [0, 0, 1, 1], [], []>, precision = #tpu.contract_precision<fp32>} : vector<16x32xf32>, vector<32x32xf32>, vector<16x32xf32> -> vector<16x32xf32>
    %47 = vector.broadcast %37 : vector<1x32xf32> to vector<16x32xf32>
    %48 = arith.addf %46, %47 : vector<16x32xf32>
    %49 = vector.extract_strided_slice %42 {offsets = [0, 0], sizes = [8, 32], strides = [1, 1]} : vector<16x32xf32> to vector<8x32xf32>
    %50 = vector.extract_strided_slice %45 {offsets = [0, 0], sizes = [8, 32], strides = [1, 1]} : vector<16x32xf32> to vector<8x32xf32>
    %51 = vector.extract_strided_slice %48 {offsets = [0, 0], sizes = [8, 32], strides = [1, 1]} : vector<16x32xf32> to vector<8x32xf32>
    %cst_34 = arith.constant 0.000000e+00 : f32
    %52 = vector.broadcast %cst_34 : f32 to vector<8x8xf32>
    %53 = vector.extract_strided_slice %49 {offsets = [0, 0], sizes = [8, 8], strides = [1, 1]} : vector<8x32xf32> to vector<8x8xf32>
    %54 = vector.extract_strided_slice %50 {offsets = [0, 0], sizes = [8, 8], strides = [1, 1]} : vector<8x32xf32> to vector<8x8xf32>
    %55 = vector.extract_strided_slice %51 {offsets = [0, 0], sizes = [8, 8], strides = [1, 1]} : vector<8x32xf32> to vector<8x8xf32>
    %cst_35 = arith.constant dense<0.000000e+00> : vector<8x8xf32>
    %56 = tpu.matmul %53, %54, %cst_35 {dimension_numbers = #tpu.dot_dimension_numbers<[1], [1], [0], [0], [0, 0, 1, 0], [], []>, precision = #tpu.contract_precision<fp32>} : vector<8x8xf32>, vector<8x8xf32>, vector<8x8xf32> -> vector<8x8xf32>
    %cst_36 = arith.constant dense<0xFF800000> : vector<8xf32>
    %57 = vector.multi_reduction <maximumf>, %56, %cst_36 [1] : vector<8x8xf32> to vector<8xf32>
    %58 = vector.shape_cast %57 : vector<8xf32> to vector<8x1xf32>
    %59 = vector.broadcast %58 : vector<8x1xf32> to vector<8x8xf32>
    %60 = arith.subf %56, %59 : vector<8x8xf32>
    %61 = math.exp %60 : vector<8x8xf32>
    %cst_37 = arith.constant dense<0.000000e+00> : vector<8xf32>
    %62 = vector.multi_reduction <add>, %61, %cst_37 [1] : vector<8x8xf32> to vector<8xf32>
    %63 = vector.shape_cast %62 : vector<8xf32> to vector<8x1xf32>
    %64 = tpu.reciprocal %63 : vector<8x1xf32> -> vector<8x1xf32>
    %65 = vector.broadcast %64 : vector<8x1xf32> to vector<8x8xf32>
    %66 = arith.mulf %61, %65 : vector<8x8xf32>
    %67 = arith.addf %52, %66 : vector<8x8xf32>
    %cst_38 = arith.constant dense<0.000000e+00> : vector<8x8xf32>
    %68 = tpu.matmul %66, %55, %cst_38 {dimension_numbers = #tpu.dot_dimension_numbers<[1], [0], [0], [1], [0, 0, 1, 1], [], []>, precision = #tpu.contract_precision<fp32>} : vector<8x8xf32>, vector<8x8xf32>, vector<8x8xf32> -> vector<8x8xf32>
    %69 = vector.extract_strided_slice %49 {offsets = [0, 8], sizes = [8, 8], strides = [1, 1]} : vector<8x32xf32> to vector<8x8xf32>
    %70 = vector.extract_strided_slice %50 {offsets = [0, 8], sizes = [8, 8], strides = [1, 1]} : vector<8x32xf32> to vector<8x8xf32>
    %71 = vector.extract_strided_slice %51 {offsets = [0, 8], sizes = [8, 8], strides = [1, 1]} : vector<8x32xf32> to vector<8x8xf32>
    %cst_39 = arith.constant dense<0.000000e+00> : vector<8x8xf32>
    %72 = tpu.matmul %69, %70, %cst_39 {dimension_numbers = #tpu.dot_dimension_numbers<[1], [1], [0], [0], [0, 0, 1, 0], [], []>, precision = #tpu.contract_precision<fp32>} : vector<8x8xf32>, vector<8x8xf32>, vector<8x8xf32> -> vector<8x8xf32>
    %cst_40 = arith.constant dense<0xFF800000> : vector<8xf32>
    %73 = vector.multi_reduction <maximumf>, %72, %cst_40 [1] : vector<8x8xf32> to vector<8xf32>
    %74 = vector.shape_cast %73 : vector<8xf32> to vector<8x1xf32>
    %75 = vector.broadcast %74 : vector<8x1xf32> to vector<8x8xf32>
    %76 = arith.subf %72, %75 : vector<8x8xf32>
    %77 = math.exp %76 : vector<8x8xf32>
    %cst_41 = arith.constant dense<0.000000e+00> : vector<8xf32>
    %78 = vector.multi_reduction <add>, %77, %cst_41 [1] : vector<8x8xf32> to vector<8xf32>
    %79 = vector.shape_cast %78 : vector<8xf32> to vector<8x1xf32>
    %80 = tpu.reciprocal %79 : vector<8x1xf32> -> vector<8x1xf32>
    %81 = vector.broadcast %80 : vector<8x1xf32> to vector<8x8xf32>
    %82 = arith.mulf %77, %81 : vector<8x8xf32>
    %83 = arith.addf %67, %82 : vector<8x8xf32>
    %cst_42 = arith.constant dense<0.000000e+00> : vector<8x8xf32>
    %84 = tpu.matmul %82, %71, %cst_42 {dimension_numbers = #tpu.dot_dimension_numbers<[1], [0], [0], [1], [0, 0, 1, 1], [], []>, precision = #tpu.contract_precision<fp32>} : vector<8x8xf32>, vector<8x8xf32>, vector<8x8xf32> -> vector<8x8xf32>
    %85 = vector.extract_strided_slice %49 {offsets = [0, 16], sizes = [8, 8], strides = [1, 1]} : vector<8x32xf32> to vector<8x8xf32>
    %86 = vector.extract_strided_slice %50 {offsets = [0, 16], sizes = [8, 8], strides = [1, 1]} : vector<8x32xf32> to vector<8x8xf32>
    %87 = vector.extract_strided_slice %51 {offsets = [0, 16], sizes = [8, 8], strides = [1, 1]} : vector<8x32xf32> to vector<8x8xf32>
    %cst_43 = arith.constant dense<0.000000e+00> : vector<8x8xf32>
    %88 = tpu.matmul %85, %86, %cst_43 {dimension_numbers = #tpu.dot_dimension_numbers<[1], [1], [0], [0], [0, 0, 1, 0], [], []>, precision = #tpu.contract_precision<fp32>} : vector<8x8xf32>, vector<8x8xf32>, vector<8x8xf32> -> vector<8x8xf32>
    %cst_44 = arith.constant dense<0xFF800000> : vector<8xf32>
    %89 = vector.multi_reduction <maximumf>, %88, %cst_44 [1] : vector<8x8xf32> to vector<8xf32>
    %90 = vector.shape_cast %89 : vector<8xf32> to vector<8x1xf32>
    %91 = vector.broadcast %90 : vector<8x1xf32> to vector<8x8xf32>
    %92 = arith.subf %88, %91 : vector<8x8xf32>
    %93 = math.exp %92 : vector<8x8xf32>
    %cst_45 = arith.constant dense<0.000000e+00> : vector<8xf32>
    %94 = vector.multi_reduction <add>, %93, %cst_45 [1] : vector<8x8xf32> to vector<8xf32>
    %95 = vector.shape_cast %94 : vector<8xf32> to vector<8x1xf32>
    %96 = tpu.reciprocal %95 : vector<8x1xf32> -> vector<8x1xf32>
    %97 = vector.broadcast %96 : vector<8x1xf32> to vector<8x8xf32>
    %98 = arith.mulf %93, %97 : vector<8x8xf32>
    %99 = arith.addf %83, %98 : vector<8x8xf32>
    %cst_46 = arith.constant dense<0.000000e+00> : vector<8x8xf32>
    %100 = tpu.matmul %98, %87, %cst_46 {dimension_numbers = #tpu.dot_dimension_numbers<[1], [0], [0], [1], [0, 0, 1, 1], [], []>, precision = #tpu.contract_precision<fp32>} : vector<8x8xf32>, vector<8x8xf32>, vector<8x8xf32> -> vector<8x8xf32>
    %101 = vector.extract_strided_slice %49 {offsets = [0, 24], sizes = [8, 8], strides = [1, 1]} : vector<8x32xf32> to vector<8x8xf32>
    %102 = vector.extract_strided_slice %50 {offsets = [0, 24], sizes = [8, 8], strides = [1, 1]} : vector<8x32xf32> to vector<8x8xf32>
    %103 = vector.extract_strided_slice %51 {offsets = [0, 24], sizes = [8, 8], strides = [1, 1]} : vector<8x32xf32> to vector<8x8xf32>
    %cst_47 = arith.constant dense<0.000000e+00> : vector<8x8xf32>
    %104 = tpu.matmul %101, %102, %cst_47 {dimension_numbers = #tpu.dot_dimension_numbers<[1], [1], [0], [0], [0, 0, 1, 0], [], []>, precision = #tpu.contract_precision<fp32>} : vector<8x8xf32>, vector<8x8xf32>, vector<8x8xf32> -> vector<8x8xf32>
    %cst_48 = arith.constant dense<0xFF800000> : vector<8xf32>
    %105 = vector.multi_reduction <maximumf>, %104, %cst_48 [1] : vector<8x8xf32> to vector<8xf32>
    %106 = vector.shape_cast %105 : vector<8xf32> to vector<8x1xf32>
    %107 = vector.broadcast %106 : vector<8x1xf32> to vector<8x8xf32>
    %108 = arith.subf %104, %107 : vector<8x8xf32>
    %109 = math.exp %108 : vector<8x8xf32>
    %cst_49 = arith.constant dense<0.000000e+00> : vector<8xf32>
    %110 = vector.multi_reduction <add>, %109, %cst_49 [1] : vector<8x8xf32> to vector<8xf32>
    %111 = vector.shape_cast %110 : vector<8xf32> to vector<8x1xf32>
    %112 = tpu.reciprocal %111 : vector<8x1xf32> -> vector<8x1xf32>
    %113 = vector.broadcast %112 : vector<8x1xf32> to vector<8x8xf32>
    %114 = arith.mulf %109, %113 : vector<8x8xf32>
    %115 = arith.addf %99, %114 : vector<8x8xf32>
    %cst_50 = arith.constant dense<0.000000e+00> : vector<8x8xf32>
    %116 = tpu.matmul %114, %103, %cst_50 {dimension_numbers = #tpu.dot_dimension_numbers<[1], [0], [0], [1], [0, 0, 1, 1], [], []>, precision = #tpu.contract_precision<fp32>} : vector<8x8xf32>, vector<8x8xf32>, vector<8x8xf32> -> vector<8x8xf32>
    %cst_51 = arith.constant 2.500000e-01 : f32
    %117 = vector.broadcast %cst_51 : f32 to vector<8x8xf32>
    %118 = arith.mulf %115, %117 : vector<8x8xf32>
    %c0_52 = arith.constant 0 : index
    %c0_53 = arith.constant 0 : index
    %c0_54 = arith.constant 0 : index
    %119 = vector.load %arg8[%c0_52, %c0_53, %c0_54] : memref<2x8x8xf32, #tpu.memory_space<vmem>>, vector<1x8x8xf32>
    %120 = vector.shape_cast %119 : vector<1x8x8xf32> to vector<8x8xf32>
    %121 = vector.shape_cast %118 : vector<8x8xf32> to vector<1x8x8xf32>
    tpu.vector_store %arg8[%c0_52, %c0_53, %c0_54], %121 {strides = array<i32>} : memref<2x8x8xf32, #tpu.memory_space<vmem>>, vector<1x8x8xf32>,
    %122 = tpu.concatenate %68, %84, %100, %116 in 1 : vector<8x8xf32>, vector<8x8xf32>, vector<8x8xf32>, vector<8x8xf32> -> vector<8x32xf32>
    %123 = vector.extract_strided_slice %42 {offsets = [8, 0], sizes = [8, 32], strides = [1, 1]} : vector<16x32xf32> to vector<8x32xf32>
    %124 = vector.extract_strided_slice %45 {offsets = [8, 0], sizes = [8, 32], strides = [1, 1]} : vector<16x32xf32> to vector<8x32xf32>
    %125 = vector.extract_strided_slice %48 {offsets = [8, 0], sizes = [8, 32], strides = [1, 1]} : vector<16x32xf32> to vector<8x32xf32>
    %cst_55 = arith.constant 0.000000e+00 : f32
    %126 = vector.broadcast %cst_55 : f32 to vector<8x8xf32>
    %127 = vector.extract_strided_slice %123 {offsets = [0, 0], sizes = [8, 8], strides = [1, 1]} : vector<8x32xf32> to vector<8x8xf32>
    %128 = vector.extract_strided_slice %124 {offsets = [0, 0], sizes = [8, 8], strides = [1, 1]} : vector<8x32xf32> to vector<8x8xf32>
    %129 = vector.extract_strided_slice %125 {offsets = [0, 0], sizes = [8, 8], strides = [1, 1]} : vector<8x32xf32> to vector<8x8xf32>
    %cst_56 = arith.constant dense<0.000000e+00> : vector<8x8xf32>
    %130 = tpu.matmul %127, %128, %cst_56 {dimension_numbers = #tpu.dot_dimension_numbers<[1], [1], [0], [0], [0, 0, 1, 0], [], []>, precision = #tpu.contract_precision<fp32>} : vector<8x8xf32>, vector<8x8xf32>, vector<8x8xf32> -> vector<8x8xf32>
    %cst_57 = arith.constant dense<0xFF800000> : vector<8xf32>
    %131 = vector.multi_reduction <maximumf>, %130, %cst_57 [1] : vector<8x8xf32> to vector<8xf32>
    %132 = vector.shape_cast %131 : vector<8xf32> to vector<8x1xf32>
    %133 = vector.broadcast %132 : vector<8x1xf32> to vector<8x8xf32>
    %134 = arith.subf %130, %133 : vector<8x8xf32>
    %135 = math.exp %134 : vector<8x8xf32>
    %cst_58 = arith.constant dense<0.000000e+00> : vector<8xf32>
    %136 = vector.multi_reduction <add>, %135, %cst_58 [1] : vector<8x8xf32> to vector<8xf32>
    %137 = vector.shape_cast %136 : vector<8xf32> to vector<8x1xf32>
    %138 = tpu.reciprocal %137 : vector<8x1xf32> -> vector<8x1xf32>
    %139 = vector.broadcast %138 : vector<8x1xf32> to vector<8x8xf32>
    %140 = arith.mulf %135, %139 : vector<8x8xf32>
    %141 = arith.addf %126, %140 : vector<8x8xf32>
    %cst_59 = arith.constant dense<0.000000e+00> : vector<8x8xf32>
    %142 = tpu.matmul %140, %129, %cst_59 {dimension_numbers = #tpu.dot_dimension_numbers<[1], [0], [0], [1], [0, 0, 1, 1], [], []>, precision = #tpu.contract_precision<fp32>} : vector<8x8xf32>, vector<8x8xf32>, vector<8x8xf32> -> vector<8x8xf32>
    %143 = vector.extract_strided_slice %123 {offsets = [0, 8], sizes = [8, 8], strides = [1, 1]} : vector<8x32xf32> to vector<8x8xf32>
    %144 = vector.extract_strided_slice %124 {offsets = [0, 8], sizes = [8, 8], strides = [1, 1]} : vector<8x32xf32> to vector<8x8xf32>
    %145 = vector.extract_strided_slice %125 {offsets = [0, 8], sizes = [8, 8], strides = [1, 1]} : vector<8x32xf32> to vector<8x8xf32>
    %cst_60 = arith.constant dense<0.000000e+00> : vector<8x8xf32>
    %146 = tpu.matmul %143, %144, %cst_60 {dimension_numbers = #tpu.dot_dimension_numbers<[1], [1], [0], [0], [0, 0, 1, 0], [], []>, precision = #tpu.contract_precision<fp32>} : vector<8x8xf32>, vector<8x8xf32>, vector<8x8xf32> -> vector<8x8xf32>
    %cst_61 = arith.constant dense<0xFF800000> : vector<8xf32>
    %147 = vector.multi_reduction <maximumf>, %146, %cst_61 [1] : vector<8x8xf32> to vector<8xf32>
    %148 = vector.shape_cast %147 : vector<8xf32> to vector<8x1xf32>
    %149 = vector.broadcast %148 : vector<8x1xf32> to vector<8x8xf32>
    %150 = arith.subf %146, %149 : vector<8x8xf32>
    %151 = math.exp %150 : vector<8x8xf32>
    %cst_62 = arith.constant dense<0.000000e+00> : vector<8xf32>
    %152 = vector.multi_reduction <add>, %151, %cst_62 [1] : vector<8x8xf32> to vector<8xf32>
    %153 = vector.shape_cast %152 : vector<8xf32> to vector<8x1xf32>
    %154 = tpu.reciprocal %153 : vector<8x1xf32> -> vector<8x1xf32>
    %155 = vector.broadcast %154 : vector<8x1xf32> to vector<8x8xf32>
    %156 = arith.mulf %151, %155 : vector<8x8xf32>
    %157 = arith.addf %141, %156 : vector<8x8xf32>
    %cst_63 = arith.constant dense<0.000000e+00> : vector<8x8xf32>
    %158 = tpu.matmul %156, %145, %cst_63 {dimension_numbers = #tpu.dot_dimension_numbers<[1], [0], [0], [1], [0, 0, 1, 1], [], []>, precision = #tpu.contract_precision<fp32>} : vector<8x8xf32>, vector<8x8xf32>, vector<8x8xf32> -> vector<8x8xf32>
    %159 = vector.extract_strided_slice %123 {offsets = [0, 16], sizes = [8, 8], strides = [1, 1]} : vector<8x32xf32> to vector<8x8xf32>
    %160 = vector.extract_strided_slice %124 {offsets = [0, 16], sizes = [8, 8], strides = [1, 1]} : vector<8x32xf32> to vector<8x8xf32>
    %161 = vector.extract_strided_slice %125 {offsets = [0, 16], sizes = [8, 8], strides = [1, 1]} : vector<8x32xf32> to vector<8x8xf32>
    %cst_64 = arith.constant dense<0.000000e+00> : vector<8x8xf32>
    %162 = tpu.matmul %159, %160, %cst_64 {dimension_numbers = #tpu.dot_dimension_numbers<[1], [1], [0], [0], [0, 0, 1, 0], [], []>, precision = #tpu.contract_precision<fp32>} : vector<8x8xf32>, vector<8x8xf32>, vector<8x8xf32> -> vector<8x8xf32>
    %cst_65 = arith.constant dense<0xFF800000> : vector<8xf32>
    %163 = vector.multi_reduction <maximumf>, %162, %cst_65 [1] : vector<8x8xf32> to vector<8xf32>
    %164 = vector.shape_cast %163 : vector<8xf32> to vector<8x1xf32>
    %165 = vector.broadcast %164 : vector<8x1xf32> to vector<8x8xf32>
    %166 = arith.subf %162, %165 : vector<8x8xf32>
    %167 = math.exp %166 : vector<8x8xf32>
    %cst_66 = arith.constant dense<0.000000e+00> : vector<8xf32>
    %168 = vector.multi_reduction <add>, %167, %cst_66 [1] : vector<8x8xf32> to vector<8xf32>
    %169 = vector.shape_cast %168 : vector<8xf32> to vector<8x1xf32>
    %170 = tpu.reciprocal %169 : vector<8x1xf32> -> vector<8x1xf32>
    %171 = vector.broadcast %170 : vector<8x1xf32> to vector<8x8xf32>
    %172 = arith.mulf %167, %171 : vector<8x8xf32>
    %173 = arith.addf %157, %172 : vector<8x8xf32>
    %cst_67 = arith.constant dense<0.000000e+00> : vector<8x8xf32>
    %174 = tpu.matmul %172, %161, %cst_67 {dimension_numbers = #tpu.dot_dimension_numbers<[1], [0], [0], [1], [0, 0, 1, 1], [], []>, precision = #tpu.contract_precision<fp32>} : vector<8x8xf32>, vector<8x8xf32>, vector<8x8xf32> -> vector<8x8xf32>
    %175 = vector.extract_strided_slice %123 {offsets = [0, 24], sizes = [8, 8], strides = [1, 1]} : vector<8x32xf32> to vector<8x8xf32>
    %176 = vector.extract_strided_slice %124 {offsets = [0, 24], sizes = [8, 8], strides = [1, 1]} : vector<8x32xf32> to vector<8x8xf32>
    %177 = vector.extract_strided_slice %125 {offsets = [0, 24], sizes = [8, 8], strides = [1, 1]} : vector<8x32xf32> to vector<8x8xf32>
    %cst_68 = arith.constant dense<0.000000e+00> : vector<8x8xf32>
    %178 = tpu.matmul %175, %176, %cst_68 {dimension_numbers = #tpu.dot_dimension_numbers<[1], [1], [0], [0], [0, 0, 1, 0], [], []>, precision = #tpu.contract_precision<fp32>} : vector<8x8xf32>, vector<8x8xf32>, vector<8x8xf32> -> vector<8x8xf32>
    %cst_69 = arith.constant dense<0xFF800000> : vector<8xf32>
    %179 = vector.multi_reduction <maximumf>, %178, %cst_69 [1] : vector<8x8xf32> to vector<8xf32>
    %180 = vector.shape_cast %179 : vector<8xf32> to vector<8x1xf32>
    %181 = vector.broadcast %180 : vector<8x1xf32> to vector<8x8xf32>
    %182 = arith.subf %178, %181 : vector<8x8xf32>
    %183 = math.exp %182 : vector<8x8xf32>
    %cst_70 = arith.constant dense<0.000000e+00> : vector<8xf32>
    %184 = vector.multi_reduction <add>, %183, %cst_70 [1] : vector<8x8xf32> to vector<8xf32>
    %185 = vector.shape_cast %184 : vector<8xf32> to vector<8x1xf32>
    %186 = tpu.reciprocal %185 : vector<8x1xf32> -> vector<8x1xf32>
    %187 = vector.broadcast %186 : vector<8x1xf32> to vector<8x8xf32>
    %188 = arith.mulf %183, %187 : vector<8x8xf32>
    %189 = arith.addf %173, %188 : vector<8x8xf32>
    %cst_71 = arith.constant dense<0.000000e+00> : vector<8x8xf32>
    %190 = tpu.matmul %188, %177, %cst_71 {dimension_numbers = #tpu.dot_dimension_numbers<[1], [0], [0], [1], [0, 0, 1, 1], [], []>, precision = #tpu.contract_precision<fp32>} : vector<8x8xf32>, vector<8x8xf32>, vector<8x8xf32> -> vector<8x8xf32>
    %cst_72 = arith.constant 2.500000e-01 : f32
    %191 = vector.broadcast %cst_72 : f32 to vector<8x8xf32>
    %192 = arith.mulf %189, %191 : vector<8x8xf32>
    %c1_73 = arith.constant 1 : index
    %c0_74 = arith.constant 0 : index
    %c0_75 = arith.constant 0 : index
    %193 = vector.load %arg8[%c1_73, %c0_74, %c0_75] : memref<2x8x8xf32, #tpu.memory_space<vmem>>, vector<1x8x8xf32>
    %194 = vector.shape_cast %193 : vector<1x8x8xf32> to vector<8x8xf32>
    %195 = vector.shape_cast %192 : vector<8x8xf32> to vector<1x8x8xf32>
    tpu.vector_store %arg8[%c1_73, %c0_74, %c0_75], %195 {strides = array<i32>} : memref<2x8x8xf32, #tpu.memory_space<vmem>>, vector<1x8x8xf32>,
    %196 = tpu.concatenate %142, %158, %174, %190 in 1 : vector<8x8xf32>, vector<8x8xf32>, vector<8x8xf32>, vector<8x8xf32> -> vector<8x32xf32>
    %197 = tpu.concatenate %122, %196 in 0 : vector<8x32xf32>, vector<8x32xf32> -> vector<16x32xf32>
    %198 = vector.broadcast %39 : vector<1x32xf32> to vector<16x32xf32>
    %199 = arith.addf %23, %198 : vector<16x32xf32>
    %cst_76 = arith.constant dense<0.000000e+00> : vector<16x32xf32>
    %200 = tpu.matmul %197, %31, %cst_76 {dimension_numbers = #tpu.dot_dimension_numbers<[1], [0], [0], [1], [0, 0, 1, 1], [], []>, precision = #tpu.contract_precision<fp32>} : vector<16x32xf32>, vector<32x32xf32>, vector<16x32xf32> -> vector<16x32xf32>
    %201 = arith.addf %199, %200 : vector<16x32xf32>
    %202 = vector.extract_strided_slice %201 {offsets = [0, 0], sizes = [8, 32], strides = [1, 1]} : vector<16x32xf32> to vector<8x32xf32>
    %203 = vector.shape_cast %202 : vector<8x32xf32> to vector<8x1x32xf32>
    %c0_77 = arith.constant 0 : index
    %c0_78 = arith.constant 0 : index
    %c0_79 = arith.constant 0 : index
    %204 = vector.load %arg7[%c0_77, %c0_78, %c0_79] : memref<8x2x32xf32, #tpu.memory_space<vmem>>, vector<8x1x32xf32>
    tpu.vector_store %arg7[%c0_77, %c0_78, %c0_79], %203 {strides = array<i32>} : memref<8x2x32xf32, #tpu.memory_space<vmem>>, vector<8x1x32xf32>,
    %205 = vector.extract_strided_slice %201 {offsets = [8, 0], sizes = [8, 32], strides = [1, 1]} : vector<16x32xf32> to vector<8x32xf32>
    %206 = vector.shape_cast %205 : vector<8x32xf32> to vector<8x1x32xf32>
    %c0_80 = arith.constant 0 : index
    %c1_81 = arith.constant 1 : index
    %c0_82 = arith.constant 0 : index
    %207 = vector.load %arg7[%c0_80, %c1_81, %c0_82] : memref<8x2x32xf32, #tpu.memory_space<vmem>>, vector<8x1x32xf32>
    tpu.vector_store %arg7[%c0_80, %c1_81, %c0_82], %206 {strides = array<i32>} : memref<8x2x32xf32, #tpu.memory_space<vmem>>, vector<8x1x32xf32>,
    return
  }
  func.func @transform_0(%arg0: i32) -> (i32, i32, i32) {
    %c0_i32 = arith.constant 0 : i32
    %c0_i32_0 = arith.constant 0 : i32
    %c0_i32_1 = arith.constant 0 : i32
    %c0_i32_2 = arith.constant 0 : i32
    return %c0_i32, %c0_i32_0, %c0_i32_1 : i32, i32, i32
  }
  func.func @transform_1(%arg0: i32) -> (i32, i32, i32) {
    %c0_i32 = arith.constant 0 : i32
    %c0_i32_0 = arith.constant 0 : i32
    %c0_i32_1 = arith.constant 0 : i32
    %c0_i32_2 = arith.constant 0 : i32
    return %c0_i32, %c0_i32_0, %c0_i32_1 : i32, i32, i32
  }
  func.func @transform_2(%arg0: i32) -> (i32, i32, i32) {
    %c0_i32 = arith.constant 0 : i32
    %c0_i32_0 = arith.constant 0 : i32
    %c0_i32_1 = arith.constant 0 : i32
    %c0_i32_2 = arith.constant 0 : i32
    return %c0_i32, %c0_i32_0, %c0_i32_1 : i32, i32, i32
  }
  func.func @transform_3(%arg0: i32) -> (i32, i32, i32) {
    %c0_i32 = arith.constant 0 : i32
    %c0_i32_0 = arith.constant 0 : i32
    %c0_i32_1 = arith.constant 0 : i32
    %c0_i32_2 = arith.constant 0 : i32
    return %c0_i32, %c0_i32_0, %c0_i32_1 : i32, i32, i32
  }
  func.func @transform_4(%arg0: i32) -> (i32, i32, i32) {
    %c0_i32 = arith.constant 0 : i32
    %c0_i32_0 = arith.constant 0 : i32
    %c0_i32_1 = arith.constant 0 : i32
    %c0_i32_2 = arith.constant 0 : i32
    return %c0_i32, %c0_i32_0, %c0_i32_1 : i32, i32, i32
  }
  func.func @transform_5(%arg0: i32) -> (i32, i32, i32) {
    %c0_i32 = arith.constant 0 : i32
    %c0_i32_0 = arith.constant 0 : i32
    %c0_i32_1 = arith.constant 0 : i32
    %c0_i32_2 = arith.constant 0 : i32
    return %c0_i32, %c0_i32_0, %c0_i32_1 : i32, i32, i32
  }
  func.func @transform_6(%arg0: i32) -> (i32, i32, i32) {
    %c0_i32 = arith.constant 0 : i32
    %c0_i32_0 = arith.constant 0 : i32
    %c0_i32_1 = arith.constant 0 : i32
    %c0_i32_2 = arith.constant 0 : i32
    return %c0_i32, %c0_i32_0, %c0_i32_1 : i32, i32, i32
  }
  func.func @transform_7(%arg0: i32) -> (i32, i32, i32) {
    %c0_i32 = arith.constant 0 : i32
    %c0_i32_0 = arith.constant 0 : i32
    %c0_i32_1 = arith.constant 0 : i32
    %c0_i32_2 = arith.constant 0 : i32
    return %c0_i32, %c0_i32_0, %c0_i32_1 : i32, i32, i32
  }
}

</mosaic_0001>

<bundles_post_ra>
// kernel: tpu_custom_call.1
= control target key start
LH: loop header
LB: loop body
LE: loop exit
PB: predicated region body
PF: predicated region fallthrough
CT: control target
= control target key end

     0   :  { %13 = vsyncpa [#allocation3], 0  ;;  %s12339_s0 = inlined_call_operand.hbm [shape: f32[8,2,32], index: 0, kind: input, shape index: {}]   ;;  %s12340_s1 = inlined_call_operand.hbm [shape: f32[8,2,32], index: 1, kind: input, shape index: {}]   ;;  %s12341_s2 = inlined_call_operand.hbm [shape: f32[8,2,32], index: 2, kind: input, shape index: {}]   ;;  %s12342_s3 = inlined_call_operand.hbm [shape: f32[8,2,32], index: 3, kind: input, shape index: {}]   ;;  %s12343_s4 = inlined_call_operand.hbm [shape: f32[4,32,32], index: 4, kind: input, shape index: {}]   ;;  %s12344_s5 = inlined_call_operand.vmem [shape: f32[4,1,32], index: 5, kind: input, shape index: {}]   ;;  %s12345_s6 = inlined_call_operand.hbm [shape: f32[8,2,32], index: 6, kind: output, shape index: {0}]   ;;  %s12346_s7 = inlined_call_operand.hbm [shape: f32[2,8,8], index: 7, kind: output, shape index: {1}]  }
   0x1   :  { %14 = vsyncpa [#allocation6], 0 }
   0x2   :  { %15 = vsyncpa [#allocation9], 0 }
   0x3   :  { %16 = vsyncpa [#allocation4], 0 }
   0x4   :  { %17 = vsyncpa [#allocation13], 0  ;;  %s11295_s24 = smov [#allocation5]   ;;  %s11296_s26 = smov [#allocation8]  }
   0x5   :  { %s35_s25 = sshll.u32 %s11295_s24, 4  ;;  %s59_s27 = sshll.u32 %s11296_s26, 4  ;;  %s36_s25 = int_to_ptr.vmem [resolvable:$true] %s35_s25  ;;  %s60_s27 = int_to_ptr.vmem [resolvable:$true] %s59_s27 }
   0x6   :  { %s11153_s28 = scalar_lea.vmem %s36_s25, 256  ;;  %p11158_p1 = scmp.lt.s32.totalorder %s36_s25, %s36_s25 }
   0x7   :  { %p11154_p0 = scmp.ne.s32.totalorder %s36_s25, %s11153_s28  ;;  %p11159_p2 = scmp.lt.s32.totalorder %s11153_s28, %s11153_s28 }
   0x9   :  { %p11160_p3 = por %p11159_p2, %p11158_p1 }
   0xb   :  { %p11161_p4 = pnand %p11160_p3, %p11154_p0 }
   0xd   :  { %11164 = shalt.err (!%p11161_p4)
}
   0xe   :  { %s11297_s29 = smov 32   ;;  %s11298_s30 = smov 2  }
   0xf   :  { %41 = dma.hbm_to_vmem [thread:$0]  %s12340_s1, 256, %s36_s25, [#allocation6], %s11297_s29, %s11297_s29, %s11298_s30  }
  0x10   :  { %s11173_s10 = scalar_lea.vmem %s60_s27, 256  ;;  %p11178_p6 = scmp.lt.s32.totalorder %s60_s27, %s60_s27 }
  0x11   :  { %p11174_p5 = scmp.ne.s32.totalorder %s60_s27, %s11173_s10  ;;  %p11179_p7 = scmp.lt.s32.totalorder %s11173_s10, %s11173_s10 }
  0x13   :  { %p11180_p8 = por %p11179_p7, %p11178_p6 }
  0x15   :  { %p11181_p9 = pnand %p11180_p8, %p11174_p5 }
  0x17   :  { %11184 = shalt.err (!%p11181_p9)
}
  0x18   :  { %65 = dma.hbm_to_vmem [thread:$0]  %s12342_s3, 256, %s60_s27, [#allocation9], %s11297_s29, %s11297_s29, %s11298_s30  }
  0x19   :  { %s11299_s13 = smov [#allocation2]   ;;  %s11300_s15 = smov [#allocation7]  }
  0x1a   :  { %s23_s14 = sshll.u32 %s11299_s13, 4  ;;  %s47_s16 = sshll.u32 %s11300_s15, 4  ;;  %s24_s14 = int_to_ptr.vmem [resolvable:$true] %s23_s14  ;;  %s48_s16 = int_to_ptr.vmem [resolvable:$true] %s47_s16 }
  0x1b   :  { %s11193_s1 = scalar_lea.vmem %s24_s14, 256  ;;  %p11198_p11 = scmp.lt.s32.totalorder %s24_s14, %s24_s14 }
  0x1c   :  { %p11194_p10 = scmp.ne.s32.totalorder %s24_s14, %s11193_s1  ;;  %p11199_p12 = scmp.lt.s32.totalorder %s11193_s1, %s11193_s1 }
  0x1e   :  { %p11200_p13 = por %p11199_p12, %p11198_p11 }
  0x20   :  { %p11201_p0 = pnand %p11200_p13, %p11194_p10 }
  0x22   :  { %11204 = shalt.err (!%p11201_p0)
}
  0x23   :  { %29 = dma.hbm_to_vmem [thread:$0]  %s12339_s0, 256, %s24_s14, [#allocation3], %s11297_s29, %s11297_s29, %s11298_s30  }
  0x24   :  { %s11213_s3 = scalar_lea.vmem %s48_s16, 256  ;;  %p11218_p2 = scmp.lt.s32.totalorder %s48_s16, %s48_s16 }
  0x25   :  { %p11214_p1 = scmp.ne.s32.totalorder %s48_s16, %s11213_s3  ;;  %p11219_p3 = scmp.lt.s32.totalorder %s11213_s3, %s11213_s3 }
  0x27   :  { %p11220_p4 = por %p11219_p3, %p11218_p2 }
  0x29   :  { %p11221_p5 = pnand %p11220_p4, %p11214_p1 }
  0x2b   :  { %11224 = shalt.err (!%p11221_p5)
}
  0x2c   :  { %53 = dma.hbm_to_vmem [thread:$0]  %s12341_s2, 256, %s48_s16, [#allocation6], %s11297_s29, %s11297_s29, %s11298_s30  }
  0x2d   :  { %s11301_s21 = smov [#allocation10]  }
  0x2e   :  { %s71_s22 = sshll.u32 %s11301_s21, 4  ;;  %s72_s22 = int_to_ptr.vmem [resolvable:$true] %s71_s22 }
  0x2f   :  { %s11233_s23 = scalar_lea.vmem %s72_s22, 2048  ;;  %p11238_p7 = scmp.lt.s32.totalorder %s72_s22, %s72_s22 }
  0x30   :  { %p11234_p6 = scmp.ne.s32.totalorder %s72_s22, %s11233_s23  ;;  %p11239_p8 = scmp.lt.s32.totalorder %s11233_s23, %s11233_s23 }
  0x32   :  { %p11240_p9 = por %p11239_p8, %p11238_p7 }
  0x34   :  { %p11241_p10 = pnand %p11240_p9, %p11234_p6 }
  0x36   :  { %11244 = shalt.err (!%p11241_p10)
}
  0x37   :  { %s11302_s0 = smov 128   ;;  %s11303_s24 = smov 8  }
  0x38   :  { %77 = dma.hbm_to_vmem [thread:$0]  %s12343_s4, 2048, %s72_s22, [#allocation9], %s11302_s0, %s11302_s0, %s11303_s24  }
  0x39   :  { %11285 = dma.done.wait [#allocation3], 256  }
  0x3a   :  { %11286 = vsyncadd [#allocation3], 4294967040 }
  0x3b   :  { %11287 = dma.done.wait [#allocation6], 512  }
  0x3c   :  { %11288 = vsyncadd [#allocation6], 4294966784 }
  0x3d   :  { %11289 = dma.done.wait [#allocation9], 2304  }
  0x3e   :  { %11290 = vsyncadd [#allocation9], 4294964992  ;;  %vm112_vm0 = vcmask 1041409   ;;  %vm115_vm1 = vcmask 1042434   ;;  %vm118_vm2 = vcmask 1043459   ;;  %v283_v0 = vld [vmem:[#allocation10 + $0x18] sm:$0xff] }
  0x3f   :  { %v282_v1 = vld [vmem:[#allocation10 + $0x10] sm:$0xff]  ;;  %v281_v2 = vld [vmem:[#allocation10 + $0x8] sm:$0xff]  ;;  %vm121_vm3 = vcmask 1044484   ;;  %vm124_vm4 = vcmask 1045509   ;;  %vm127_vm5 = vcmask 1046534   ;;  %v11384_v3 = vand.u32 4294901760, %v283_v0 }
  0x40   :  { %v11386_v4 = vand.u32 4294901760, %v282_v1  ;;  %v11388_v5 = vand.u32 4294901760, %v281_v2  ;;  %v280_v6 = vld [vmem:[#allocation10] sm:$0xff]  ;;  %vm130_vm6 = vcmask 1047559   ;;  %v99_v15 = vld [vmem:[#allocation2 + $0x8] sm:$0x3] }
  0x41   :  { %v95_v7 = vld [vmem:[#allocation2] sm:$0x3]  ;;  %v11390_v8 = vand.u32 4294901760, %v280_v6  ;;  %v96_v9 = vld [vmem:[#allocation2 + $0x2] sm:$0x3]  ;;  %10350 = vmatprep.subr.mxu0 %v11384_v3  ;;  %v11394_v11 = vsub.f32 %v283_v0, %v11384_v3  ;;  %v120_v29 = vrot.slane %v99_v15, 4 }
  0x42   :  { %v97_v10 = vld [vmem:[#allocation2 + $0x4] sm:$0x3]  ;;  %v11397_v12 = vsub.f32 %v282_v1, %v11386_v4  ;;  %v11400_v13 = vsub.f32 %v281_v2, %v11388_v5  ;;  %v98_v14 = vld [vmem:[#allocation2 + $0x6] sm:$0x3]  ;;  %v100_v16 = vld [vmem:[#allocation2 + $0xa] sm:$0x3]  ;;  %10351 = vmatpush3.msra.mxu0 %v11384_v3 }
  0x43   :  { %v11404_v17 = vsub.f32 %v280_v6, %v11390_v8  ;;  %v11406_v18 = vld [vmem:[#allocation2 + $0xc] sm:$0x3]  ;;  %v111_v19 = vrot.slane %v96_v9, 7  ;;  %v114_v20 = vrot.slane %v97_v10, 6  ;;  %v132_v21 = vrot.slane %v95_v7, 1  ;;  %10352 = vmatprep.subr.mxu0 %v11386_v4  ;;  %s11306_s8 = smov 120  }
  0x44   :  { %v11409_v22 = vand.u32 4294901760, %v11394_v11  ;;  %v11413_v23 = vand.u32 4294901760, %v11397_v12  ;;  %v11416_v24 = vand.u32 4294901760, %v11400_v13  ;;  %v102_v25 = vld [vmem:[#allocation2 + $0xe] sm:$0x3]  ;;  %v117_v26 = vrot.slane %v98_v14, 5  ;;  %10353 = vmatpush3.msra.mxu0 %v11386_v4 }
  0x45   :  { %v11420_v27 = vand.u32 4294901760, %v11404_v17  ;;  %v113_v28 = vsel %vm112_vm0, %v111_v19, %v95_v7  ;;  %v123_v30 = vrot.slane %v100_v16, 3  ;;  %10354 = vmatprep.subr.mxu0 %v11388_v5  ;;  %v126_v36 = vrot.slane %v11406_v18, 2  ;;  %v11446_v53 = vld [vmem:[#allocation5 + $0x2] sm:$0x3]  ;;  %s11307_s11 = smov 112  }
  0x46   :  { %v434_v31 = vsub.f32 %v11394_v11, %v11409_v22  ;;  %v441_v32 = vsub.f32 %v11397_v12, %v11413_v23  ;;  %v448_v33 = vsub.f32 %v11400_v13, %v11416_v24  ;;  %v116_v34 = vsel %vm115_vm1, %v114_v20, %v113_v28  ;;  %10355 = vmatpush3.msra.mxu0 %v11388_v5  ;;  %v146_v61 = vld [vmem:[#allocation5] sm:$0x3]  ;;  %v148_v1 = vld [vmem:[#allocation5 + $0x4] sm:$0x3]  ;;  %v149_v6 = vld [vmem:[#allocation5 + $0x6] sm:$0x3] }
  0x47   :  { %v119_v35 = vsel %vm118_vm2, %v117_v26, %v116_v34  ;;  %v129_v37 = vrot.slane %v102_v25, 1  ;;  %v133_v38 = vsel %vm112_vm0, %v96_v9, %v132_v21  ;;  %10356 = vmatprep.subr.mxu0 %v11390_v8  ;;  %v455_v41 = vsub.f32 %v11404_v17, %v11420_v27  ;;  %v152_v21 = vld [vmem:[#allocation5 + $0xc] sm:$0x3]  ;;  %s11308_s12 = smov 104   ;;  %s11309_s13 = smov 16  }
  0x48   :  { %v435_v39 = vand.u32 4294901760, %v434_v31  ;;  %v442_v40 = vand.u32 4294901760, %v441_v32  ;;  %v122_v42 = vsel %vm121_vm3, %v120_v29, %v119_v35  ;;  %10357 = vmatpush3.msra.mxu0 %v11390_v8  ;;  %v134_v44 = vrot.slane %v97_v10, 7  ;;  %v288_v10 = vld [vmem:[#allocation10 + $0x38] sm:$0xff]  ;;  %v287_v32 = vld [vmem:[#allocation10 + $0x30] sm:$0xff]  ;;  %s11310_s14 = smov 24  }
  0x49   :  { %v125_v43 = vsel %vm124_vm4, %v123_v30, %v122_v42  ;;  %v136_v45 = vrot.slane %v98_v14, 6  ;;  %vm312_vm7 = vcmask 261120   ;;  %v449_v46 = vand.u32 4294901760, %v448_v33  ;;  %10372 = vmatprep.subr.mxu0 %v11394_v11  ;;  %s11311_s15 = smov [#allocation12]  }
  0x4a   :  { %10361 = vmatprep.subr.mxu1 %v435_v39  ;;  %v128_v47 = vsel %vm127_vm5, %v126_v36, %v125_v43  ;;  %v138_v48 = vrot.slane %v99_v15, 5  ;;  %v140_v49 = vrot.slane %v100_v16, 4  ;;  %v142_v51 = vrot.slane %v11406_v18, 3  ;;  %v150_v16 = vld [vmem:[#allocation5 + $0x8] sm:$0x3]  ;;  %s9989_s16 = sshll.u32 %s11311_s15, 4  ;;  %s9990_s16 = int_to_ptr.vmem [resolvable:$true] %s9989_s16 }
  0x4b   :  { %10362 = vmatpush3.msra.mxu1 %v435_v39  ;;  %v131_v50 = vsel %vm130_vm6, %v129_v37, %v128_v47  ;;  %v135_v52 = vsel %vm115_vm1, %v134_v44, %v133_v38  ;;  %v456_v54 = vand.u32 4294901760, %v455_v41  ;;  %v144_v55 = vrot.slane %v102_v25, 2  ;;  %v151_v18 = vld [vmem:[#allocation5 + $0xa] sm:$0x3]  ;;  %v11468_v25 = vld [vmem:[#allocation5 + $0xe] sm:$0x3]  ;;  %p11250_p12 = scmp.lt.s32.totalorder %s9990_s16, %s9990_s16 }
  0x4c   :  { %10363 = vmatprep.subr.mxu1 %v442_v40  ;;  %v313_v56 = vsel %vm312_vm7, %v131_v50, 0  ;;  %v137_v57 = vsel %vm118_vm2, %v136_v45, %v135_v52  ;;  %v162_v62 = vrot.slane %v11446_v53, 7  ;;  %v164_v19 = vrot.slane %v148_v1, 6  ;;  %v286_v45 = vld [vmem:[#allocation10 + $0x28] sm:$0xff]  ;;  %s11245_s1 = scalar_lea.vmem %s9990_s16, 256 }
  0x4d   :  { %10364 = vmatpush3.msra.mxu1 %v442_v40  ;;  %v11450_v58 = vand.u32 4294901760, %v313_v56  ;;  %v139_v59 = vsel %vm121_vm3, %v138_v48, %v137_v57  ;;  %v166_v26 = vrot.slane %v149_v6, 5  ;;  %v11476_v31 = vand.u32 4294901760, %v288_v10  ;;  %p11246_p11 = scmp.ne.s32.totalorder %s9990_s16, %s11245_s1  ;;  %p11251_p13 = scmp.lt.s32.totalorder %s11245_s1, %s11245_s1 }
  0x4e   :  { %10365 = vmatprep.subr.mxu1 %v449_v46  ;;  %v141_v60 = vsel %vm124_vm4, %v140_v49, %v139_v59  ;;  %v163_v14 = vsel %vm112_vm0, %v162_v62, %v146_v61  ;;  %v168_v34 = vrot.slane %v150_v16, 4  ;;  %v170_v36 = vrot.slane %v151_v18, 3 }
  0x4f   :  { %10366 = vmatpush3.msra.mxu1 %v449_v46  ;;  %v11456_v63 = vsub.f32 %v313_v56, %v11450_v58  ;;  %10369 = vmatprep.mubr.f32.mxu1 %v11450_v58  ;;  %v143_v0 = vsel %vm127_vm5, %v142_v51, %v141_v60  ;;  %v165_v29 = vsel %vm115_vm1, %v164_v19, %v163_v14  ;;  %v172_v37 = vrot.slane %v152_v21, 2  ;;  %p11252_p0 = por %p11251_p13, %p11250_p12 }
  0x50   :  { %10367 = vmatprep.subr.mxu1 %v456_v54  ;;  %v145_v2 = vsel %vm130_vm6, %v144_v55, %v143_v0  ;;  %v167_v33 = vsel %vm118_vm2, %v166_v26, %v165_v29  ;;  %v174_v38 = vrot.slane %v11468_v25, 1  ;;  %v176_v40 = vrot.slane %v146_v61, 1  ;;  %v190_v29 = vld [vmem:[#allocation7] sm:$0x3] }
  0x51   :  { %10368 = vmatpush3.msra.mxu1 %v456_v54  ;;  %v388_v7 = vand.u32 4294901760, %v11456_v63  ;;  %v315_v9 = vsel %vm312_vm7, %v145_v2, 0  ;;  %v169_v39 = vsel %vm121_vm3, %v168_v34, %v167_v33  ;;  %v178_v41 = vrot.slane %v148_v1, 7  ;;  %v285_v54 = vld [vmem:[#allocation10 + $0x20] sm:$0xff]  ;;  %p11253_p1 = pnand %p11252_p0, %p11246_p11 }
  0x52   :  { %10383 = vmatprep.subr.mxu1 %v11384_v3  ;;  %v11465_v15 = vand.u32 4294901760, %v315_v9  ;;  %v180_v42 = vrot.slane %v149_v6, 6  ;;  %v11486_v44 = vand.u32 4294901760, %v287_v32  ;;  %v171_v46 = vsel %vm124_vm4, %v170_v36, %v169_v39  ;;  %v293_v39 = vld [vmem:[#allocation10 + $0x58] sm:$0xff] }
  0x53   :  { %v389_v20 = vsub.f32 %v11456_v63, %v388_v7  ;;  %v182_v47 = vrot.slane %v150_v16, 5  ;;  %v11491_v48 = vsub.f32 %v288_v10, %v11476_v31  ;;  %v173_v49 = vsel %vm127_vm5, %v172_v37, %v171_v46  ;;  %v196_v46 = vld [vmem:[#allocation7 + $0xc] sm:$0x3] }
  0x54   :  { %v11471_v28 = vsub.f32 %v315_v9, %v11465_v15  ;;  %10370 = vmatmul.mubr.f32.vlgmr.msra.gmra.mxu1 %v11465_v15  ;;  %v184_v50 = vrot.slane %v151_v18, 4  ;;  %v177_v51 = vsel %vm112_vm0, %v11446_v53, %v176_v40  ;;  %v175_v55 = vsel %vm130_vm6, %v174_v38, %v173_v49  ;;  %v195_v40 = vld [vmem:[#allocation7 + $0xa] sm:$0x3]  ;;  %v292_v49 = vld [vmem:[#allocation10 + $0x50] sm:$0xff] }
  0x55   :  { %v390_v30 = vand.u32 4294901760, %v389_v20  ;;  %10384 = vmatpush3.msra.mxu1 %v11384_v3  ;;  %10391 = vmatprep.mubr.f32.mxu1 %v388_v7  ;;  %v186_v56 = vrot.slane %v152_v21, 3  ;;  %v179_v57 = vsel %vm115_vm1, %v178_v41, %v177_v51  ;;  %v11500_v59 = vand.u32 4294901760, %v286_v45 }
  0x56   :  { %v398_v35 = vand.u32 4294901760, %v11471_v28  ;;  %10385 = vmatprep.subr.mxu1 %v11386_v4  ;;  %v188_v60 = vrot.slane %v11468_v25, 2  ;;  %v851_v61 = vsel %vm312_vm7, %v175_v55, 0  ;;  %v181_v62 = vsel %vm118_vm2, %v180_v42, %v179_v57 }
  0x57   :  { %10358 = vmatprep.mubr.f32.mxu0 %v390_v30  ;;  %10386 = vmatpush3.msra.mxu1 %v11386_v4  ;;  %v183_v53 = vsel %vm121_vm3, %v182_v47, %v181_v62  ;;  %v11510_v0 = vand.u32 4294901760, %v11491_v48  ;;  %v11513_v1 = vsub.f32 %v287_v32, %v11486_v44  ;;  %v11515_v2 = vand.u32 4294901760, %v285_v54  ;;  %v192_v30 = vld [vmem:[#allocation7 + $0x4] sm:$0x3]  ;;  %v193_v32 = vld [vmem:[#allocation7 + $0x6] sm:$0x3] }
  0x58   :  { %v399_v43 = vsub.f32 %v11471_v28, %v398_v35  ;;  %10387 = vmatprep.subr.mxu1 %v11388_v5  ;;  %v185_v6 = vsel %vm124_vm4, %v184_v50, %v183_v53  ;;  %v11519_v7 = vand.u32 4294901760, %v851_v61  ;;  %v208_v33 = vrot.slane %v192_v30, 6  ;;  %v197_v50 = vld [vmem:[#allocation7 + $0xe] sm:$0x3] }
  0x59   :  { %10388 = vmatpush3.msra.mxu1 %v11388_v5  ;;  %v187_v9 = vsel %vm127_vm5, %v186_v56, %v185_v6  ;;  %v11539_v14 = vsub.f32 %v285_v54, %v11515_v2  ;;  %v220_v34 = vrot.slane %v190_v29, 1  ;;  %v210_v37 = vrot.slane %v193_v32, 5 }
  0x5a   :  { %v400_v52 = vand.u32 4294901760, %v399_v43  ;;  %10389 = vmatprep.subr.mxu1 %v11390_v8  ;;  %v11546_v18 = vsub.f32 %v851_v61, %v11519_v7  ;;  %v222_v38 = vrot.slane %v192_v30, 7  ;;  %v224_v43 = vrot.slane %v193_v32, 6  ;;  %v291_v61 = vld [vmem:[#allocation10 + $0x48] sm:$0xff] }
  0x5b   :  { %10390 = vmatpush3.msra.mxu1 %v11390_v8  ;;  %v11641_v56 = vand.u32 4294901760, %v292_v49  ;;  %v228_v53 = vrot.slane %v195_v40, 4  ;;  %v11654_v6 = vand.u32 4294901760, %v291_v61  ;;  %vm11305_vm8 = vmmov 0  }
  0x5c   :  { %10359 = vmatmul.mubr.f32.vlgmr.msra.gmra.mxu0 %v400_v52  ;;  %10405 = vmatprep.subr.mxu1 %v11384_v3  ;;  %v926_v20 = vand.u32 4294901760, %v11546_v18  ;;  %v216_v52 = vrot.slane %v196_v46, 2  ;;  %vm1921_vm9 = vcmask 64512   ;;  %vm5605_vm10 = vcmask 130048  }
  0x5d   :  { %10373 = vmatpush3.msra.mxu0 %v11394_v11  ;;  %10380 = vmatprep.mubr.f32.mxu0 %v11456_v63  ;;  %v11525_v11 = vsub.f32 %v286_v45, %v11500_v59  ;;  %v189_v63 = vsel %vm130_vm6, %v188_v60, %v187_v9  ;;  %v11635_v45 = vand.u32 4294901760, %v293_v39  ;;  %v218_v60 = vrot.slane %v197_v50, 1 }
  0x5e   :  { %10374 = vmatprep.subr.mxu0 %v11397_v12  ;;  %10392 = vmatmul.mubr.f32.vlgmr.msra.gmra.mxu1 %v398_v35  ;;  %v853_v10 = vsel %vm312_vm7, %v189_v63, 0  ;;  %v194_v35 = vld [vmem:[#allocation7 + $0x8] sm:$0x3]  ;;  %v232_v63 = vrot.slane %v197_v50, 2  ;;  %vm5607_vm11 = vcmask 195584  }
  0x5f   :  { %10375 = vmatpush3.msra.mxu0 %v11397_v12  ;;  %10406 = vmatpush3.msra.mxu1 %v11384_v3  ;;  %v972_v12 = vsub.f32 %v11491_v48, %v11510_v0  ;;  %v11536_v3 = vand.u32 4294901760, %v11513_v1  ;;  %v11541_v16 = vand.u32 4294901760, %v853_v10  ;;  %v212_v42 = vrot.slane %v194_v35, 4 }
  0x60   :  { %10376 = vmatprep.subr.mxu0 %v11400_v13  ;;  %10407 = vmatprep.subr.mxu1 %v11386_v4  ;;  %v226_v54 = vrot.slane %v194_v35, 5  ;;  %v11644_v57 = vsub.f32 %v293_v39, %v11635_v45 }
  0x61   :  { %10377 = vmatpush3.msra.mxu0 %v11400_v13  ;;  %10408 = vmatpush3.msra.mxu1 %v11386_v4  ;;  %v11551_v4 = vand.u32 4294901760, %v11525_v11  ;;  %v11556_v13 = vsub.f32 %v853_v10, %v11541_v16  ;;  %v973_v19 = vand.u32 4294901760, %v972_v12 }
  0x62   :  { %10378 = vmatprep.subr.mxu0 %v11404_v17  ;;  %10409 = vmatprep.subr.mxu1 %v11388_v5 }
  0x63   :  { %10379 = vmatpush3.msra.mxu0 %v11404_v17  ;;  %10410 = vmatpush3.msra.mxu1 %v11388_v5  ;;  %v979_v17 = vsub.f32 %v11513_v1, %v11536_v3  ;;  %v11563_v5 = vand.u32 4294901760, %v11539_v14  ;;  %v936_v21 = vand.u32 4294901760, %v11556_v13 }
  0x64   :  { %10381 = vmatmul.mubr.f32.vlgmr.msra.gmra.mxu0 %v11471_v28  ;;  %10394 = vmatprep.subr.mxu0 %v11409_v22 }
  0x65   :  { %10395 = vmatpush3.msra.mxu0 %v11409_v22  ;;  %10411 = vmatprep.subr.mxu1 %v11390_v8  ;;  %v986_v22 = vsub.f32 %v11525_v11, %v11551_v4  ;;  %v980_v25 = vand.u32 4294901760, %v979_v17  ;;  %v993_v26 = vsub.f32 %v11539_v14, %v11563_v5 }
  0x66   :  { %10396 = vmatprep.subr.mxu0 %v11413_v23  ;;  %10402 = vmatprep.mubr.f32.mxu0 %v11450_v58 }
  0x67   :  { %10397 = vmatpush3.msra.mxu0 %v11413_v23  ;;  %10412 = vmatpush3.msra.mxu1 %v11390_v8  ;;  %v927_v8 = vsub.f32 %v11546_v18, %v926_v20  ;;  %v987_v23 = vand.u32 4294901760, %v986_v22 }
  0x68   :  { %10398 = vmatprep.subr.mxu0 %v11416_v24  ;;  %10413 = vmatprep.mubr.f32.mxu1 %v11450_v58  ;;  %v994_v58 = vand.u32 4294901760, %v993_v26 }
  0x69   :  { %10399 = vmatpush3.msra.mxu0 %v11416_v24  ;;  %10427 = vmatprep.subr.mxu1 %v973_v19  ;;  %v937_v24 = vsub.f32 %v11556_v13, %v936_v21  ;;  %v928_v28 = vand.u32 4294901760, %v927_v8 }
  0x6a   :  { %10400 = vmatprep.subr.mxu0 %v11420_v27  ;;  %10414 = vmatmul.mubr.f32.vlgmr.msra.gmra.mxu1 %v11465_v15 }
  0x6b   :  { %10401 = vmatpush3.msra.mxu0 %v11420_v27  ;;  %10428 = vmatpush3.msra.mxu1 %v973_v19  ;;  %v938_v27 = vand.u32 4294901760, %v937_v24 }
  0x6c   :  { %10403 = vmatmul.mubr.f32.vlgmr.msra.gmra.mxu0 %v11465_v15  ;;  %10416 = vmatprep.subr.mxu0 %v11476_v31  ;;  %v191_v15 = vld [vmem:[#allocation7 + $0x2] sm:$0x3] }
  0x6d   :  { %10417 = vmatpush3.msra.mxu0 %v11476_v31  ;;  %10429 = vmatprep.subr.mxu1 %v980_v25 }
  0x6e   :  { %10418 = vmatprep.subr.mxu0 %v11486_v44  ;;  %10430 = vmatpush3.msra.mxu1 %v980_v25 }
  0x6f   :  { %10419 = vmatpush3.msra.mxu0 %v11486_v44  ;;  %10431 = vmatprep.subr.mxu1 %v987_v23 }
  0x70   :  { %10420 = vmatprep.subr.mxu0 %v11500_v59  ;;  %10432 = vmatpush3.msra.mxu1 %v987_v23 }
  0x71   :  { %10421 = vmatpush3.msra.mxu0 %v11500_v59  ;;  %10433 = vmatprep.subr.mxu1 %v994_v58 }
  0x72   :  { %10422 = vmatprep.subr.mxu0 %v11515_v2  ;;  %10424 = vmatprep.mubr.f32.mxu0 %v928_v28 }
  0x73   :  { %10423 = vmatpush3.msra.mxu0 %v11515_v2  ;;  %10434 = vmatpush3.msra.mxu1 %v994_v58 }
  0x74   :  { %10425 = vmatmul.mubr.f32.vlgmr.msra.gmra.mxu0 %v938_v27  ;;  %10435 = vmatprep.mubr.f32.mxu1 %v11519_v7 }
  0x75   :  { %10438 = vmatprep.subr.mxu0 %v11491_v48  ;;  %10449 = vmatprep.subr.mxu1 %v11476_v31 }
  0x76   :  { %10436 = vmatmul.mubr.f32.vlgmr.msra.gmra.mxu1 %v11541_v16  ;;  %10439 = vmatpush3.msra.mxu0 %v11491_v48  ;;  %v214_v48 = vrot.slane %v195_v40, 3 }
  0x77   :  { %10450 = vmatpush3.msra.mxu1 %v11476_v31  ;;  %10440 = vmatprep.subr.mxu0 %v11513_v1 }
  0x78   :  { %10451 = vmatprep.subr.mxu1 %v11486_v44  ;;  %10441 = vmatpush3.msra.mxu0 %v11513_v1 }
  0x79   :  { %10452 = vmatpush3.msra.mxu1 %v11486_v44  ;;  %10442 = vmatprep.subr.mxu0 %v11525_v11 }
  0x7a   :  { %10453 = vmatprep.subr.mxu1 %v11500_v59  ;;  %10443 = vmatpush3.msra.mxu0 %v11525_v11  ;;  %v290_v11 = vld [vmem:[#allocation10 + $0x40] sm:$0xff] }
  0x7b   :  { %10454 = vmatpush3.msra.mxu1 %v11500_v59  ;;  %10444 = vmatprep.subr.mxu0 %v11539_v14 }
  0x7c   :  { %10455 = vmatprep.subr.mxu1 %v11515_v2  ;;  %10445 = vmatpush3.msra.mxu0 %v11539_v14 }
  0x7d   :  { %10446 = vmatprep.mubr.f32.mxu0 %v11546_v18  ;;  %10456 = vmatpush3.msra.mxu1 %v11515_v2  ;;  %v1522_v18 = vsub.f32 %v291_v61, %v11654_v6 }
  0x7e   :  { %10447 = vmatmul.mubr.f32.vlgmr.msra.gmra.mxu0 %v11556_v13  ;;  %10457 = vmatprep.mubr.f32.mxu1 %v926_v20 }
  0x7f   :  { %10460 = vmatprep.subr.mxu0 %v11510_v0  ;;  %10471 = vmatprep.subr.mxu1 %v11476_v31  ;;  %v1523_v22 = vand.u32 4294901760, %v1522_v18 }
  0x80   :  { %10458 = vmatmul.mubr.f32.vlgmr.msra.gmra.mxu1 %v936_v21  ;;  %10461 = vmatpush3.msra.mxu0 %v11510_v0  ;;  %v230_v0 = vrot.slane %v196_v46, 3 }
  0x81   :  { %10472 = vmatpush3.msra.mxu1 %v11476_v31  ;;  %10462 = vmatprep.subr.mxu0 %v11536_v3  ;;  %v206_v31 = vrot.slane %v191_v15, 7  ;;  %v1524_v24 = vsub.f32 %v1522_v18, %v1523_v22 }
  0x82   :  { %10473 = vmatprep.subr.mxu1 %v11486_v44  ;;  %10463 = vmatpush3.msra.mxu0 %v11536_v3 }
  0x83   :  { %10474 = vmatpush3.msra.mxu1 %v11486_v44  ;;  %10464 = vmatprep.subr.mxu0 %v11551_v4  ;;  %v207_v36 = vsel %vm112_vm0, %v206_v31, %v190_v29  ;;  %v221_v44 = vsel %vm112_vm0, %v191_v15, %v220_v34  ;;  %v1525_v15 = vand.u32 4294901760, %v1524_v24 }
  0x84   :  { %10475 = vmatprep.subr.mxu1 %v11500_v59  ;;  %10465 = vmatpush3.msra.mxu0 %v11551_v4  ;;  %v209_v41 = vsel %vm115_vm1, %v208_v33, %v207_v36  ;;  %v223_v55 = vsel %vm115_vm1, %v222_v38, %v221_v44  ;;  %v11304_v36 = vmov 0.0  }
  0x85   :  { %10476 = vmatpush3.msra.mxu1 %v11500_v59  ;;  %10466 = vmatprep.subr.mxu0 %v11563_v5  ;;  %v211_v47 = vsel %vm118_vm2, %v210_v37, %v209_v41  ;;  %v225_v1 = vsel %vm118_vm2, %v224_v43, %v223_v55  ;;  %v10010_v37 = vld [vmem:[%s12344_s5] ss:$0 sm:$0xff] }
  0x86   :  { %10477 = vmatprep.subr.mxu1 %v11515_v2  ;;  %10467 = vmatpush3.msra.mxu0 %v11563_v5  ;;  %v213_v51 = vsel %vm121_vm3, %v212_v42, %v211_v47  ;;  %v227_v12 = vsel %vm121_vm3, %v226_v54, %v225_v1 }
  0x87   :  { %10468 = vmatprep.mubr.f32.mxu0 %v11519_v7  ;;  %10478 = vmatpush3.msra.mxu1 %v11515_v2  ;;  %v215_v59 = vsel %vm124_vm4, %v214_v48, %v213_v51  ;;  %v11652_v2 = vand.u32 4294901760, %v11644_v57  ;;  %v229_v13 = vsel %vm124_vm4, %v228_v53, %v227_v12 }
  0x88   :  { %10479 = vmatprep.mubr.f32.mxu1 %v11519_v7  ;;  %10469 = vmatmul.mubr.f32.vlgmr.msra.gmra.mxu0 %v11541_v16  ;;  %v217_v62 = vsel %vm127_vm5, %v216_v52, %v215_v59  ;;  %v1515_v7 = vsub.f32 %v292_v49, %v11641_v56  ;;  %v231_v20 = vsel %vm127_vm5, %v230_v0, %v229_v13 }
  0x89   :  { %10480 = vmatmul.mubr.f32.vlgmr.msra.gmra.mxu1 %v11541_v16  ;;  %10482 = vmatprep.subr.mxu0 %v11635_v45  ;;  %v219_v9 = vsel %vm130_vm6, %v218_v60, %v217_v62  ;;  %v1510_v3 = vsub.f32 %v11644_v57, %v11652_v2  ;;  %v11666_v16 = vand.u32 4294901760, %v290_v11  ;;  %v233_v25 = vsel %vm130_vm6, %v232_v63, %v231_v20  ;;  %v10011_v60 = vld [vmem:[%s12344_s5 + $0x1] ss:$0 sm:$0xff] }
  0x8a   :  { %10483 = vmatpush3.msra.mxu0 %v11635_v45  ;;  %v1389_v10 = vsel %vm312_vm7, %v219_v9, 0  ;;  %v11664_v14 = vand.u32 4294901760, %v1515_v7  ;;  %v1391_v23 = vsel %vm312_vm7, %v233_v25, 0 }
  0x8b   :  { %10484 = vmatprep.subr.mxu0 %v11641_v56  ;;  %v11670_v4 = vand.u32 4294901760, %v1389_v10  ;;  %v1511_v19 = vand.u32 4294901760, %v1510_v3  ;;  %v1529_v5 = vsub.f32 %v290_v11, %v11666_v16  ;;  %v1472_v28 = vand.u32 4294901760, %v1391_v23 }
  0x8c   :  { %10485 = vmatpush3.msra.mxu0 %v11641_v56  ;;  %v1517_v17 = vsub.f32 %v1515_v7, %v11664_v14 }
  0x8d   :  { %10486 = vmatprep.subr.mxu0 %v11654_v6  ;;  %v1463_v21 = vsub.f32 %v1389_v10, %v11670_v4  ;;  %10501 = vmatprep.mubr.f32.mxu1 %v11670_v4  ;;  %v1530_v8 = vand.u32 4294901760, %v1529_v5  ;;  %v1473_v30 = vsub.f32 %v1391_v23, %v1472_v28 }
  0x8e   :  { %10487 = vmatpush3.msra.mxu0 %v11654_v6  ;;  %10493 = vmatprep.subr.mxu1 %v1511_v19  ;;  %v1518_v26 = vand.u32 4294901760, %v1517_v17 }
  0x8f   :  { %10488 = vmatprep.subr.mxu0 %v11666_v16  ;;  %10494 = vmatpush3.msra.mxu1 %v1511_v19  ;;  %v1464_v58 = vand.u32 4294901760, %v1463_v21  ;;  %v1531_v27 = vsub.f32 %v1529_v5, %v1530_v8  ;;  %v1474_v33 = vand.u32 4294901760, %v1473_v30 }
  0x90   :  { %10489 = vmatpush3.msra.mxu0 %v11666_v16  ;;  %10495 = vmatprep.subr.mxu1 %v1518_v26 }
  0x91   :  { %10504 = vmatprep.subr.mxu0 %v11644_v57  ;;  %10496 = vmatpush3.msra.mxu1 %v1518_v26  ;;  %v1465_v29 = vsub.f32 %v1463_v21, %v1464_v58  ;;  %v1532_v31 = vand.u32 4294901760, %v1531_v27  ;;  %v1475_v34 = vsub.f32 %v1473_v30, %v1474_v33 }
  0x92   :  { %10497 = vmatprep.subr.mxu1 %v1525_v15 }
  0x93   :  { %v1466_v32 = vand.u32 4294901760, %v1465_v29  ;;  %10498 = vmatpush3.msra.mxu1 %v1525_v15  ;;  %v1476_v35 = vand.u32 4294901760, %v1475_v34 }
  0x94   :  { %10499 = vmatprep.subr.mxu1 %v1532_v31 }
  0x95   :  { %10490 = vmatprep.mubr.f32.mxu0 %v1466_v32  ;;  %10500 = vmatpush3.msra.mxu1 %v1532_v31 }
  0x96   :  { %10515 = vmatprep.subr.mxu1 %v11635_v45  ;;  %10502 = vmatmul.mubr.f32.vlgmr.msra.gmra.mxu1 %v1472_v28 }
  0x97   :  { %10516 = vmatpush3.msra.mxu1 %v11635_v45  ;;  %10523 = vmatprep.mubr.f32.mxu1 %v1464_v58 }
  0x98   :  { %10491 = vmatmul.mubr.f32.vlgmr.msra.gmra.mxu0 %v1476_v35  ;;  %10517 = vmatprep.subr.mxu1 %v11641_v56  ;;  %v10012_v35 = vld [vmem:[%s12344_s5 + $0x2] ss:$0 sm:$0xff] }
  0x99   :  { %10505 = vmatpush3.msra.mxu0 %v11644_v57  ;;  %10518 = vmatpush3.msra.mxu1 %v11641_v56 }
  0x9a   :  { %10506 = vmatprep.subr.mxu0 %v1515_v7  ;;  %10519 = vmatprep.subr.mxu1 %v11654_v6 }
  0x9b   :  { %10507 = vmatpush3.msra.mxu0 %v1515_v7  ;;  %10520 = vmatpush3.msra.mxu1 %v11654_v6 }
  0x9c   :  { %10508 = vmatprep.subr.mxu0 %v1522_v18  ;;  %10512 = vmatprep.mubr.f32.mxu0 %v1463_v21 }
  0x9d   :  { %10509 = vmatpush3.msra.mxu0 %v1522_v18  ;;  %10521 = vmatprep.subr.mxu1 %v11666_v16 }
  0x9e   :  { %10510 = vmatprep.subr.mxu0 %v1529_v5  ;;  %10522 = vmatpush3.msra.mxu1 %v11666_v16 }
  0x9f   :  { %10511 = vmatpush3.msra.mxu0 %v1529_v5  ;;  %10537 = vmatprep.subr.mxu1 %v11635_v45 }
  0xa0   :  { %10526 = vmatprep.subr.mxu0 %v11652_v2  ;;  %10513 = vmatmul.mubr.f32.vlgmr.msra.gmra.mxu0 %v1473_v30 }
  0xa1   :  { %10527 = vmatpush3.msra.mxu0 %v11652_v2  ;;  %10524 = vmatmul.mubr.f32.vlgmr.msra.gmra.mxu1 %v1474_v33 }
  0xa2   :  { %10528 = vmatprep.subr.mxu0 %v11664_v14  ;;  %10538 = vmatpush3.msra.mxu1 %v11635_v45 }
  0xa3   :  { %10529 = vmatpush3.msra.mxu0 %v11664_v14  ;;  %10539 = vmatprep.subr.mxu1 %v11641_v56 }
  0xa4   :  { %10530 = vmatprep.subr.mxu0 %v1523_v22  ;;  %10540 = vmatpush3.msra.mxu1 %v11641_v56 }
  0xa5   :  { %10531 = vmatpush3.msra.mxu0 %v1523_v22  ;;  %10541 = vmatprep.subr.mxu1 %v11654_v6 }
  0xa6   :  { %10532 = vmatprep.subr.mxu0 %v1530_v8  ;;  %10534 = vmatprep.mubr.f32.mxu0 %v11670_v4 }
  0xa7   :  { %10533 = vmatpush3.msra.mxu0 %v1530_v8  ;;  %10542 = vmatpush3.msra.mxu1 %v11654_v6 }
  0xa8   :  { %10535 = vmatmul.mubr.f32.vlgmr.msra.gmra.mxu0 %v1472_v28  ;;  %10543 = vmatprep.subr.mxu1 %v11666_v16 }
  0xa9   :  { %10544 = vmatpush3.msra.mxu1 %v11666_v16  ;;  %10545 = vmatprep.mubr.f32.mxu1 %v11670_v4 }
  0xaa   :  { %10546 = vmatmul.mubr.f32.vlgmr.msra.gmra.mxu1 %v1472_v28  ;;  %10548 = vmatprep.subr.mxu0 %v11304_v36 }
  0xab   :  { %10553 = vmatprep.subr.mxu1 %v11304_v36  ;;  %10550 = vmatprep.mubr.msk.f32.mxu0 %vm11305_vm8, %v11304_v36 }
  0xac   :  { %10555 = vmatprep.mubr.msk.f32.mxu1 %vm11305_vm8, %v11304_v36 }
 0x114   :  { %v10371_v40 = vpop.f32.mrf.mxu1 }
 0x116   :  { %v493_v43 = vpop.f32.mrf.mxu1 }
 0x11c   :  { %v10360_v38 = vpop.f32.mrf.mxu0 }
 0x11d   :  { %v403_v39 = vadd.f32 %v10360_v38, %v10010_v37 }
 0x11e   :  { %v392_v42 = vpop.f32.mrf.mxu0  ;;  %v10393_v45 = vpop.f32.mrf.mxu1 }
 0x11f   :  { %v500_v41 = vadd.f32 %v10371_v40, %v403_v39  ;;  %v393_v50 = vadd.f32 %v10010_v37, %v392_v42 }
 0x120   :  { %v663_v49 = vpop.f32.mrf.mxu1 }
 0x121   :  { %v494_v56 = vadd.f32 %v493_v43, %v393_v50 }
 0x124   :  { %v10382_v44 = vpop.f32.mrf.mxu0 }
 0x125   :  { %v587_v46 = vadd.f32 %v10382_v44, %v500_v41 }
 0x126   :  { %v579_v48 = vpop.f32.mrf.mxu0 }
 0x127   :  { %v672_v47 = vadd.f32 %v10393_v45, %v587_v46  ;;  %v580_v57 = vadd.f32 %v579_v48, %v494_v56 }
 0x129   :  { %v664_v0 = vadd.f32 %v663_v49, %v580_v57 }
 0x12a   :  { %v10415_v52 = vpop.f32.mrf.mxu1 }
 0x12c   :  { %v10404_v51 = vpop.f32.mrf.mxu0  ;;  %v835_v61 = vpop.f32.mrf.mxu1 }
 0x12d   :  { %v761_v54 = vadd.f32 %v10404_v51, %v672_v47 }
 0x12e   :  { %v754_v59 = vpop.f32.mrf.mxu0 }
 0x12f   :  { %v11715_v55 = vadd.f32 %v10415_v52, %v761_v54  ;;  %v755_v6 = vadd.f32 %v754_v59, %v664_v0 }
 0x131   :  { %v11720_v7 = vadd.f32 %v835_v61, %v755_v6 }
 0x133   :  { %v1923_v3 = vsel %vm1921_vm9, %v11720_v7, 0 }
 0x134   :  { %v10426_v62 = vpop.f32.mrf.mxu0  ;;  %v1994_v4 = vand.u32 4294901760, %v1923_v3 }
 0x135   :  { %v941_v53 = vadd.f32 %v10426_v62, %v10011_v60 }
 0x136   :  { %v10437_v1 = vpop.f32.mrf.mxu1  ;;  %v930_v9 = vpop.f32.mrf.mxu0  ;;  %v1995_v5 = vsub.f32 %v1923_v3, %v1994_v4 }
 0x137   :  { %v1038_v2 = vadd.f32 %v10437_v1, %v941_v53  ;;  %v931_v10 = vadd.f32 %v10011_v60, %v930_v9 }
 0x138   :  { %v1031_v11 = vpop.f32.mrf.mxu1  ;;  %v1996_v24 = vand.u32 4294901760, %v1995_v5 }
 0x139   :  { %v1032_v13 = vadd.f32 %v1031_v11, %v931_v10 }
 0x13a   :  { %v1997_v15 = vsub.f32 %v1995_v5, %v1996_v24 }
 0x13c   :  { %v1998_v31 = vand.u32 4294901760, %v1997_v15 }
 0x13e   :  { %v10448_v63 = vpop.f32.mrf.mxu0 }
 0x13f   :  { %v1125_v12 = vadd.f32 %v10448_v63, %v1038_v2 }
 0x140   :  { %v10459_v14 = vpop.f32.mrf.mxu1  ;;  %v1117_v18 = vpop.f32.mrf.mxu0 }
 0x141   :  { %v1210_v16 = vadd.f32 %v10459_v14, %v1125_v12  ;;  %v1118_v19 = vadd.f32 %v1117_v18, %v1032_v13 }
 0x142   :  { %v1201_v17 = vpop.f32.mrf.mxu1 }
 0x143   :  { %v1202_v22 = vadd.f32 %v1201_v17, %v1118_v19 }
 0x148   :  { %v10470_v20 = vpop.f32.mrf.mxu0 }
 0x149   :  { %v1299_v21 = vadd.f32 %v10470_v20, %v1210_v16  ;;  %v10481_v25 = vpop.f32.mrf.mxu1 }
 0x14a   :  { %v1292_v26 = vpop.f32.mrf.mxu0 }
 0x14b   :  { %v11724_v8 = vadd.f32 %v10481_v25, %v1299_v21  ;;  %v1293_v23 = vadd.f32 %v1292_v26, %v1202_v22  ;;  %v1373_v58 = vpop.f32.mrf.mxu1 }
 0x14d   :  { %v11726_v28 = vadd.f32 %v1373_v58, %v1293_v23 }
 0x14f   :  { %2837 = vrot.lane.b32.xlu1 %v11726_v28, %s11306_s8  ;;  %v1926_v27 = vsel %vm1921_vm9, %v11726_v28, 0 }
 0x150   :  { %v1959_v29 = vand.u32 4294901760, %v1926_v27 }
 0x152   :  { %10549 = vmatpush3.xpose.msra.mxu0 %v1959_v29  ;;  %v2036_v30 = vsub.f32 %v1926_v27, %v1959_v29 }
 0x153   :  { %2835 = vrot.lane.b32.xlu1 %v11720_v7, %s11306_s8  ;;  %10558 = vmatprep.subr.mxu0 %v11304_v36 }
 0x154   :  { %v2037_v32 = vand.u32 4294901760, %v2036_v30 }
 0x155   :  { %10551 = vmatmul.mubr.f32.vlgmr.msra.gmra.mxu0 %v1998_v31 }
 0x156   :  { %10559 = vmatpush3.xpose.msra.mxu0 %v2036_v30  ;;  %10560 = vmatprep.mubr.msk.f32.mxu0 %vm11305_vm8, %v11304_v36  ;;  %v2038_v33 = vsub.f32 %v2036_v30, %v2037_v32  ;;  %v10503_v38 = vpop.f32.mrf.mxu1 }
 0x157   :  { %10568 = vmatprep.subr.mxu0 %v11304_v36 }
 0x158   :  { %v2039_v34 = vand.u32 4294901760, %v2038_v33  ;;  %v10492_v37 = vpop.f32.mrf.mxu0  ;;  %v1569_v43 = vpop.f32.mrf.mxu1 }
 0x159   :  { %10561 = vmatmul.mubr.f32.vlgmr.msra.gmra.mxu0 %v1995_v5  ;;  %v1479_v39 = vadd.f32 %v10492_v37, %v10012_v35 }
 0x15a   :  { %10554 = vmatpush3.xpose.msra.mxu1 %v2039_v34  ;;  %10569 = vmatpush3.xpose.msra.mxu0 %v2037_v32  ;;  %v1468_v40 = vpop.f32.mrf.mxu0 }
 0x15b   :  { %10570 = vmatprep.mubr.msk.f32.mxu0 %vm11305_vm8, %v11304_v36  ;;  %10563 = vmatprep.subr.mxu1 %v11304_v36  ;;  %v1469_v41 = vadd.f32 %v10012_v35, %v1468_v40  ;;  %v1576_v42 = vadd.f32 %v10503_v38, %v1479_v39 }
 0x15c   :  { %10578 = vmatprep.subr.mxu0 %v11304_v36 }
 0x15d   :  { %10556 = vmatmul.mubr.f32.vlgmr.msra.gmra.mxu1 %v1994_v4  ;;  %10571 = vmatmul.mubr.f32.vlgmr.msra.gmra.mxu0 %v1994_v4  ;;  %v1570_v44 = vadd.f32 %v1569_v43, %v1469_v41 }
 0x15e   :  { %10564 = vmatpush3.xpose.msra.mxu1 %v1959_v29  ;;  %10565 = vmatprep.mubr.msk.f32.mxu1 %vm11305_vm8, %v11304_v36 }
 0x15f   :  { %10573 = vmatprep.subr.mxu1 %v11304_v36  ;;  %10580 = vmatprep.mubr.msk.f32.mxu0 %vm11305_vm8, %v11304_v36 }
 0x160   :  { %v10514_v45 = vpop.f32.mrf.mxu0 }
 0x161   :  { %10566 = vmatmul.mubr.f32.vlgmr.msra.gmra.mxu1 %v1996_v24  ;;  %v1663_v46 = vadd.f32 %v10514_v45, %v1576_v42  ;;  %v10525_v47 = vpop.f32.mrf.mxu1 }
 0x162   :  { %10574 = vmatpush3.xpose.msra.mxu1 %v1959_v29  ;;  %10575 = vmatprep.mubr.msk.f32.mxu1 %vm11305_vm8, %v11304_v36  ;;  %v1655_v48 = vpop.f32.mrf.mxu0 }
 0x163   :  { %10583 = vmatprep.subr.mxu1 %v11304_v36  ;;  %v1656_v49 = vadd.f32 %v1655_v48, %v1570_v44  ;;  %v1748_v50 = vadd.f32 %v10525_v47, %v1663_v46  ;;  %v1739_v51 = vpop.f32.mrf.mxu1 }
 0x165   :  { %10576 = vmatmul.mubr.f32.vlgmr.msra.gmra.mxu1 %v1994_v4  ;;  %v1740_v52 = vadd.f32 %v1739_v51, %v1656_v49 }
 0x166   :  { %10585 = vmatprep.mubr.msk.f32.mxu1 %vm11305_vm8, %v11304_v36 }
 0x168   :  { %v10536_v54 = vpop.f32.mrf.mxu0 }
 0x169   :  { %v1837_v56 = vadd.f32 %v10536_v54, %v1748_v50 }
 0x16a   :  { %v1830_v57 = vpop.f32.mrf.mxu0  ;;  %v10547_v59 = vpop.f32.mrf.mxu1 }
 0x16b   :  { %v1831_v60 = vadd.f32 %v1830_v57, %v1740_v52  ;;  %v11755_v61 = vadd.f32 %v10547_v59, %v1837_v56 }
 0x16c   :  { %v1911_v62 = vpop.f32.mrf.mxu1 }
 0x16d   :  { %v11757_v53 = vadd.f32 %v1911_v62, %v1831_v60 }
 0x16f   :  { %v2420_v0 = vand.u32 4294901760, %v11757_v53 }
 0x171   :  { %10579 = vmatpush3.msra.mxu0 %v2420_v0  ;;  %v11761_v1 = vsub.f32 %v11757_v53, %v2420_v0 }
 0x172   :  { %10588 = vmatprep.subr.mxu0 %v11304_v36 }
 0x173   :  { %v2498_v2 = vand.u32 4294901760, %v11761_v1 }
 0x175   :  { %v2499_v6 = vsub.f32 %v11761_v1, %v2498_v2 }
 0x177   :  { %v2500_v9 = vand.u32 4294901760, %v2499_v6 }
 0x179   :  { %10584 = vmatpush3.msra.mxu1 %v2500_v9 }
 0x17a   :  { %10593 = vmatprep.subr.mxu1 %v11304_v36 }
 0x1c1   :  { %v2838_v30 = vpop.permute.xlu1 %2837 }
 0x1c2   :  { %v2841_v31 = vsel %vm1921_vm9, %v2838_v30, 0 }
 0x1c3   :  { %v2874_v32 = vand.u32 4294901760, %v2841_v31 }
 0x1c5   :  { %v2951_v34 = vsub.f32 %v2841_v31, %v2874_v32  ;;  %v2836_v37 = vpop.permute.xlu1 %2835 }
 0x1c6   :  { %v2839_v41 = vsel %vm1921_vm9, %v2836_v37, 0 }
 0x1c7   :  { %v2952_v40 = vand.u32 4294901760, %v2951_v34  ;;  %v2909_v43 = vand.u32 4294901760, %v2839_v41 }
 0x1c9   :  { %v2953_v45 = vsub.f32 %v2951_v34, %v2952_v40  ;;  %v2910_v47 = vsub.f32 %v2839_v41, %v2909_v43 }
 0x1cb   :  { %v2954_v49 = vand.u32 4294901760, %v2953_v45  ;;  %v2911_v50 = vand.u32 4294901760, %v2910_v47 }
 0x1cd   :  { %v2912_v51 = vsub.f32 %v2910_v47, %v2911_v50 }
 0x1cf   :  { %v2913_v52 = vand.u32 4294901760, %v2912_v51 }
 0x215   :  { %v2000_v11 = vpop.f32.mrf.mxu0 }
 0x217   :  { %v10552_v63 = vpop.f32.mrf.mxu0 }
 0x219   :  { %v2150_v10 = vpop.f32.mrf.mxu0 }
 0x21b   :  { %v10562_v12 = vpop.f32.mrf.mxu0 }
 0x21d   :  { %v2076_v3 = vpop.f32.mrf.mxu1  ;;  %v2298_v14 = vpop.f32.mrf.mxu0 }
 0x21e   :  { %v2077_v16 = vadd.f32 %v2076_v3, %v2000_v11 }
 0x21f   :  { %v10557_v18 = vpop.f32.mrf.mxu1  ;;  %v10572_v4 = vpop.f32.mrf.mxu0 }
 0x220   :  { %v2151_v13 = vadd.f32 %v2150_v10, %v2077_v16 }
 0x221   :  { %v2224_v19 = vpop.f32.mrf.mxu1 }
 0x222   :  { %v2225_v17 = vadd.f32 %v2224_v19, %v2151_v13 }
 0x223   :  { %v10567_v5 = vpop.f32.mrf.mxu1 }
 0x224   :  { %v2299_v20 = vadd.f32 %v2298_v14, %v2225_v17 }
 0x225   :  { %v2370_v22 = vpop.f32.mrf.mxu1 }
 0x226   :  { %v2371_v21 = vadd.f32 %v2370_v22, %v2299_v20 }
 0x227   :  { %v10577_v25 = vpop.f32.mrf.mxu1 }
 0x228   :  { %v2374_v26 = vsel %vm1921_vm9, %v2371_v21, -inf }
 0x229   :  { %2375 = vmax.xlane.f32.xlu0 %v2374_v26 }
 0x2b2   :  { %v2376_v23 = vpop.xlane.xlu0 %2375 }
 0x2b3   :  { %v2377_v24 = vsub.f32 %v2371_v21, %v2376_v23 }
 0x2b5   :  { %v2378_v58 = vmul.f32 1.442695, %v2377_v24 }
 0x2b7   :  { %11113 = vpow2.f32 %v2378_v58 }
 0x2c4   :  { %v11114_v27 = vpop.eup %11113 }
 0x2c5   :  { %v2380_v15 = vsel %vm1921_vm9, %v11114_v27, 0.0 }
 0x2c6   :  { %2381 = vadd.xlane.f32.xlu0 %v2380_v15 }
 0x34f   :  { %v2382_v29 = vpop.xlane.xlu0 %2381 }
 0x350   :  { %11115 = vrcp.f32 %v2382_v29 }
 0x35d   :  { %v11116_v33 = vpop.eup %11115 }
 0x35e   :  { %v11772_v35 = vmul.f32 %v11116_v33, %v11114_v27 }
 0x360   :  { %v2387_v38 = vsel %vm1921_vm9, %v11772_v35, 0 }
 0x361   :  { %v2455_v39 = vand.u32 4294901760, %v2387_v38 }
 0x363   :  { %v2456_v42 = vsub.f32 %v2387_v38, %v2455_v39  ;;  %10586 = vmatmul.mubr.f32.vlgmr.msra.gmra.mxu1 %v2455_v39 }
 0x364   :  { %10594 = vmatpush3.msra.mxu1 %v2420_v0  ;;  %10595 = vmatprep.mubr.msk.f32.mxu1 %vm11305_vm8, %v11304_v36 }
 0x365   :  { %10603 = vmatprep.subr.mxu1 %v11304_v36  ;;  %v2457_v44 = vand.u32 4294901760, %v2456_v42 }
 0x367   :  { %10596 = vmatmul.mubr.f32.vlgmr.msra.gmra.mxu1 %v2457_v44  ;;  %v2458_v46 = vsub.f32 %v2456_v42, %v2457_v44 }
 0x368   :  { %10604 = vmatpush3.msra.mxu1 %v2420_v0  ;;  %10605 = vmatprep.mubr.msk.f32.mxu1 %vm11305_vm8, %v11304_v36 }
 0x369   :  { %10613 = vmatprep.subr.mxu1 %v11304_v36  ;;  %v2459_v48 = vand.u32 4294901760, %v2458_v46 }
 0x36b   :  { %10581 = vmatmul.mubr.f32.vlgmr.msra.gmra.mxu0 %v2459_v48  ;;  %10606 = vmatmul.mubr.f32.vlgmr.msra.gmra.mxu1 %v2455_v39 }
 0x36c   :  { %10589 = vmatpush3.msra.mxu0 %v11761_v1  ;;  %10614 = vmatpush3.xpose.msra.mxu1 %v2954_v49 }
 0x36d   :  { %10590 = vmatprep.mubr.msk.f32.mxu0 %vm11305_vm8, %v11304_v36  ;;  %10598 = vmatprep.subr.mxu0 %v11304_v36 }
 0x36e   :  { %10615 = vmatprep.mubr.msk.f32.mxu1 %vm11305_vm8, %v11304_v36  ;;  %10623 = vmatprep.subr.mxu1 %v11304_v36 }
 0x36f   :  { %10591 = vmatmul.mubr.f32.vlgmr.msra.gmra.mxu0 %v2456_v42  ;;  %10616 = vmatmul.mubr.f32.vlgmr.msra.gmra.mxu1 %v2909_v43 }
 0x370   :  { %10599 = vmatpush3.msra.mxu0 %v2498_v2  ;;  %10624 = vmatpush3.xpose.msra.mxu1 %v2874_v32 }
 0x371   :  { %10600 = vmatprep.mubr.msk.f32.mxu0 %vm11305_vm8, %v11304_v36  ;;  %10608 = vmatprep.subr.mxu0 %v11304_v36 }
 0x372   :  { %10625 = vmatprep.mubr.msk.f32.mxu1 %vm11305_vm8, %v11304_v36  ;;  %10633 = vmatprep.subr.mxu1 %v11304_v36 }
 0x373   :  { %10601 = vmatmul.mubr.f32.vlgmr.msra.gmra.mxu0 %v2455_v39  ;;  %10626 = vmatmul.mubr.f32.vlgmr.msra.gmra.mxu1 %v2911_v50 }
 0x374   :  { %10609 = vmatpush3.xpose.msra.mxu0 %v2874_v32  ;;  %10634 = vmatpush3.xpose.msra.mxu1 %v2874_v32 }
 0x375   :  { %10610 = vmatprep.mubr.msk.f32.mxu0 %vm11305_vm8, %v11304_v36  ;;  %10618 = vmatprep.subr.mxu0 %v11304_v36 }
 0x376   :  { %10635 = vmatprep.mubr.msk.f32.mxu1 %vm11305_vm8, %v11304_v36  ;;  %10643 = vmatprep.subr.mxu1 %v11304_v36 }
 0x377   :  { %10611 = vmatmul.mubr.f32.vlgmr.msra.gmra.mxu0 %v2913_v52  ;;  %10636 = vmatmul.mubr.f32.vlgmr.msra.gmra.mxu1 %v2909_v43 }
 0x378   :  { %10619 = vmatpush3.xpose.msra.mxu0 %v2951_v34  ;;  %10620 = vmatprep.mubr.msk.f32.mxu0 %vm11305_vm8, %v11304_v36 }
 0x379   :  { %10628 = vmatprep.subr.mxu0 %v11304_v36  ;;  %10645 = vmatprep.mubr.msk.f32.mxu1 %vm11305_vm8, %v11304_v36 }
 0x37b   :  { %10621 = vmatmul.mubr.f32.vlgmr.msra.gmra.mxu0 %v2910_v47 }
 0x37c   :  { %10629 = vmatpush3.xpose.msra.mxu0 %v2952_v40  ;;  %10630 = vmatprep.mubr.msk.f32.mxu0 %vm11305_vm8, %v11304_v36 }
 0x37d   :  { %10638 = vmatprep.subr.mxu0 %v11304_v36 }
 0x37f   :  { %10631 = vmatmul.mubr.f32.vlgmr.msra.gmra.mxu0 %v2909_v43 }
 0x380   :  { %10640 = vmatprep.mubr.msk.f32.mxu0 %vm11305_vm8, %v11304_v36 }
 0x423   :  { %v2537_v54 = vpop.f32.mrf.mxu1 }
 0x425   :  { %v10587_v56 = vpop.f32.mrf.mxu1 }
 0x427   :  { %v2685_v57 = vpop.f32.mrf.mxu1 }
 0x429   :  { %v10597_v59 = vpop.f32.mrf.mxu1 }
 0x42b   :  { %v2461_v60 = vpop.f32.mrf.mxu0  ;;  %v2831_v62 = vpop.f32.mrf.mxu1 }
 0x42c   :  { %v2538_v0 = vadd.f32 %v2537_v54, %v2461_v60 }
 0x42d   :  { %v10582_v1 = vpop.f32.mrf.mxu0  ;;  %v10607_v2 = vpop.f32.mrf.mxu1 }
 0x42f   :  { %v2611_v6 = vpop.f32.mrf.mxu0  ;;  %v2991_v9 = vpop.f32.mrf.mxu1 }
 0x430   :  { %v2612_v11 = vadd.f32 %v2611_v6, %v2538_v0 }
 0x431   :  { %v10592_v63 = vpop.f32.mrf.mxu0  ;;  %v10617_v10 = vpop.f32.mrf.mxu1 }
 0x432   :  { %v2686_v12 = vadd.f32 %v2685_v57, %v2612_v11 }
 0x433   :  { %v2759_v3 = vpop.f32.mrf.mxu0  ;;  %v3139_v14 = vpop.f32.mrf.mxu1 }
 0x434   :  { %v2760_v16 = vadd.f32 %v2759_v3, %v2686_v12 }
 0x435   :  { %v10602_v18 = vpop.f32.mrf.mxu0  ;;  %v10627_v4 = vpop.f32.mrf.mxu1 }
 0x436   :  { %v11814_v13 = vadd.f32 %v2831_v62, %v2760_v16 }
 0x437   :  { %v2915_v19 = vpop.f32.mrf.mxu0  ;;  %v3285_v17 = vpop.f32.mrf.mxu1 }
 0x438   :  { %v2992_v22 = vadd.f32 %v2991_v9, %v2915_v19 }
 0x439   :  { %v10612_v5 = vpop.f32.mrf.mxu0  ;;  %v10637_v20 = vpop.f32.mrf.mxu1 }
 0x43b   :  { %v3065_v21 = vpop.f32.mrf.mxu0 }
 0x43c   :  { %v3066_v25 = vadd.f32 %v3065_v21, %v2992_v22 }
 0x43d   :  { %v10622_v26 = vpop.f32.mrf.mxu0 }
 0x43e   :  { %v3140_v23 = vadd.f32 %v3139_v14, %v3066_v25 }
 0x43f   :  { %v3213_v24 = vpop.f32.mrf.mxu0 }
 0x440   :  { %v3214_v58 = vadd.f32 %v3213_v24, %v3140_v23 }
 0x441   :  { %v10632_v27 = vpop.f32.mrf.mxu0 }
 0x442   :  { %v3286_v15 = vadd.f32 %v3285_v17, %v3214_v58 }
 0x444   :  { %v3289_v29 = vsel %vm1921_vm9, %v3286_v15, -inf }
 0x445   :  { %3290 = vmax.xlane.f32.xlu0 %v3289_v29 }
 0x45b   :  { %3302 = vrot.lane.b32.xlu0 %v11757_v53, %s11306_s8 }
 0x45f   :  { %3756 = vrot.lane.b32.xlu0 %v11726_v28, %s11307_s11 }
 0x463   :  { %3754 = vrot.lane.b32.xlu0 %v11720_v7, %s11307_s11 }
 0x4ce   :  { %v3291_v30 = vpop.xlane.xlu0 %3290 }
 0x4cf   :  { %v3292_v31 = vsub.f32 %v3286_v15, %v3291_v30 }
 0x4d1   :  { %v3293_v32 = vmul.f32 1.442695, %v3292_v31 }
 0x4d2   :  { %v3303_v33 = vpop.permute.xlu0 %3302 }
 0x4d3   :  { %11117 = vpow2.f32 %v3293_v32  ;;  %v3339_v34 = vand.u32 4294901760, %v3303_v33 }
 0x4d5   :  { %v3416_v37 = vsub.f32 %v3303_v33, %v3339_v34  ;;  %10639 = vmatpush3.msra.mxu0 %v3339_v34 }
 0x4d6   :  { %10648 = vmatprep.subr.mxu0 %v11304_v36  ;;  %v3757_v44 = vpop.permute.xlu0 %3756 }
 0x4d7   :  { %v3417_v38 = vand.u32 4294901760, %v3416_v37  ;;  %v3760_v45 = vsel %vm1921_vm9, %v3757_v44, 0 }
 0x4d8   :  { %v3793_v46 = vand.u32 4294901760, %v3760_v45 }
 0x4d9   :  { %v3418_v39 = vsub.f32 %v3416_v37, %v3417_v38 }
 0x4da   :  { %v11829_v48 = vsub.f32 %v3760_v45, %v3793_v46  ;;  %v3755_v50 = vpop.permute.xlu0 %3754 }
 0x4db   :  { %v3419_v40 = vand.u32 4294901760, %v3418_v39  ;;  %v3758_v56 = vsel %vm1921_vm9, %v3755_v50, 0 }
 0x4dc   :  { %v3871_v54 = vand.u32 4294901760, %v11829_v48  ;;  %v3828_v60 = vand.u32 4294901760, %v3758_v56 }
 0x4dd   :  { %10644 = vmatpush3.msra.mxu1 %v3419_v40 }
 0x4de   :  { %10653 = vmatprep.subr.mxu1 %v11304_v36  ;;  %v3872_v0 = vsub.f32 %v11829_v48, %v3871_v54  ;;  %v3829_v6 = vsub.f32 %v3758_v56, %v3828_v60 }
 0x4e0   :  { %v11118_v41 = vpop.eup %11117  ;;  %v3873_v11 = vand.u32 4294901760, %v3872_v0  ;;  %v3830_v10 = vand.u32 4294901760, %v3829_v6 }
 0x4e1   :  { %v3295_v42 = vsel %vm1921_vm9, %v11118_v41, 0.0 }
 0x4e2   :  { %3296 = vadd.xlane.f32.xlu1 %v3295_v42  ;;  %v3831_v3 = vsub.f32 %v3829_v6, %v3830_v10 }
 0x4e4   :  { %v3832_v16 = vand.u32 4294901760, %v3831_v3 }
 0x4f3   :  { %4220 = vrot.lane.b32.xlu1 %v11757_v53, %s11307_s11 }
 0x56b   :  { %v3297_v43 = vpop.xlane.xlu1 %3296 }
 0x56c   :  { %11119 = vrcp.f32 %v3297_v43 }
 0x56f   :  { %v4221_v57 = vpop.permute.xlu1 %4220 }
 0x570   :  { %v11841_v1 = vand.u32 4294901760, %v4221_v57 }
 0x572   :  { %v11847_v63 = vsub.f32 %v4221_v57, %v11841_v1 }
 0x574   :  { %v4335_v12 = vand.u32 4294901760, %v11847_v63 }
 0x576   :  { %v4336_v14 = vsub.f32 %v11847_v63, %v4335_v12 }
 0x578   :  { %v4337_v18 = vand.u32 4294901760, %v4336_v14 }
 0x579   :  { %v11120_v47 = vpop.eup %11119 }
 0x57a   :  { %v11831_v49 = vmul.f32 %v11120_v47, %v11118_v41 }
 0x57c   :  { %v3306_v51 = vsel %vm1921_vm9, %v11831_v49, 0  ;;  %v3300_v3 = vadd.f32 %v11831_v49, %v11772_v35 }
 0x57d   :  { %v3374_v52 = vand.u32 4294901760, %v3306_v51 }
 0x57f   :  { %v3375_v59 = vsub.f32 %v3306_v51, %v3374_v52  ;;  %10646 = vmatmul.mubr.f32.vlgmr.msra.gmra.mxu1 %v3374_v52 }
 0x580   :  { %10654 = vmatpush3.msra.mxu1 %v3339_v34  ;;  %10655 = vmatprep.mubr.msk.f32.mxu1 %vm11305_vm8, %v11304_v36 }
 0x581   :  { %10663 = vmatprep.subr.mxu1 %v11304_v36  ;;  %v3376_v62 = vand.u32 4294901760, %v3375_v59 }
 0x583   :  { %10656 = vmatmul.mubr.f32.vlgmr.msra.gmra.mxu1 %v3376_v62  ;;  %v3377_v2 = vsub.f32 %v3375_v59, %v3376_v62 }
 0x584   :  { %10664 = vmatpush3.msra.mxu1 %v3339_v34  ;;  %10665 = vmatprep.mubr.msk.f32.mxu1 %vm11305_vm8, %v11304_v36 }
 0x585   :  { %10673 = vmatprep.subr.mxu1 %v11304_v36  ;;  %v3378_v9 = vand.u32 4294901760, %v3377_v2 }
 0x587   :  { %10641 = vmatmul.mubr.f32.vlgmr.msra.gmra.mxu0 %v3378_v9  ;;  %10666 = vmatmul.mubr.f32.vlgmr.msra.gmra.mxu1 %v3374_v52 }
 0x588   :  { %10649 = vmatpush3.msra.mxu0 %v3416_v37  ;;  %10674 = vmatpush3.xpose.msra.mxu1 %v3873_v11 }
 0x589   :  { %10650 = vmatprep.mubr.msk.f32.mxu0 %vm11305_vm8, %v11304_v36  ;;  %10658 = vmatprep.subr.mxu0 %v11304_v36 }
 0x58a   :  { %10675 = vmatprep.mubr.msk.f32.mxu1 %vm11305_vm8, %v11304_v36  ;;  %10683 = vmatprep.subr.mxu1 %v11304_v36 }
 0x58b   :  { %10651 = vmatmul.mubr.f32.vlgmr.msra.gmra.mxu0 %v3375_v59  ;;  %10676 = vmatmul.mubr.f32.vlgmr.msra.gmra.mxu1 %v3828_v60 }
 0x58c   :  { %10659 = vmatpush3.msra.mxu0 %v3417_v38  ;;  %10684 = vmatpush3.xpose.msra.mxu1 %v3793_v46 }
 0x58d   :  { %10660 = vmatprep.mubr.msk.f32.mxu0 %vm11305_vm8, %v11304_v36  ;;  %10668 = vmatprep.subr.mxu0 %v11304_v36 }
 0x58e   :  { %10685 = vmatprep.mubr.msk.f32.mxu1 %vm11305_vm8, %v11304_v36  ;;  %10693 = vmatprep.subr.mxu1 %v11304_v36 }
 0x58f   :  { %10661 = vmatmul.mubr.f32.vlgmr.msra.gmra.mxu0 %v3374_v52  ;;  %10686 = vmatmul.mubr.f32.vlgmr.msra.gmra.mxu1 %v3830_v10 }
 0x590   :  { %10669 = vmatpush3.xpose.msra.mxu0 %v3793_v46  ;;  %10694 = vmatpush3.xpose.msra.mxu1 %v3793_v46 }
 0x591   :  { %10670 = vmatprep.mubr.msk.f32.mxu0 %vm11305_vm8, %v11304_v36  ;;  %10678 = vmatprep.subr.mxu0 %v11304_v36 }
 0x592   :  { %10695 = vmatprep.mubr.msk.f32.mxu1 %vm11305_vm8, %v11304_v36  ;;  %10703 = vmatprep.subr.mxu1 %v11304_v36 }
 0x593   :  { %10671 = vmatmul.mubr.f32.vlgmr.msra.gmra.mxu0 %v3832_v16  ;;  %10696 = vmatmul.mubr.f32.vlgmr.msra.gmra.mxu1 %v3828_v60 }
 0x594   :  { %10679 = vmatpush3.xpose.msra.mxu0 %v11829_v48  ;;  %10704 = vmatpush3.msra.mxu1 %v4337_v18 }
 0x595   :  { %10680 = vmatprep.mubr.msk.f32.mxu0 %vm11305_vm8, %v11304_v36  ;;  %10688 = vmatprep.subr.mxu0 %v11304_v36 }
 0x596   :  { %10705 = vmatprep.mubr.msk.f32.mxu1 %vm11305_vm8, %v11304_v36  ;;  %10713 = vmatprep.subr.mxu1 %v11304_v36 }
 0x597   :  { %10681 = vmatmul.mubr.f32.vlgmr.msra.gmra.mxu0 %v3829_v6 }
 0x598   :  { %10689 = vmatpush3.xpose.msra.mxu0 %v3871_v54  ;;  %10690 = vmatprep.mubr.msk.f32.mxu0 %vm11305_vm8, %v11304_v36 }
 0x599   :  { %10698 = vmatprep.subr.mxu0 %v11304_v36 }
 0x59b   :  { %10691 = vmatmul.mubr.f32.vlgmr.msra.gmra.mxu0 %v3828_v60 }
 0x59c   :  { %10699 = vmatpush3.msra.mxu0 %v11841_v1  ;;  %10700 = vmatprep.mubr.msk.f32.mxu0 %vm11305_vm8, %v11304_v36 }
 0x59d   :  { %10708 = vmatprep.subr.mxu0 %v11304_v36 }
 0x63f   :  { %v3456_v4 = vpop.f32.mrf.mxu1 }
 0x641   :  { %v10647_v19 = vpop.f32.mrf.mxu1 }
 0x643   :  { %v3604_v17 = vpop.f32.mrf.mxu1 }
 0x645   :  { %v10657_v5 = vpop.f32.mrf.mxu1 }
 0x647   :  { %v3380_v20 = vpop.f32.mrf.mxu0  ;;  %v3750_v22 = vpop.f32.mrf.mxu1 }
 0x648   :  { %v3457_v21 = vadd.f32 %v3456_v4, %v3380_v20 }
 0x649   :  { %v10642_v25 = vpop.f32.mrf.mxu0  ;;  %v10667_v26 = vpop.f32.mrf.mxu1 }
 0x64b   :  { %v3530_v23 = vpop.f32.mrf.mxu0  ;;  %v3910_v24 = vpop.f32.mrf.mxu1 }
 0x64c   :  { %v3531_v58 = vadd.f32 %v3530_v23, %v3457_v21 }
 0x64d   :  { %v10652_v27 = vpop.f32.mrf.mxu0  ;;  %v10677_v15 = vpop.f32.mrf.mxu1 }
 0x64e   :  { %v3605_v29 = vadd.f32 %v3604_v17, %v3531_v58 }
 0x64f   :  { %v3678_v30 = vpop.f32.mrf.mxu0  ;;  %v4058_v31 = vpop.f32.mrf.mxu1 }
 0x650   :  { %v3679_v32 = vadd.f32 %v3678_v30, %v3605_v29 }
 0x651   :  { %v10662_v33 = vpop.f32.mrf.mxu0  ;;  %v10687_v34 = vpop.f32.mrf.mxu1 }
 0x652   :  { %v11885_v37 = vadd.f32 %v3750_v22, %v3679_v32 }
 0x653   :  { %v3834_v38 = vpop.f32.mrf.mxu0  ;;  %v4204_v39 = vpop.f32.mrf.mxu1 }
 0x654   :  { %v3911_v42 = vadd.f32 %v3910_v24, %v3834_v38 }
 0x655   :  { %v10672_v40 = vpop.f32.mrf.mxu0  ;;  %v10697_v41 = vpop.f32.mrf.mxu1 }
 0x657   :  { %v3984_v43 = vpop.f32.mrf.mxu0 }
 0x658   :  { %v3985_v44 = vadd.f32 %v3984_v43, %v3911_v42 }
 0x659   :  { %v10682_v45 = vpop.f32.mrf.mxu0 }
 0x65a   :  { %v4059_v46 = vadd.f32 %v4058_v31, %v3985_v44 }
 0x65b   :  { %v4132_v47 = vpop.f32.mrf.mxu0 }
 0x65c   :  { %v4133_v48 = vadd.f32 %v4132_v47, %v4059_v46 }
 0x65d   :  { %v10692_v50 = vpop.f32.mrf.mxu0 }
 0x65e   :  { %v4205_v51 = vadd.f32 %v4204_v39, %v4133_v48 }
 0x660   :  { %v4208_v52 = vsel %vm1921_vm9, %v4205_v51, -inf }
 0x661   :  { %4209 = vmax.xlane.f32.xlu0 %v4208_v52 }
 0x6ea   :  { %v4210_v54 = vpop.xlane.xlu0 %4209 }
 0x6eb   :  { %v4211_v56 = vsub.f32 %v4205_v51, %v4210_v54 }
 0x6ed   :  { %v4212_v57 = vmul.f32 1.442695, %v4211_v56 }
 0x6ef   :  { %11121 = vpow2.f32 %v4212_v57 }
 0x6fc   :  { %v11122_v59 = vpop.eup %11121 }
 0x6fd   :  { %v4214_v60 = vsel %vm1921_vm9, %v11122_v59, 0.0 }
 0x6fe   :  { %4215 = vadd.xlane.f32.xlu1 %v4214_v60 }
 0x70f   :  { %4674 = vrot.lane.b32.xlu1 %v11726_v28, %s11308_s12 }
 0x713   :  { %4672 = vrot.lane.b32.xlu1 %v11720_v7, %s11308_s12 }
 0x787   :  { %v4216_v62 = vpop.xlane.xlu1 %4215 }
 0x788   :  { %11123 = vrcp.f32 %v4216_v62 }
 0x78b   :  { %v4675_v0 = vpop.permute.xlu1 %4674 }
 0x78c   :  { %v4678_v2 = vsel %vm1921_vm9, %v4675_v0, 0 }
 0x78d   :  { %v4711_v6 = vand.u32 4294901760, %v4678_v2 }
 0x78f   :  { %v4788_v11 = vsub.f32 %v4678_v2, %v4711_v6  ;;  %v4673_v14 = vpop.permute.xlu1 %4672 }
 0x790   :  { %v4676_v7 = vsel %vm1921_vm9, %v4673_v14, 0 }
 0x791   :  { %v4789_v4 = vand.u32 4294901760, %v4788_v11  ;;  %v4746_v17 = vand.u32 4294901760, %v4676_v7 }
 0x793   :  { %v4790_v49 = vsub.f32 %v4788_v11, %v4789_v4  ;;  %v4747_v20 = vsub.f32 %v4676_v7, %v4746_v17 }
 0x795   :  { %v11124_v9 = vpop.eup %11123  ;;  %v4791_v21 = vand.u32 4294901760, %v4790_v49  ;;  %v4748_v25 = vand.u32 4294901760, %v4747_v20 }
 0x796   :  { %v4218_v10 = vmul.f32 %v11124_v9, %v11122_v59 }
 0x798   :  { %v4224_v16 = vsel %vm1921_vm9, %v4218_v10, 0  ;;  %v11897_v18 = vadd.f32 %v4218_v10, %v3300_v3 }
 0x799   :  { %v4292_v28 = vand.u32 4294901760, %v4224_v16 }
 0x79b   :  { %v4293_v19 = vsub.f32 %v4224_v16, %v4292_v28  ;;  %10706 = vmatmul.mubr.f32.vlgmr.msra.gmra.mxu1 %v4292_v28 }
 0x79c   :  { %10714 = vmatpush3.msra.mxu1 %v11841_v1  ;;  %10715 = vmatprep.mubr.msk.f32.mxu1 %vm11305_vm8, %v11304_v36 }
 0x79d   :  { %10723 = vmatprep.subr.mxu1 %v11304_v36  ;;  %v4294_v35 = vand.u32 4294901760, %v4293_v19 }
 0x79f   :  { %10716 = vmatmul.mubr.f32.vlgmr.msra.gmra.mxu1 %v4294_v35  ;;  %v4295_v5 = vsub.f32 %v4293_v19, %v4294_v35 }
 0x7a0   :  { %10724 = vmatpush3.msra.mxu1 %v11841_v1  ;;  %10725 = vmatprep.mubr.msk.f32.mxu1 %vm11305_vm8, %v11304_v36  ;;  %v4749_v1 = vsub.f32 %v4747_v20, %v4748_v25 }
 0x7a1   :  { %10733 = vmatprep.subr.mxu1 %v11304_v36  ;;  %v4296_v22 = vand.u32 4294901760, %v4295_v5 }
 0x7a2   :  { %v4750_v26 = vand.u32 4294901760, %v4749_v1 }
 0x7a3   :  { %10701 = vmatmul.mubr.f32.vlgmr.msra.gmra.mxu0 %v4296_v22  ;;  %10726 = vmatmul.mubr.f32.vlgmr.msra.gmra.mxu1 %v4292_v28 }
 0x7a4   :  { %10709 = vmatpush3.msra.mxu0 %v11847_v63  ;;  %10734 = vmatpush3.xpose.msra.mxu1 %v4791_v21 }
 0x7a5   :  { %10710 = vmatprep.mubr.msk.f32.mxu0 %vm11305_vm8, %v11304_v36  ;;  %10718 = vmatprep.subr.mxu0 %v11304_v36 }
 0x7a6   :  { %10735 = vmatprep.mubr.msk.f32.mxu1 %vm11305_vm8, %v11304_v36  ;;  %10743 = vmatprep.subr.mxu1 %v11304_v36 }
 0x7a7   :  { %10711 = vmatmul.mubr.f32.vlgmr.msra.gmra.mxu0 %v4293_v19  ;;  %10736 = vmatmul.mubr.f32.vlgmr.msra.gmra.mxu1 %v4746_v17 }
 0x7a8   :  { %10719 = vmatpush3.msra.mxu0 %v4335_v12  ;;  %10744 = vmatpush3.xpose.msra.mxu1 %v4711_v6 }
 0x7a9   :  { %10720 = vmatprep.mubr.msk.f32.mxu0 %vm11305_vm8, %v11304_v36  ;;  %10728 = vmatprep.subr.mxu0 %v11304_v36 }
 0x7aa   :  { %10745 = vmatprep.mubr.msk.f32.mxu1 %vm11305_vm8, %v11304_v36  ;;  %10753 = vmatprep.subr.mxu1 %v11304_v36 }
 0x7ab   :  { %10721 = vmatmul.mubr.f32.vlgmr.msra.gmra.mxu0 %v4292_v28  ;;  %10746 = vmatmul.mubr.f32.vlgmr.msra.gmra.mxu1 %v4748_v25 }
 0x7ac   :  { %10729 = vmatpush3.xpose.msra.mxu0 %v4711_v6  ;;  %10754 = vmatpush3.xpose.msra.mxu1 %v4711_v6 }
 0x7ad   :  { %10730 = vmatprep.mubr.msk.f32.mxu0 %vm11305_vm8, %v11304_v36  ;;  %10738 = vmatprep.subr.mxu0 %v11304_v36 }
 0x7ae   :  { %10755 = vmatprep.mubr.msk.f32.mxu1 %vm11305_vm8, %v11304_v36  ;;  %10763 = vmatprep.subr.mxu1 %v11304_v36 }
 0x7af   :  { %10731 = vmatmul.mubr.f32.vlgmr.msra.gmra.mxu0 %v4750_v26  ;;  %10756 = vmatmul.mubr.f32.vlgmr.msra.gmra.mxu1 %v4746_v17  ;;  %v5610_v26 = vsel %vm1921_vm9, %v11715_v55, 0 }
 0x7b0   :  { %10739 = vmatpush3.xpose.msra.mxu0 %v4788_v11  ;;  %10740 = vmatprep.mubr.msk.f32.mxu0 %vm11305_vm8, %v11304_v36 }
 0x7b1   :  { %10748 = vmatprep.subr.mxu0 %v11304_v36  ;;  %10765 = vmatprep.mubr.msk.f32.mxu1 %vm11305_vm8, %v11304_v36 }
 0x7b3   :  { %10741 = vmatmul.mubr.f32.vlgmr.msra.gmra.mxu0 %v4747_v20 }
 0x7b4   :  { %10749 = vmatpush3.xpose.msra.mxu0 %v4789_v4  ;;  %10750 = vmatprep.mubr.msk.f32.mxu0 %vm11305_vm8, %v11304_v36 }
 0x7b5   :  { %10758 = vmatprep.subr.mxu0 %v11304_v36 }
 0x7b7   :  { %10751 = vmatmul.mubr.f32.vlgmr.msra.gmra.mxu0 %v4746_v17  ;;  %v5613_v17 = vsel %vm1921_vm9, %v11724_v8, 0 }
 0x7b8   :  { %10760 = vmatprep.mubr.msk.f32.mxu0 %vm11305_vm8, %v11304_v36  ;;  %v5646_v35 = vand.u32 4294901760, %v5613_v17 }
 0x7ba   :  { %v11949_v5 = vsub.f32 %v5613_v17, %v5646_v35 }
 0x7bc   :  { %v5724_v1 = vand.u32 4294901760, %v11949_v5 }
 0x85b   :  { %v4374_v63 = vpop.f32.mrf.mxu1 }
 0x85d   :  { %v10707_v12 = vpop.f32.mrf.mxu1 }
 0x85f   :  { %v4522_v23 = vpop.f32.mrf.mxu1 }
 0x861   :  { %v10717_v24 = vpop.f32.mrf.mxu1 }
 0x862   :  { %v5681_v24 = vand.u32 4294901760, %v5610_v26 }
 0x863   :  { %v4298_v58 = vpop.f32.mrf.mxu0  ;;  %v4668_v27 = vpop.f32.mrf.mxu1 }
 0x864   :  { %v4375_v15 = vadd.f32 %v4374_v63, %v4298_v58  ;;  %v5725_v58 = vsub.f32 %v11949_v5, %v5724_v1 }
 0x865   :  { %v10702_v29 = vpop.f32.mrf.mxu0  ;;  %v10727_v30 = vpop.f32.mrf.mxu1 }
 0x866   :  { %v5682_v29 = vsub.f32 %v5610_v26, %v5681_v24  ;;  %v5726_v30 = vand.u32 4294901760, %v5725_v58 }
 0x867   :  { %v4448_v31 = vpop.f32.mrf.mxu0  ;;  %v4828_v32 = vpop.f32.mrf.mxu1 }
 0x868   :  { %v4449_v33 = vadd.f32 %v4448_v31, %v4375_v15 }
 0x869   :  { %v10712_v34 = vpop.f32.mrf.mxu0  ;;  %v10737_v38 = vpop.f32.mrf.mxu1 }
 0x86a   :  { %v4523_v39 = vadd.f32 %v4522_v23, %v4449_v33 }
 0x86b   :  { %v4596_v40 = vpop.f32.mrf.mxu0  ;;  %v4976_v41 = vpop.f32.mrf.mxu1 }
 0x86c   :  { %v4597_v42 = vadd.f32 %v4596_v40, %v4523_v39 }
 0x86d   :  { %v10722_v43 = vpop.f32.mrf.mxu0  ;;  %v10747_v44 = vpop.f32.mrf.mxu1 }
 0x86e   :  { %v11939_v45 = vadd.f32 %v4668_v27, %v4597_v42 }
 0x86f   :  { %v4752_v46 = vpop.f32.mrf.mxu0  ;;  %v5122_v47 = vpop.f32.mrf.mxu1 }
 0x870   :  { %v4829_v51 = vadd.f32 %v4828_v32, %v4752_v46  ;;  %v5683_v32 = vand.u32 4294901760, %v5682_v29 }
 0x871   :  { %v10732_v48 = vpop.f32.mrf.mxu0  ;;  %v10757_v50 = vpop.f32.mrf.mxu1 }
 0x872   :  { %v5684_v34 = vsub.f32 %v5682_v29, %v5683_v32 }
 0x873   :  { %v4902_v52 = vpop.f32.mrf.mxu0 }
 0x874   :  { %v4903_v54 = vadd.f32 %v4902_v52, %v4829_v51  ;;  %v5685_v39 = vand.u32 4294901760, %v5684_v34 }
 0x875   :  { %v10742_v56 = vpop.f32.mrf.mxu0 }
 0x876   :  { %v4977_v57 = vadd.f32 %v4976_v41, %v4903_v54 }
 0x877   :  { %v5050_v59 = vpop.f32.mrf.mxu0 }
 0x878   :  { %v5051_v60 = vadd.f32 %v5050_v59, %v4977_v57 }
 0x879   :  { %v10752_v62 = vpop.f32.mrf.mxu0 }
 0x87a   :  { %v5123_v0 = vadd.f32 %v5122_v47, %v5051_v60 }
 0x87c   :  { %v5126_v2 = vsel %vm1921_vm9, %v5123_v0, -inf }
 0x87d   :  { %5127 = vmax.xlane.f32.xlu0 %v5126_v2 }
 0x893   :  { %5138 = vrot.lane.b32.xlu0 %v11757_v53, %s11308_s12 }
 0x906   :  { %v5128_v6 = vpop.xlane.xlu0 %5127 }
 0x907   :  { %v5129_v9 = vsub.f32 %v5123_v0, %v5128_v6 }
 0x909   :  { %v5130_v11 = vmul.f32 1.442695, %v5129_v9 }
 0x90a   :  { %v5139_v10 = vpop.permute.xlu0 %5138 }
 0x90b   :  { %11125 = vpow2.f32 %v5130_v11  ;;  %v5175_v3 = vand.u32 4294901760, %v5139_v10 }
 0x90d   :  { %v5252_v14 = vsub.f32 %v5139_v10, %v5175_v3  ;;  %10759 = vmatpush3.msra.mxu0 %v5175_v3 }
 0x90e   :  { %10768 = vmatprep.subr.mxu0 %v11304_v36 }
 0x90f   :  { %v5253_v16 = vand.u32 4294901760, %v5252_v14 }
 0x911   :  { %v5254_v28 = vsub.f32 %v5252_v14, %v5253_v16 }
 0x913   :  { %v5255_v4 = vand.u32 4294901760, %v5254_v28 }
 0x915   :  { %10764 = vmatpush3.msra.mxu1 %v5255_v4 }
 0x916   :  { %10773 = vmatprep.subr.mxu1 %v11304_v36 }
 0x918   :  { %v11126_v7 = vpop.eup %11125 }
 0x919   :  { %v5132_v19 = vsel %vm1921_vm9, %v11126_v7, 0.0 }
 0x91a   :  { %5133 = vadd.xlane.f32.xlu1 %v5132_v19 }
 0x9a3   :  { %v5134_v53 = vpop.xlane.xlu1 %5133 }
 0x9a4   :  { %11127 = vrcp.f32 %v5134_v53 }
 0x9b1   :  { %v11128_v49 = vpop.eup %11127 }
 0x9b2   :  { %v5136_v20 = vmul.f32 %v11128_v49, %v11126_v7 }
 0x9b4   :  { %v5142_v22 = vsel %vm1921_vm9, %v5136_v20, 0  ;;  %v5137_v21 = vadd.f32 %v5136_v20, %v11897_v18  ;;  %v11961_v18 = vand.u32 4294901760, %v11755_v61 }
 0x9b5   :  { %v5210_v25 = vand.u32 4294901760, %v5142_v22 }
 0x9b6   :  { %v5590_v63 = vmul.f32 0.25, %v5137_v21  ;;  %v11969_v31 = vsub.f32 %v11755_v61, %v11961_v18 }
 0x9b7   :  { %v5211_v12 = vsub.f32 %v5142_v22, %v5210_v25  ;;  %10766 = vmatmul.mubr.f32.vlgmr.msra.gmra.mxu1 %v5210_v25 }
 0x9b8   :  { %10774 = vmatpush3.msra.mxu1 %v5175_v3  ;;  %10775 = vmatprep.mubr.msk.f32.mxu1 %vm11305_vm8, %v11304_v36  ;;  %5591 = vst.msk [vmem:[#allocation12] sm:$0xff] %vm1921_vm9, %v5590_v63  ;;  %v6185_v33 = vand.u32 4294901760, %v11969_v31 }
 0x9b9   :  { %10783 = vmatprep.subr.mxu1 %v11304_v36  ;;  %v5212_v23 = vand.u32 4294901760, %v5211_v12 }
 0x9ba   :  { %v6186_v38 = vsub.f32 %v11969_v31, %v6185_v33 }
 0x9bb   :  { %10776 = vmatmul.mubr.f32.vlgmr.msra.gmra.mxu1 %v5212_v23  ;;  %v5213_v27 = vsub.f32 %v5211_v12, %v5212_v23 }
 0x9bc   :  { %10784 = vmatpush3.msra.mxu1 %v5175_v3  ;;  %10785 = vmatprep.mubr.msk.f32.mxu1 %vm11305_vm8, %v11304_v36  ;;  %v6187_v40 = vand.u32 4294901760, %v6186_v38 }
 0x9bd   :  { %10793 = vmatprep.subr.mxu1 %v11304_v36  ;;  %v5214_v15 = vand.u32 4294901760, %v5213_v27 }
 0x9bf   :  { %10761 = vmatmul.mubr.f32.vlgmr.msra.gmra.mxu0 %v5214_v15  ;;  %10786 = vmatmul.mubr.f32.vlgmr.msra.gmra.mxu1 %v5210_v25 }
 0x9c0   :  { %10769 = vmatpush3.msra.mxu0 %v5252_v14  ;;  %10794 = vmatpush3.xpose.msra.mxu1 %v5726_v30 }
 0x9c1   :  { %10770 = vmatprep.mubr.msk.f32.mxu0 %vm11305_vm8, %v11304_v36  ;;  %10778 = vmatprep.subr.mxu0 %v11304_v36 }
 0x9c2   :  { %10795 = vmatprep.mubr.msk.f32.mxu1 %vm11305_vm8, %v11304_v36  ;;  %10803 = vmatprep.subr.mxu1 %v11304_v36 }
 0x9c3   :  { %10771 = vmatmul.mubr.f32.vlgmr.msra.gmra.mxu0 %v5211_v12  ;;  %10796 = vmatmul.mubr.f32.vlgmr.msra.gmra.mxu1 %v5681_v24 }
 0x9c4   :  { %10779 = vmatpush3.msra.mxu0 %v5253_v16  ;;  %10804 = vmatpush3.xpose.msra.mxu1 %v5646_v35 }
 0x9c5   :  { %10780 = vmatprep.mubr.msk.f32.mxu0 %vm11305_vm8, %v11304_v36  ;;  %10788 = vmatprep.subr.mxu0 %v11304_v36 }
 0x9c6   :  { %10805 = vmatprep.mubr.msk.f32.mxu1 %vm11305_vm8, %v11304_v36  ;;  %10813 = vmatprep.subr.mxu1 %v11304_v36 }
 0x9c7   :  { %10781 = vmatmul.mubr.f32.vlgmr.msra.gmra.mxu0 %v5210_v25  ;;  %10806 = vmatmul.mubr.f32.vlgmr.msra.gmra.mxu1 %v5683_v32 }
 0x9c8   :  { %10789 = vmatpush3.xpose.msra.mxu0 %v5646_v35  ;;  %10814 = vmatpush3.xpose.msra.mxu1 %v5646_v35 }
 0x9c9   :  { %10790 = vmatprep.mubr.msk.f32.mxu0 %vm11305_vm8, %v11304_v36  ;;  %10798 = vmatprep.subr.mxu0 %v11304_v36 }
 0x9ca   :  { %10815 = vmatprep.mubr.msk.f32.mxu1 %vm11305_vm8, %v11304_v36  ;;  %10823 = vmatprep.subr.mxu1 %v11304_v36 }
 0x9cb   :  { %10791 = vmatmul.mubr.f32.vlgmr.msra.gmra.mxu0 %v5685_v39  ;;  %10816 = vmatmul.mubr.f32.vlgmr.msra.gmra.mxu1 %v5681_v24 }
 0x9cc   :  { %10799 = vmatpush3.xpose.msra.mxu0 %v11949_v5  ;;  %10824 = vmatpush3.msra.mxu1 %v6187_v40 }
 0x9cd   :  { %10800 = vmatprep.mubr.msk.f32.mxu0 %vm11305_vm8, %v11304_v36  ;;  %10808 = vmatprep.subr.mxu0 %v11304_v36 }
 0x9ce   :  { %10825 = vmatprep.mubr.msk.f32.mxu1 %vm11305_vm8, %v11304_v36  ;;  %10833 = vmatprep.subr.mxu1 %v11304_v36 }
 0x9cf   :  { %10801 = vmatmul.mubr.f32.vlgmr.msra.gmra.mxu0 %v5682_v29 }
 0x9d0   :  { %10809 = vmatpush3.xpose.msra.mxu0 %v5724_v1  ;;  %10810 = vmatprep.mubr.msk.f32.mxu0 %vm11305_vm8, %v11304_v36 }
 0x9d1   :  { %10818 = vmatprep.subr.mxu0 %v11304_v36 }
 0x9d3   :  { %10811 = vmatmul.mubr.f32.vlgmr.msra.gmra.mxu0 %v5681_v24 }
 0x9d4   :  { %10819 = vmatpush3.msra.mxu0 %v11961_v18  ;;  %10820 = vmatprep.mubr.msk.f32.mxu0 %vm11305_vm8, %v11304_v36 }
 0x9d5   :  { %10828 = vmatprep.subr.mxu0 %v11304_v36 }
 0xa77   :  { %v5292_v41 = vpop.f32.mrf.mxu1 }
 0xa79   :  { %v10767_v42 = vpop.f32.mrf.mxu1 }
 0xa7b   :  { %v5440_v43 = vpop.f32.mrf.mxu1 }
 0xa7d   :  { %v10777_v44 = vpop.f32.mrf.mxu1 }
 0xa7f   :  { %v5216_v46 = vpop.f32.mrf.mxu0  ;;  %v5586_v47 = vpop.f32.mrf.mxu1 }
 0xa80   :  { %v5293_v48 = vadd.f32 %v5292_v41, %v5216_v46 }
 0xa81   :  { %v10762_v50 = vpop.f32.mrf.mxu0  ;;  %v10787_v51 = vpop.f32.mrf.mxu1 }
 0xa83   :  { %v5366_v52 = vpop.f32.mrf.mxu0  ;;  %v5763_v54 = vpop.f32.mrf.mxu1 }
 0xa84   :  { %v5367_v56 = vadd.f32 %v5366_v52, %v5293_v48 }
 0xa85   :  { %v10772_v57 = vpop.f32.mrf.mxu0  ;;  %v10797_v59 = vpop.f32.mrf.mxu1 }
 0xa86   :  { %v5441_v60 = vadd.f32 %v5440_v43, %v5367_v56 }
 0xa87   :  { %v5514_v62 = vpop.f32.mrf.mxu0  ;;  %v5911_v0 = vpop.f32.mrf.mxu1 }
 0xa88   :  { %v5515_v2 = vadd.f32 %v5514_v62, %v5441_v60 }
 0xa89   :  { %v10782_v6 = vpop.f32.mrf.mxu0  ;;  %v10807_v9 = vpop.f32.mrf.mxu1 }
 0xa8a   :  { %v12007_v11 = vadd.f32 %v5586_v47, %v5515_v2 }
 0xa8b   :  { %v5687_v10 = vpop.f32.mrf.mxu0  ;;  %v6057_v3 = vpop.f32.mrf.mxu1 }
 0xa8c   :  { %v5764_v28 = vadd.f32 %v5763_v54, %v5687_v10 }
 0xa8d   :  { %v10792_v14 = vpop.f32.mrf.mxu0  ;;  %v10817_v16 = vpop.f32.mrf.mxu1 }
 0xa8f   :  { %v5837_v4 = vpop.f32.mrf.mxu0 }
 0xa90   :  { %v5838_v7 = vadd.f32 %v5837_v4, %v5764_v28 }
 0xa91   :  { %v10802_v19 = vpop.f32.mrf.mxu0 }
 0xa92   :  { %v5912_v53 = vadd.f32 %v5911_v0, %v5838_v7 }
 0xa93   :  { %v5985_v17 = vpop.f32.mrf.mxu0 }
 0xa94   :  { %v5986_v35 = vadd.f32 %v5985_v17, %v5912_v53 }
 0xa95   :  { %v10812_v49 = vpop.f32.mrf.mxu0 }
 0xa96   :  { %v6058_v5 = vadd.f32 %v6057_v3, %v5986_v35 }
 0xa98   :  { %v6061_v20 = vsel %vm1921_vm9, %v6058_v5, -inf }
 0xa99   :  { %6062 = vmax.xlane.f32.xlu0 %v6061_v20 }
 0xaaf   :  { %6522 = vrot.lane.b32.xlu0 %v11715_v55, %s11306_s8 }
 0xb22   :  { %v6063_v22 = vpop.xlane.xlu0 %6062 }
 0xb23   :  { %v6064_v21 = vsub.f32 %v6058_v5, %v6063_v22 }
 0xb25   :  { %v6065_v25 = vmul.f32 1.442695, %v6064_v21 }
 0xb26   :  { %v6523_v29 = vpop.permute.xlu0 %6522 }
 0xb27   :  { %11129 = vpow2.f32 %v6065_v25  ;;  %v6526_v34 = vsel %vm1921_vm9, %v6523_v29, 0 }
 0xb28   :  { %v6596_v40 = vand.u32 4294901760, %v6526_v34 }
 0xb2a   :  { %v6597_v44 = vsub.f32 %v6526_v34, %v6596_v40 }
 0xb2c   :  { %v6598_v48 = vand.u32 4294901760, %v6597_v44 }
 0xb34   :  { %v11130_v1 = vpop.eup %11129 }
 0xb35   :  { %v6067_v26 = vsel %vm1921_vm9, %v11130_v1, 0.0 }
 0xb36   :  { %6068 = vadd.xlane.f32.xlu1 %v6067_v26 }
 0xb47   :  { %6524 = vrot.lane.b32.xlu1 %v11724_v8, %s11306_s8 }
 0xbbf   :  { %v6069_v63 = vpop.xlane.xlu1 %6068 }
 0xbc0   :  { %11131 = vrcp.f32 %v6069_v63 }
 0xbc3   :  { %v6525_v12 = vpop.permute.xlu1 %6524 }
 0xbc4   :  { %v6528_v23 = vsel %vm1921_vm9, %v6525_v12, 0 }
 0xbc5   :  { %v6561_v24 = vand.u32 4294901760, %v6528_v23 }
 0xbc7   :  { %v6638_v27 = vsub.f32 %v6528_v23, %v6561_v24 }
 0xbc9   :  { %v6639_v38 = vand.u32 4294901760, %v6638_v27 }
 0xbcb   :  { %v6640_v42 = vsub.f32 %v6638_v27, %v6639_v38 }
 0xbcd   :  { %v11132_v58 = vpop.eup %11131  ;;  %v6641_v47 = vand.u32 4294901760, %v6640_v42 }
 0xbce   :  { %v12016_v15 = vmul.f32 %v11132_v58, %v11130_v1 }
 0xbd0   :  { %v6074_v30 = vsel %vm1921_vm9, %v12016_v15, 0 }
 0xbd1   :  { %v6142_v32 = vand.u32 4294901760, %v6074_v30 }
 0xbd3   :  { %v6143_v39 = vsub.f32 %v6074_v30, %v6142_v32  ;;  %10826 = vmatmul.mubr.f32.vlgmr.msra.gmra.mxu1 %v6142_v32 }
 0xbd4   :  { %10834 = vmatpush3.msra.mxu1 %v11961_v18  ;;  %10835 = vmatprep.mubr.msk.f32.mxu1 %vm11305_vm8, %v11304_v36 }
 0xbd5   :  { %10843 = vmatprep.subr.mxu1 %v11304_v36  ;;  %v6144_v41 = vand.u32 4294901760, %v6143_v39 }
 0xbd7   :  { %10836 = vmatmul.mubr.f32.vlgmr.msra.gmra.mxu1 %v6144_v41  ;;  %v6145_v43 = vsub.f32 %v6143_v39, %v6144_v41 }
 0xbd8   :  { %10844 = vmatpush3.msra.mxu1 %v11961_v18  ;;  %10845 = vmatprep.mubr.msk.f32.mxu1 %vm11305_vm8, %v11304_v36  ;;  %v6599_v18 = vsub.f32 %v6597_v44, %v6598_v48 }
 0xbd9   :  { %10853 = vmatprep.subr.mxu1 %v11304_v36  ;;  %v6146_v46 = vand.u32 4294901760, %v6145_v43 }
 0xbda   :  { %v6600_v50 = vand.u32 4294901760, %v6599_v18 }
 0xbdb   :  { %10821 = vmatmul.mubr.f32.vlgmr.msra.gmra.mxu0 %v6146_v46  ;;  %10846 = vmatmul.mubr.f32.vlgmr.msra.gmra.mxu1 %v6142_v32 }
 0xbdc   :  { %10829 = vmatpush3.msra.mxu0 %v11969_v31  ;;  %10854 = vmatpush3.xpose.msra.mxu1 %v6641_v47 }
 0xbdd   :  { %10830 = vmatprep.mubr.msk.f32.mxu0 %vm11305_vm8, %v11304_v36  ;;  %10838 = vmatprep.subr.mxu0 %v11304_v36 }
 0xbde   :  { %10855 = vmatprep.mubr.msk.f32.mxu1 %vm11305_vm8, %v11304_v36  ;;  %10863 = vmatprep.subr.mxu1 %v11304_v36 }
 0xbdf   :  { %10831 = vmatmul.mubr.f32.vlgmr.msra.gmra.mxu0 %v6143_v39  ;;  %10856 = vmatmul.mubr.f32.vlgmr.msra.gmra.mxu1 %v6596_v40 }
 0xbe0   :  { %10839 = vmatpush3.msra.mxu0 %v6185_v33  ;;  %10864 = vmatpush3.xpose.msra.mxu1 %v6561_v24 }
 0xbe1   :  { %10840 = vmatprep.mubr.msk.f32.mxu0 %vm11305_vm8, %v11304_v36  ;;  %10848 = vmatprep.subr.mxu0 %v11304_v36 }
 0xbe2   :  { %10865 = vmatprep.mubr.msk.f32.mxu1 %vm11305_vm8, %v11304_v36  ;;  %10873 = vmatprep.subr.mxu1 %v11304_v36 }
 0xbe3   :  { %10841 = vmatmul.mubr.f32.vlgmr.msra.gmra.mxu0 %v6142_v32  ;;  %10866 = vmatmul.mubr.f32.vlgmr.msra.gmra.mxu1 %v6598_v48 }
 0xbe4   :  { %10849 = vmatpush3.xpose.msra.mxu0 %v6561_v24  ;;  %10874 = vmatpush3.xpose.msra.mxu1 %v6561_v24 }
 0xbe5   :  { %10850 = vmatprep.mubr.msk.f32.mxu0 %vm11305_vm8, %v11304_v36  ;;  %10858 = vmatprep.subr.mxu0 %v11304_v36 }
 0xbe6   :  { %10875 = vmatprep.mubr.msk.f32.mxu1 %vm11305_vm8, %v11304_v36  ;;  %10883 = vmatprep.subr.mxu1 %v11304_v36 }
 0xbe7   :  { %10851 = vmatmul.mubr.f32.vlgmr.msra.gmra.mxu0 %v6600_v50  ;;  %10876 = vmatmul.mubr.f32.vlgmr.msra.gmra.mxu1 %v6596_v40 }
 0xbe8   :  { %10859 = vmatpush3.xpose.msra.mxu0 %v6638_v27  ;;  %10860 = vmatprep.mubr.msk.f32.mxu0 %vm11305_vm8, %v11304_v36 }
 0xbe9   :  { %10868 = vmatprep.subr.mxu0 %v11304_v36  ;;  %10885 = vmatprep.mubr.msk.f32.mxu1 %vm11305_vm8, %v11304_v36 }
 0xbeb   :  { %10861 = vmatmul.mubr.f32.vlgmr.msra.gmra.mxu0 %v6597_v44 }
 0xbec   :  { %10869 = vmatpush3.xpose.msra.mxu0 %v6639_v38  ;;  %10870 = vmatprep.mubr.msk.f32.mxu0 %vm11305_vm8, %v11304_v36 }
 0xbed   :  { %10878 = vmatprep.subr.mxu0 %v11304_v36 }
 0xbef   :  { %10871 = vmatmul.mubr.f32.vlgmr.msra.gmra.mxu0 %v6596_v40 }
 0xbf0   :  { %10880 = vmatprep.mubr.msk.f32.mxu0 %vm11305_vm8, %v11304_v36 }
 0xc93   :  { %v6224_v31 = vpop.f32.mrf.mxu1 }
 0xc95   :  { %v10827_v33 = vpop.f32.mrf.mxu1 }
 0xc97   :  { %v6372_v51 = vpop.f32.mrf.mxu1 }
 0xc99   :  { %v10837_v52 = vpop.f32.mrf.mxu1 }
 0xc9b   :  { %v6148_v54 = vpop.f32.mrf.mxu0  ;;  %v6518_v56 = vpop.f32.mrf.mxu1 }
 0xc9c   :  { %v6225_v57 = vadd.f32 %v6224_v31, %v6148_v54 }
 0xc9d   :  { %v10822_v59 = vpop.f32.mrf.mxu0  ;;  %v10847_v60 = vpop.f32.mrf.mxu1 }
 0xc9f   :  { %v6298_v62 = vpop.f32.mrf.mxu0  ;;  %v6678_v0 = vpop.f32.mrf.mxu1 }
 0xca0   :  { %v6299_v2 = vadd.f32 %v6298_v62, %v6225_v57 }
 0xca1   :  { %v10832_v6 = vpop.f32.mrf.mxu0  ;;  %v10857_v9 = vpop.f32.mrf.mxu1 }
 0xca2   :  { %v6373_v10 = vadd.f32 %v6372_v51, %v6299_v2 }
 0xca3   :  { %v6446_v3 = vpop.f32.mrf.mxu0  ;;  %v6826_v14 = vpop.f32.mrf.mxu1 }
 0xca4   :  { %v6447_v16 = vadd.f32 %v6446_v3, %v6373_v10 }
 0xca5   :  { %v10842_v28 = vpop.f32.mrf.mxu0  ;;  %v10867_v4 = vpop.f32.mrf.mxu1 }
 0xca6   :  { %v12060_v7 = vadd.f32 %v6518_v56, %v6447_v16 }
 0xca7   :  { %v6602_v19 = vpop.f32.mrf.mxu0  ;;  %v6972_v53 = vpop.f32.mrf.mxu1 }
 0xca8   :  { %v6679_v49 = vadd.f32 %v6678_v0, %v6602_v19 }
 0xca9   :  { %v10852_v17 = vpop.f32.mrf.mxu0  ;;  %v10877_v35 = vpop.f32.mrf.mxu1 }
 0xcab   :  { %v6752_v5 = vpop.f32.mrf.mxu0 }
 0xcac   :  { %v6753_v20 = vadd.f32 %v6752_v5, %v6679_v49 }
 0xcad   :  { %v10862_v22 = vpop.f32.mrf.mxu0 }
 0xcae   :  { %v6827_v21 = vadd.f32 %v6826_v14, %v6753_v20 }
 0xcaf   :  { %v6900_v25 = vpop.f32.mrf.mxu0 }
 0xcb0   :  { %v6901_v1 = vadd.f32 %v6900_v25, %v6827_v21 }
 0xcb1   :  { %v10872_v26 = vpop.f32.mrf.mxu0 }
 0xcb2   :  { %v6973_v63 = vadd.f32 %v6972_v53, %v6901_v1 }
 0xcb4   :  { %v6976_v12 = vsel %vm1921_vm9, %v6973_v63, -inf }
 0xcb5   :  { %6977 = vmax.xlane.f32.xlu1 %v6976_v12 }
 0xcc6   :  { %6989 = vrot.lane.b32.xlu1 %v11755_v61, %s11306_s8 }
 0xcca   :  { %7441 = vrot.lane.b32.xlu1 %v11715_v55, %s11307_s11 }
 0xd3e   :  { %v6978_v23 = vpop.xlane.xlu1 %6977 }
 0xd3f   :  { %v6979_v24 = vsub.f32 %v6973_v63, %v6978_v23 }
 0xd41   :  { %v6980_v58 = vmul.f32 1.442695, %v6979_v24 }
 0xd42   :  { %v6990_v27 = vpop.permute.xlu1 %6989 }
 0xd43   :  { %11133 = vpow2.f32 %v6980_v58  ;;  %v7026_v29 = vand.u32 4294901760, %v6990_v27 }
 0xd45   :  { %v7103_v30 = vsub.f32 %v6990_v27, %v7026_v29  ;;  %10879 = vmatpush3.msra.mxu0 %v7026_v29 }
 0xd46   :  { %10888 = vmatprep.subr.mxu0 %v11304_v36  ;;  %v7442_v18 = vpop.permute.xlu1 %7441 }
 0xd47   :  { %v7104_v32 = vand.u32 4294901760, %v7103_v30  ;;  %v7445_v33 = vsel %vm1921_vm9, %v7442_v18, 0 }
 0xd48   :  { %v7515_v54 = vand.u32 4294901760, %v7445_v33 }
 0xd49   :  { %v7105_v34 = vsub.f32 %v7103_v30, %v7104_v32 }
 0xd4a   :  { %v7516_v60 = vsub.f32 %v7445_v33, %v7515_v54 }
 0xd4b   :  { %v7106_v38 = vand.u32 4294901760, %v7105_v34 }
 0xd4c   :  { %v7517_v2 = vand.u32 4294901760, %v7516_v60 }
 0xd4d   :  { %10884 = vmatpush3.msra.mxu1 %v7106_v38 }
 0xd4e   :  { %10893 = vmatprep.subr.mxu1 %v11304_v36  ;;  %v7518_v6 = vsub.f32 %v7516_v60, %v7517_v2 }
 0xd50   :  { %v11134_v39 = vpop.eup %11133  ;;  %v7519_v9 = vand.u32 4294901760, %v7518_v6 }
 0xd51   :  { %v6982_v40 = vsel %vm1921_vm9, %v11134_v39, 0.0 }
 0xd52   :  { %6983 = vadd.xlane.f32.xlu0 %v6982_v40 }
 0xd68   :  { %7443 = vrot.lane.b32.xlu0 %v11724_v8, %s11307_s11 }
 0xddb   :  { %v6984_v41 = vpop.xlane.xlu0 %6983 }
 0xddc   :  { %11135 = vrcp.f32 %v6984_v41 }
 0xddf   :  { %v7444_v42 = vpop.permute.xlu0 %7443 }
 0xde0   :  { %v7447_v43 = vsel %vm1921_vm9, %v7444_v42, 0 }
 0xde1   :  { %v7480_v44 = vand.u32 4294901760, %v7447_v43 }
 0xde3   :  { %v7557_v47 = vsub.f32 %v7447_v43, %v7480_v44 }
 0xde5   :  { %v7558_v51 = vand.u32 4294901760, %v7557_v47 }
 0xde7   :  { %v7559_v57 = vsub.f32 %v7557_v47, %v7558_v51 }
 0xde9   :  { %v11136_v46 = vpop.eup %11135  ;;  %v7560_v0 = vand.u32 4294901760, %v7559_v57 }
 0xdea   :  { %v12073_v48 = vmul.f32 %v11136_v46, %v11134_v39 }
 0xdec   :  { %v6993_v50 = vsel %vm1921_vm9, %v12073_v48, 0 }
 0xded   :  { %v7061_v31 = vand.u32 4294901760, %v6993_v50 }
 0xdef   :  { %v7062_v52 = vsub.f32 %v6993_v50, %v7061_v31  ;;  %10886 = vmatmul.mubr.f32.vlgmr.msra.gmra.mxu1 %v7061_v31 }
 0xdf0   :  { %10894 = vmatpush3.msra.mxu1 %v7026_v29  ;;  %10895 = vmatprep.mubr.msk.f32.mxu1 %vm11305_vm8, %v11304_v36 }
 0xdf1   :  { %10903 = vmatprep.subr.mxu1 %v11304_v36  ;;  %v7063_v56 = vand.u32 4294901760, %v7062_v52 }
 0xdf3   :  { %10896 = vmatmul.mubr.f32.vlgmr.msra.gmra.mxu1 %v7063_v56  ;;  %v7064_v59 = vsub.f32 %v7062_v52, %v7063_v56 }
 0xdf4   :  { %10904 = vmatpush3.msra.mxu1 %v7026_v29  ;;  %10905 = vmatprep.mubr.msk.f32.mxu1 %vm11305_vm8, %v11304_v36 }
 0xdf5   :  { %10913 = vmatprep.subr.mxu1 %v11304_v36  ;;  %v7065_v62 = vand.u32 4294901760, %v7064_v59 }
 0xdf7   :  { %10881 = vmatmul.mubr.f32.vlgmr.msra.gmra.mxu0 %v7065_v62  ;;  %10906 = vmatmul.mubr.f32.vlgmr.msra.gmra.mxu1 %v7061_v31 }
 0xdf8   :  { %10889 = vmatpush3.msra.mxu0 %v7103_v30  ;;  %10914 = vmatpush3.xpose.msra.mxu1 %v7560_v0 }
 0xdf9   :  { %10890 = vmatprep.mubr.msk.f32.mxu0 %vm11305_vm8, %v11304_v36  ;;  %10898 = vmatprep.subr.mxu0 %v11304_v36 }
 0xdfa   :  { %10915 = vmatprep.mubr.msk.f32.mxu1 %vm11305_vm8, %v11304_v36  ;;  %10923 = vmatprep.subr.mxu1 %v11304_v36 }
 0xdfb   :  { %10891 = vmatmul.mubr.f32.vlgmr.msra.gmra.mxu0 %v7062_v52  ;;  %10916 = vmatmul.mubr.f32.vlgmr.msra.gmra.mxu1 %v7515_v54 }
 0xdfc   :  { %10899 = vmatpush3.msra.mxu0 %v7104_v32  ;;  %10924 = vmatpush3.xpose.msra.mxu1 %v7480_v44 }
 0xdfd   :  { %10900 = vmatprep.mubr.msk.f32.mxu0 %vm11305_vm8, %v11304_v36  ;;  %10908 = vmatprep.subr.mxu0 %v11304_v36 }
 0xdfe   :  { %10925 = vmatprep.mubr.msk.f32.mxu1 %vm11305_vm8, %v11304_v36  ;;  %10933 = vmatprep.subr.mxu1 %v11304_v36 }
 0xdff   :  { %10901 = vmatmul.mubr.f32.vlgmr.msra.gmra.mxu0 %v7061_v31  ;;  %10926 = vmatmul.mubr.f32.vlgmr.msra.gmra.mxu1 %v7517_v2 }
 0xe00   :  { %10909 = vmatpush3.xpose.msra.mxu0 %v7480_v44  ;;  %10934 = vmatpush3.xpose.msra.mxu1 %v7480_v44 }
 0xe01   :  { %10910 = vmatprep.mubr.msk.f32.mxu0 %vm11305_vm8, %v11304_v36  ;;  %10918 = vmatprep.subr.mxu0 %v11304_v36 }
 0xe02   :  { %10935 = vmatprep.mubr.msk.f32.mxu1 %vm11305_vm8, %v11304_v36  ;;  %10943 = vmatprep.subr.mxu1 %v11304_v36 }
 0xe03   :  { %10911 = vmatmul.mubr.f32.vlgmr.msra.gmra.mxu0 %v7519_v9  ;;  %10936 = vmatmul.mubr.f32.vlgmr.msra.gmra.mxu1 %v7515_v54  ;;  %v6987_v9 = vadd.f32 %v12073_v48, %v12016_v15 }
 0xe04   :  { %10919 = vmatpush3.xpose.msra.mxu0 %v7557_v47  ;;  %10920 = vmatprep.mubr.msk.f32.mxu0 %vm11305_vm8, %v11304_v36 }
 0xe05   :  { %10928 = vmatprep.subr.mxu0 %v11304_v36  ;;  %10945 = vmatprep.mubr.msk.f32.mxu1 %vm11305_vm8, %v11304_v36 }
 0xe07   :  { %10921 = vmatmul.mubr.f32.vlgmr.msra.gmra.mxu0 %v7516_v60 }
 0xe08   :  { %10929 = vmatpush3.xpose.msra.mxu0 %v7558_v51  ;;  %10930 = vmatprep.mubr.msk.f32.mxu0 %vm11305_vm8, %v11304_v36 }
 0xe09   :  { %10938 = vmatprep.subr.mxu0 %v11304_v36 }
 0xe0b   :  { %10931 = vmatmul.mubr.f32.vlgmr.msra.gmra.mxu0 %v7515_v54 }
 0xe0c   :  { %10940 = vmatprep.mubr.msk.f32.mxu0 %vm11305_vm8, %v11304_v36 }
 0xeaf   :  { %v7143_v10 = vpop.f32.mrf.mxu1 }
 0xeb1   :  { %v10887_v3 = vpop.f32.mrf.mxu1 }
 0xeb3   :  { %v7291_v14 = vpop.f32.mrf.mxu1 }
 0xeb5   :  { %v10897_v16 = vpop.f32.mrf.mxu1 }
 0xeb7   :  { %v7067_v28 = vpop.f32.mrf.mxu0  ;;  %v7437_v4 = vpop.f32.mrf.mxu1 }
 0xeb8   :  { %v7144_v19 = vadd.f32 %v7143_v10, %v7067_v28 }
 0xeb9   :  { %v10882_v53 = vpop.f32.mrf.mxu0  ;;  %v10907_v17 = vpop.f32.mrf.mxu1 }
 0xebb   :  { %v7217_v35 = vpop.f32.mrf.mxu0  ;;  %v7597_v49 = vpop.f32.mrf.mxu1 }
 0xebc   :  { %v7218_v5 = vadd.f32 %v7217_v35, %v7144_v19 }
 0xebd   :  { %v10892_v20 = vpop.f32.mrf.mxu0  ;;  %v10917_v22 = vpop.f32.mrf.mxu1 }
 0xebe   :  { %v7292_v21 = vadd.f32 %v7291_v14, %v7218_v5 }
 0xebf   :  { %v7365_v25 = vpop.f32.mrf.mxu0  ;;  %v7745_v1 = vpop.f32.mrf.mxu1 }
 0xec0   :  { %v7366_v26 = vadd.f32 %v7365_v25, %v7292_v21 }
 0xec1   :  { %v10902_v63 = vpop.f32.mrf.mxu0  ;;  %v10927_v12 = vpop.f32.mrf.mxu1 }
 0xec2   :  { %v12112_v23 = vadd.f32 %v7437_v4, %v7366_v26 }
 0xec3   :  { %v7521_v24 = vpop.f32.mrf.mxu0  ;;  %v7891_v58 = vpop.f32.mrf.mxu1 }
 0xec4   :  { %v7598_v30 = vadd.f32 %v7597_v49, %v7521_v24 }
 0xec5   :  { %v10912_v27 = vpop.f32.mrf.mxu0  ;;  %v10937_v29 = vpop.f32.mrf.mxu1 }
 0xec7   :  { %v7671_v32 = vpop.f32.mrf.mxu0 }
 0xec8   :  { %v7672_v34 = vadd.f32 %v7671_v32, %v7598_v30 }
 0xec9   :  { %v10922_v38 = vpop.f32.mrf.mxu0 }
 0xeca   :  { %v7746_v39 = vadd.f32 %v7745_v1, %v7672_v34 }
 0xecb   :  { %v7819_v40 = vpop.f32.mrf.mxu0 }
 0xecc   :  { %v7820_v41 = vadd.f32 %v7819_v40, %v7746_v39 }
 0xecd   :  { %v10932_v42 = vpop.f32.mrf.mxu0 }
 0xece   :  { %v7892_v43 = vadd.f32 %v7891_v58, %v7820_v41 }
 0xed0   :  { %v7895_v44 = vsel %vm1921_vm9, %v7892_v43, -inf }
 0xed1   :  { %7896 = vmax.xlane.f32.xlu1 %v7895_v44 }
 0xee2   :  { %7907 = vrot.lane.b32.xlu1 %v11755_v61, %s11307_s11 }
 0xee6   :  { %8359 = vrot.lane.b32.xlu1 %v11715_v55, %s11308_s12 }
 0xf5a   :  { %v7897_v46 = vpop.xlane.xlu1 %7896 }
 0xf5b   :  { %v7898_v47 = vsub.f32 %v7892_v43, %v7897_v46 }
 0xf5d   :  { %v7899_v18 = vmul.f32 1.442695, %v7898_v47 }
 0xf5e   :  { %v7908_v50 = vpop.permute.xlu1 %7907 }
 0xf5f   :  { %11137 = vpow2.f32 %v7899_v18  ;;  %v7944_v31 = vand.u32 4294901760, %v7908_v50 }
 0xf61   :  { %v8021_v33 = vsub.f32 %v7908_v50, %v7944_v31  ;;  %10939 = vmatpush3.msra.mxu0 %v7944_v31 }
 0xf62   :  { %10948 = vmatprep.subr.mxu0 %v11304_v36  ;;  %v8360_v10 = vpop.permute.xlu1 %8359 }
 0xf63   :  { %v8022_v51 = vand.u32 4294901760, %v8021_v33 }
 0xf65   :  { %v8023_v52 = vsub.f32 %v8021_v33, %v8022_v51 }
 0xf67   :  { %v8024_v54 = vand.u32 4294901760, %v8023_v52 }
 0xf69   :  { %10944 = vmatpush3.msra.mxu1 %v8024_v54 }
 0xf6a   :  { %10953 = vmatprep.subr.mxu1 %v11304_v36 }
 0xf6c   :  { %v11138_v56 = vpop.eup %11137 }
 0xf6d   :  { %v7901_v57 = vsel %vm1921_vm9, %v11138_v56, 0.0 }
 0xf6e   :  { %7902 = vadd.xlane.f32.xlu0 %v7901_v57 }
 0xf84   :  { %8361 = vrot.lane.b32.xlu0 %v11724_v8, %s11308_s12  ;;  %v8363_v8 = vsel %vm1921_vm9, %v8360_v10, 0 }
 0xf85   :  { %v8433_v19 = vand.u32 4294901760, %v8363_v8 }
 0xf87   :  { %v8434_v17 = vsub.f32 %v8363_v8, %v8433_v19 }
 0xf89   :  { %v8435_v5 = vand.u32 4294901760, %v8434_v17 }
 0xf8b   :  { %v8436_v20 = vsub.f32 %v8434_v17, %v8435_v5 }
 0xf8d   :  { %v8437_v22 = vand.u32 4294901760, %v8436_v20 }
 0xff7   :  { %v7903_v55 = vpop.xlane.xlu0 %7902 }
 0xff8   :  { %11139 = vrcp.f32 %v7903_v55 }
 0xffb   :  { %v8362_v59 = vpop.permute.xlu0 %8361 }
 0xffc   :  { %v8365_v60 = vsel %vm1921_vm9, %v8362_v59, 0 }
 0xffd   :  { %v8398_v62 = vand.u32 4294901760, %v8365_v60 }
 0xfff   :  { %v8475_v2 = vsub.f32 %v8365_v60, %v8398_v62 }
0x1001   :  { %v8476_v28 = vand.u32 4294901760, %v8475_v2 }
0x1003   :  { %v8477_v15 = vsub.f32 %v8475_v2, %v8476_v28 }
0x1005   :  { %v11140_v0 = vpop.eup %11139  ;;  %v8478_v49 = vand.u32 4294901760, %v8477_v15 }
0x1006   :  { %v7905_v6 = vmul.f32 %v11140_v0, %v11138_v56 }
0x1008   :  { %v7911_v3 = vsel %vm1921_vm9, %v7905_v6, 0  ;;  %v12128_v14 = vadd.f32 %v7905_v6, %v6987_v9 }
0x1009   :  { %v7979_v16 = vand.u32 4294901760, %v7911_v3 }
0x100b   :  { %v7980_v4 = vsub.f32 %v7911_v3, %v7979_v16  ;;  %10946 = vmatmul.mubr.f32.vlgmr.msra.gmra.mxu1 %v7979_v16 }
0x100c   :  { %10954 = vmatpush3.msra.mxu1 %v7944_v31  ;;  %10955 = vmatprep.mubr.msk.f32.mxu1 %vm11305_vm8, %v11304_v36 }
0x100d   :  { %10963 = vmatprep.subr.mxu1 %v11304_v36  ;;  %v7981_v53 = vand.u32 4294901760, %v7980_v4 }
0x100f   :  { %10956 = vmatmul.mubr.f32.vlgmr.msra.gmra.mxu1 %v7981_v53  ;;  %v7982_v48 = vsub.f32 %v7980_v4, %v7981_v53 }
0x1010   :  { %10964 = vmatpush3.msra.mxu1 %v7944_v31  ;;  %10965 = vmatprep.mubr.msk.f32.mxu1 %vm11305_vm8, %v11304_v36 }
0x1011   :  { %10973 = vmatprep.subr.mxu1 %v11304_v36  ;;  %v7983_v35 = vand.u32 4294901760, %v7982_v48 }
0x1013   :  { %10941 = vmatmul.mubr.f32.vlgmr.msra.gmra.mxu0 %v7983_v35  ;;  %10966 = vmatmul.mubr.f32.vlgmr.msra.gmra.mxu1 %v7979_v16 }
0x1014   :  { %10949 = vmatpush3.msra.mxu0 %v8021_v33  ;;  %10974 = vmatpush3.xpose.msra.mxu1 %v8478_v49 }
0x1015   :  { %10950 = vmatprep.mubr.msk.f32.mxu0 %vm11305_vm8, %v11304_v36  ;;  %10958 = vmatprep.subr.mxu0 %v11304_v36 }
0x1016   :  { %10975 = vmatprep.mubr.msk.f32.mxu1 %vm11305_vm8, %v11304_v36  ;;  %10983 = vmatprep.subr.mxu1 %v11304_v36 }
0x1017   :  { %10951 = vmatmul.mubr.f32.vlgmr.msra.gmra.mxu0 %v7980_v4  ;;  %10976 = vmatmul.mubr.f32.vlgmr.msra.gmra.mxu1 %v8433_v19 }
0x1018   :  { %10959 = vmatpush3.msra.mxu0 %v8022_v51  ;;  %10984 = vmatpush3.xpose.msra.mxu1 %v8398_v62 }
0x1019   :  { %10960 = vmatprep.mubr.msk.f32.mxu0 %vm11305_vm8, %v11304_v36  ;;  %10968 = vmatprep.subr.mxu0 %v11304_v36 }
0x101a   :  { %10985 = vmatprep.mubr.msk.f32.mxu1 %vm11305_vm8, %v11304_v36  ;;  %10993 = vmatprep.subr.mxu1 %v11304_v36 }
0x101b   :  { %10961 = vmatmul.mubr.f32.vlgmr.msra.gmra.mxu0 %v7979_v16  ;;  %10986 = vmatmul.mubr.f32.vlgmr.msra.gmra.mxu1 %v8435_v5 }
0x101c   :  { %10969 = vmatpush3.xpose.msra.mxu0 %v8398_v62  ;;  %10994 = vmatpush3.xpose.msra.mxu1 %v8398_v62 }
0x101d   :  { %10970 = vmatprep.mubr.msk.f32.mxu0 %vm11305_vm8, %v11304_v36  ;;  %10978 = vmatprep.subr.mxu0 %v11304_v36 }
0x101e   :  { %10995 = vmatprep.mubr.msk.f32.mxu1 %vm11305_vm8, %v11304_v36  ;;  %11003 = vmatprep.subr.mxu1 %v11304_v36 }
0x101f   :  { %10971 = vmatmul.mubr.f32.vlgmr.msra.gmra.mxu0 %v8437_v22  ;;  %10996 = vmatmul.mubr.f32.vlgmr.msra.gmra.mxu1 %v8433_v19 }
0x1020   :  { %10979 = vmatpush3.xpose.msra.mxu0 %v8475_v2  ;;  %10980 = vmatprep.mubr.msk.f32.mxu0 %vm11305_vm8, %v11304_v36 }
0x1021   :  { %10988 = vmatprep.subr.mxu0 %v11304_v36  ;;  %11005 = vmatprep.mubr.msk.f32.mxu1 %vm11305_vm8, %v11304_v36 }
0x1023   :  { %10981 = vmatmul.mubr.f32.vlgmr.msra.gmra.mxu0 %v8434_v17 }
0x1024   :  { %10989 = vmatpush3.xpose.msra.mxu0 %v8476_v28  ;;  %10990 = vmatprep.mubr.msk.f32.mxu0 %vm11305_vm8, %v11304_v36 }
0x1025   :  { %10998 = vmatprep.subr.mxu0 %v11304_v36 }
0x1027   :  { %10991 = vmatmul.mubr.f32.vlgmr.msra.gmra.mxu0 %v8433_v19 }
0x1028   :  { %11000 = vmatprep.mubr.msk.f32.mxu0 %vm11305_vm8, %v11304_v36 }
0x10cb   :  { %v8061_v21 = vpop.f32.mrf.mxu1 }
0x10cd   :  { %v10947_v25 = vpop.f32.mrf.mxu1 }
0x10cf   :  { %v8209_v1 = vpop.f32.mrf.mxu1 }
0x10d1   :  { %v10957_v26 = vpop.f32.mrf.mxu1 }
0x10d3   :  { %v7985_v63 = vpop.f32.mrf.mxu0  ;;  %v8355_v12 = vpop.f32.mrf.mxu1 }
0x10d4   :  { %v8062_v57 = vadd.f32 %v8061_v21, %v7985_v63 }
0x10d5   :  { %v10942_v24 = vpop.f32.mrf.mxu0  ;;  %v10967_v58 = vpop.f32.mrf.mxu1 }
0x10d7   :  { %v8135_v27 = vpop.f32.mrf.mxu0  ;;  %v8515_v29 = vpop.f32.mrf.mxu1 }
0x10d8   :  { %v8136_v55 = vadd.f32 %v8135_v27, %v8062_v57  ;;  %v298_v27 = vld [vmem:[#allocation10 + $0x78] sm:$0xff] }
0x10d9   :  { %v10952_v30 = vpop.f32.mrf.mxu0  ;;  %v10977_v32 = vpop.f32.mrf.mxu1 }
0x10da   :  { %v8210_v59 = vadd.f32 %v8209_v1, %v8136_v55  ;;  %v296_v30 = vld [vmem:[#allocation10 + $0x68] sm:$0xff]  ;;  %v12210_v32 = vand.u32 4294901760, %v298_v27 }
0x10db   :  { %v8283_v34 = vpop.f32.mrf.mxu0  ;;  %v8663_v38 = vpop.f32.mrf.mxu1 }
0x10dc   :  { %v8284_v60 = vadd.f32 %v8283_v34, %v8210_v59 }
0x10dd   :  { %v10962_v39 = vpop.f32.mrf.mxu0  ;;  %v10987_v40 = vpop.f32.mrf.mxu1 }
0x10de   :  { %v8356_v62 = vadd.f32 %v8355_v12, %v8284_v60  ;;  %v12217_v39 = vsub.f32 %v298_v27, %v12210_v32 }
0x10df   :  { %v8439_v41 = vpop.f32.mrf.mxu0  ;;  %v8809_v42 = vpop.f32.mrf.mxu1 }
0x10e0   :  { %v8516_v46 = vadd.f32 %v8515_v29, %v8439_v41  ;;  %v297_v29 = vld [vmem:[#allocation10 + $0x70] sm:$0xff]  ;;  %v12228_v41 = vand.u32 4294901760, %v12217_v39 }
0x10e1   :  { %v10972_v43 = vpop.f32.mrf.mxu0  ;;  %v10997_v44 = vpop.f32.mrf.mxu1  ;;  %v12212_v34 = vand.u32 4294901760, %v297_v29 }
0x10e2   :  { %v9426_v44 = vsub.f32 %v12217_v39, %v12228_v41 }
0x10e3   :  { %v8589_v47 = vpop.f32.mrf.mxu0  ;;  %v12220_v40 = vsub.f32 %v297_v29, %v12212_v34 }
0x10e4   :  { %v8590_v18 = vadd.f32 %v8589_v47, %v8516_v46 }
0x10e5   :  { %v10982_v50 = vpop.f32.mrf.mxu0 }
0x10e6   :  { %v8664_v31 = vadd.f32 %v8663_v38, %v8590_v18  ;;  %v12214_v38 = vand.u32 4294901760, %v296_v30  ;;  %v9427_v18 = vand.u32 4294901760, %v9426_v44 }
0x10e7   :  { %v8737_v33 = vpop.f32.mrf.mxu0 }
0x10e8   :  { %v8738_v51 = vadd.f32 %v8737_v33, %v8664_v31  ;;  %v295_v33 = vld [vmem:[#allocation10 + $0x60] sm:$0xff] }
0x10e9   :  { %v10992_v52 = vpop.f32.mrf.mxu0 }
0x10ea   :  { %v8810_v54 = vadd.f32 %v8809_v42, %v8738_v51  ;;  %v12231_v42 = vand.u32 4294901760, %v12220_v40  ;;  %v12246_v52 = vand.u32 4294901760, %v295_v33 }
0x10ec   :  { %v8813_v56 = vsel %vm1921_vm9, %v8810_v54, -inf  ;;  %v9433_v46 = vsub.f32 %v12220_v40, %v12231_v42 }
0x10ed   :  { %8814 = vmax.xlane.f32.xlu1 %v8813_v56  ;;  %v9445_v56 = vsub.f32 %v295_v33, %v12246_v52 }
0x10ee   :  { %v9434_v50 = vand.u32 4294901760, %v9433_v46 }
0x10ef   :  { %v12251_v55 = vand.u32 4294901760, %v9445_v56 }
0x10f1   :  { %v9447_v60 = vsub.f32 %v9445_v56, %v12251_v55 }
0x10fe   :  { %8825 = vrot.lane.b32.xlu1 %v11755_v61, %s11308_s12 }
0x1102   :  { %5597 = vrot.lane.b32.xlu1 %v11939_v45, %s11309_s13 }
0x1106   :  { %9281 = vrot.lane.b32.xlu1 %v12112_v23, %s11303_s24 }
0x110a   :  { %5601 = vrot.lane.b32.xlu1 %v12007_v11, %s11310_s14 }
0x110e   :  { %9285 = vrot.lane.b32.xlu1 %v8356_v62, %s11309_s13 }
0x1176   :  { %v8815_v0 = vpop.xlane.xlu1 %8814 }
0x1177   :  { %v8816_v2 = vsub.f32 %v8810_v54, %v8815_v0 }
0x1179   :  { %v8817_v6 = vmul.f32 1.442695, %v8816_v2  ;;  %v9448_v2 = vand.u32 4294901760, %v9447_v60 }
0x117a   :  { %v8826_v9 = vpop.permute.xlu1 %8825 }
0x117b   :  { %11141 = vpow2.f32 %v8817_v6  ;;  %v8862_v61 = vand.u32 4294901760, %v8826_v9 }
0x117d   :  { %v8939_v10 = vsub.f32 %v8826_v9, %v8862_v61  ;;  %10999 = vmatpush3.msra.mxu0 %v8862_v61 }
0x117e   :  { %v5598_v45 = vpop.permute.xlu1 %5597  ;;  %11008 = vmatprep.subr.mxu0 %v11304_v36 }
0x117f   :  { %v8940_v3 = vand.u32 4294901760, %v8939_v10 }
0x1181   :  { %v8941_v23 = vsub.f32 %v8939_v10, %v8940_v3 }
0x1182   :  { %v9282_v16 = vpop.permute.xlu1 %9281 }
0x1183   :  { %v8942_v8 = vand.u32 4294901760, %v8941_v23  ;;  %v12176_v11 = vsel %vm1921_vm9, %v12060_v7, %v9282_v16 }
0x1185   :  { %11004 = vmatpush3.msra.mxu1 %v8942_v8 }
0x1186   :  { %11013 = vmatprep.subr.mxu1 %v11304_v36  ;;  %v5602_v48 = vpop.permute.xlu1 %5601 }
0x1188   :  { %v11142_v28 = vpop.eup %11141 }
0x1189   :  { %v8819_v4 = vsel %vm1921_vm9, %v11142_v28, 0.0 }
0x118a   :  { %8820 = vadd.xlane.f32.xlu0 %v8819_v4 }
0x11a0   :  { %5593 = vrot.lane.b32.xlu0 %v11885_v37, %s11303_s24 }
0x1213   :  { %v8821_v19 = vpop.xlane.xlu0 %8820 }
0x1214   :  { %11143 = vrcp.f32 %v8821_v19  ;;  %v9286_v19 = vpop.permute.xlu1 %9285 }
0x1217   :  { %v5594_v53 = vpop.permute.xlu0 %5593 }
0x1218   :  { %v5604_v15 = vsel %vm1921_vm9, %v11814_v13, %v5594_v53  ;;  %v9293_v53 = vsel %vm5605_vm10, %v12176_v11, %v9286_v19 }
0x1219   :  { %v5606_v7 = vsel %vm5605_vm10, %v5604_v15, %v5598_v45 }
0x121a   :  { %v5608_v17 = vsel %vm5607_vm11, %v5606_v7, %v5602_v48 }
0x121b   :  { %v9304_v5 = vsel %vm312_vm7, %v5608_v17, 0 }
0x121c   :  { %v12189_v21 = vand.u32 4294901760, %v9304_v5 }
0x121e   :  { %v12196_v26 = vsub.f32 %v9304_v5, %v12189_v21 }
0x1220   :  { %v9380_v12 = vand.u32 4294901760, %v12196_v26 }
0x1221   :  { %v11144_v35 = vpop.eup %11143 }
0x1222   :  { %v8823_v49 = vmul.f32 %v11144_v35, %v11142_v28  ;;  %v9381_v24 = vsub.f32 %v12196_v26, %v9380_v12 }
0x1224   :  { %v8829_v20 = vsel %vm1921_vm9, %v8823_v49, 0  ;;  %v8824_v37 = vadd.f32 %v8823_v49, %v12128_v14  ;;  %v9382_v58 = vand.u32 4294901760, %v9381_v24 }
0x1225   :  { %v8897_v22 = vand.u32 4294901760, %v8829_v20 }
0x1226   :  { %v9277_v25 = vmul.f32 0.25, %v8824_v37 }
0x1227   :  { %v8898_v13 = vsub.f32 %v8829_v20, %v8897_v22  ;;  %11006 = vmatmul.mubr.f32.vlgmr.msra.gmra.mxu1 %v8897_v22 }
0x1228   :  { %11014 = vmatpush3.msra.mxu1 %v8862_v61  ;;  %11015 = vmatprep.mubr.msk.f32.mxu1 %vm11305_vm8, %v11304_v36  ;;  %9279 = vst.msk [vmem:[#allocation12 + $0x8] sm:$0xff] %vm1921_vm9, %v9277_v25 }
0x1229   :  { %11023 = vmatprep.subr.mxu1 %v11304_v36  ;;  %v8899_v1 = vand.u32 4294901760, %v8898_v13 }
0x122b   :  { %11016 = vmatmul.mubr.f32.vlgmr.msra.gmra.mxu1 %v8899_v1  ;;  %v8900_v14 = vsub.f32 %v8898_v13, %v8899_v1 }
0x122c   :  { %11024 = vmatpush3.msra.mxu1 %v8862_v61  ;;  %11025 = vmatprep.mubr.msk.f32.mxu1 %vm11305_vm8, %v11304_v36 }
0x122d   :  { %v8901_v63 = vand.u32 4294901760, %v8900_v14  ;;  %11039 = vmatprep.subr.mxu1 %v9427_v18 }
0x122f   :  { %11001 = vmatmul.mubr.f32.vlgmr.msra.gmra.mxu0 %v8901_v63  ;;  %11026 = vmatmul.mubr.f32.vlgmr.msra.gmra.mxu1 %v8897_v22 }
0x1230   :  { %11009 = vmatpush3.msra.mxu0 %v8939_v10  ;;  %11047 = vmatprep.mubr.f32.mxu1 %v12189_v21 }
0x1231   :  { %11010 = vmatprep.mubr.msk.f32.mxu0 %vm11305_vm8, %v11304_v36  ;;  %11018 = vmatprep.subr.mxu0 %v11304_v36 }
0x1232   :  { %11040 = vmatpush3.msra.mxu1 %v9427_v18 }
0x1233   :  { %11011 = vmatmul.mubr.f32.vlgmr.msra.gmra.mxu0 %v8898_v13  ;;  %11041 = vmatprep.subr.mxu1 %v9434_v50 }
0x1234   :  { %11019 = vmatpush3.msra.mxu0 %v8940_v3  ;;  %11020 = vmatprep.mubr.msk.f32.mxu0 %vm11305_vm8, %v11304_v36  ;;  %v12223_v36 = vsub.f32 %v296_v30, %v12214_v38 }
0x1235   :  { %11028 = vmatprep.subr.mxu0 %v12210_v32  ;;  %11042 = vmatpush3.msra.mxu1 %v9434_v50 }
0x1236   :  { %v12234_v43 = vand.u32 4294901760, %v12223_v36 }
0x1237   :  { %11021 = vmatmul.mubr.f32.vlgmr.msra.gmra.mxu0 %v8897_v22 }
0x1238   :  { %11036 = vmatprep.mubr.f32.mxu0 %v9382_v58  ;;  %11029 = vmatpush3.msra.mxu0 %v12210_v32  ;;  %v9440_v47 = vsub.f32 %v12223_v36, %v12234_v43 }
0x1239   :  { %11030 = vmatprep.subr.mxu0 %v12212_v34 }
0x123a   :  { %11031 = vmatpush3.msra.mxu0 %v12212_v34  ;;  %v9441_v31 = vand.u32 4294901760, %v9440_v47 }
0x123b   :  { %11032 = vmatprep.subr.mxu0 %v12214_v38 }
0x123c   :  { %11033 = vmatpush3.msra.mxu0 %v12214_v38  ;;  %11043 = vmatprep.subr.mxu1 %v9441_v31 }
0x123d   :  { %11044 = vmatpush3.msra.mxu1 %v9441_v31  ;;  %11034 = vmatprep.subr.mxu0 %v12246_v52 }
0x123e   :  { %11035 = vmatpush3.msra.mxu0 %v12246_v52  ;;  %11045 = vmatprep.subr.mxu1 %v9448_v2 }
0x123f   :  { %11050 = vmatprep.subr.mxu0 %v12217_v39  ;;  %11046 = vmatpush3.msra.mxu1 %v9448_v2 }
0x1240   :  { %11061 = vmatprep.subr.mxu1 %v12210_v32 }
0x12e7   :  { %v8979_v51 = vpop.f32.mrf.mxu1 }
0x12e9   :  { %v11007_v54 = vpop.f32.mrf.mxu1 }
0x12eb   :  { %v9127_v57 = vpop.f32.mrf.mxu1 }
0x12ed   :  { %v11017_v59 = vpop.f32.mrf.mxu1 }
0x12ef   :  { %v8903_v62 = vpop.f32.mrf.mxu0  ;;  %v9273_v0 = vpop.f32.mrf.mxu1 }
0x12f0   :  { %v8980_v61 = vadd.f32 %v8979_v51, %v8903_v62 }
0x12f1   :  { %v11002_v6 = vpop.f32.mrf.mxu0  ;;  %v11027_v9 = vpop.f32.mrf.mxu1 }
0x12f3   :  { %v9053_v10 = vpop.f32.mrf.mxu0 }
0x12f4   :  { %v9054_v45 = vadd.f32 %v9053_v10, %v8980_v61 }
0x12f5   :  { %v11012_v3 = vpop.f32.mrf.mxu0 }
0x12f6   :  { %v9128_v23 = vadd.f32 %v9127_v57, %v9054_v45 }
0x12f7   :  { %v9201_v16 = vpop.f32.mrf.mxu0 }
0x12f8   :  { %v9202_v8 = vadd.f32 %v9201_v16, %v9128_v23 }
0x12f9   :  { %v11022_v28 = vpop.f32.mrf.mxu0 }
0x12fa   :  { %v9274_v4 = vadd.f32 %v9273_v0, %v9202_v8 }
0x12fc   :  { %9289 = vrot.lane.b32.xlu0 %v9274_v4, %s11310_s14 }
0x136e   :  { %v9290_v15 = vpop.permute.xlu0 %9289 }
0x136f   :  { %v9294_v7 = vsel %vm5607_vm11, %v9293_v53, %v9290_v15 }
0x1370   :  { %v9307_v48 = vsel %vm312_vm7, %v9294_v7, 0 }
0x1371   :  { %v9388_v17 = vand.u32 4294901760, %v9307_v48 }
0x1373   :  { %v9389_v35 = vsub.f32 %v9307_v48, %v9388_v17  ;;  %11048 = vmatmul.mubr.f32.vlgmr.msra.gmra.mxu1 %v9388_v17 }
0x1374   :  { %11062 = vmatpush3.msra.mxu1 %v12210_v32  ;;  %11069 = vmatprep.mubr.f32.mxu1 %v9380_v12 }
0x1375   :  { %v9390_v49 = vand.u32 4294901760, %v9389_v35  ;;  %11063 = vmatprep.subr.mxu1 %v12212_v34 }
0x1376   :  { %11064 = vmatpush3.msra.mxu1 %v12212_v34 }
0x1377   :  { %v9391_v5 = vsub.f32 %v9389_v35, %v9390_v49  ;;  %11065 = vmatprep.subr.mxu1 %v12214_v38 }
0x1378   :  { %11066 = vmatpush3.msra.mxu1 %v12214_v38 }
0x1379   :  { %v9392_v11 = vand.u32 4294901760, %v9391_v5  ;;  %11067 = vmatprep.subr.mxu1 %v12246_v52 }
0x137a   :  { %11068 = vmatpush3.msra.mxu1 %v12246_v52 }
0x137b   :  { %11070 = vmatmul.mubr.f32.vlgmr.msra.gmra.mxu1 %v9390_v49  ;;  %11083 = vmatprep.subr.mxu1 %v12210_v32 }
0x137c   :  { %11037 = vmatmul.mubr.f32.vlgmr.msra.gmra.mxu0 %v9392_v11  ;;  %11084 = vmatpush3.msra.mxu1 %v12210_v32 }
0x137d   :  { %11051 = vmatpush3.msra.mxu0 %v12217_v39  ;;  %11091 = vmatprep.mubr.f32.mxu1 %v12189_v21 }
0x137e   :  { %11052 = vmatprep.subr.mxu0 %v12220_v40  ;;  %11058 = vmatprep.mubr.f32.mxu0 %v12196_v26 }
0x137f   :  { %11085 = vmatprep.subr.mxu1 %v12212_v34  ;;  %11053 = vmatpush3.msra.mxu0 %v12220_v40 }
0x1380   :  { %11086 = vmatpush3.msra.mxu1 %v12212_v34  ;;  %11054 = vmatprep.subr.mxu0 %v12223_v36 }
0x1381   :  { %11087 = vmatprep.subr.mxu1 %v12214_v38  ;;  %11055 = vmatpush3.msra.mxu0 %v12223_v36 }
0x1382   :  { %11088 = vmatpush3.msra.mxu1 %v12214_v38  ;;  %11056 = vmatprep.subr.mxu0 %v9445_v56 }
0x1383   :  { %11089 = vmatprep.subr.mxu1 %v12246_v52  ;;  %11057 = vmatpush3.msra.mxu0 %v9445_v56 }
0x1384   :  { %11090 = vmatpush3.msra.mxu1 %v12246_v52  ;;  %11059 = vmatmul.mubr.f32.vlgmr.msra.gmra.mxu0 %v9389_v35 }
0x1385   :  { %11072 = vmatprep.subr.mxu0 %v12228_v41  ;;  %11092 = vmatmul.mubr.f32.vlgmr.msra.gmra.mxu1 %v9388_v17 }
0x1386   :  { %11073 = vmatpush3.msra.mxu0 %v12228_v41  ;;  %11080 = vmatprep.mubr.f32.mxu0 %v12189_v21 }
0x1387   :  { %11074 = vmatprep.subr.mxu0 %v12231_v42 }
0x1388   :  { %11075 = vmatpush3.msra.mxu0 %v12231_v42 }
0x1389   :  { %11076 = vmatprep.subr.mxu0 %v12234_v43 }
0x138a   :  { %11077 = vmatpush3.msra.mxu0 %v12234_v43 }
0x138b   :  { %11078 = vmatprep.subr.mxu0 %v12251_v55 }
0x138c   :  { %11079 = vmatpush3.msra.mxu0 %v12251_v55 }
0x138d   :  { %11081 = vmatmul.mubr.f32.vlgmr.msra.gmra.mxu0 %v9388_v17 }
0x138e   :  { %11256 = shalt.err (!%p11253_p1)
}
0x138f   :  { %9995 = dma.vmem_to_hbm [thread:$0]  %s9990_s16, 256, %s12346_s7, [#allocation13], %s11302_s0, %s11302_s0, %s11303_s24   ;;  %v234_v20 = vld [vmem:[#allocation8] sm:$0x3]  ;;  %v235_v37 = vld [vmem:[#allocation8 + $0x2] sm:$0x3]  ;;  %v9844_v9 = vlaneseq }
0x1390   :  { %v236_v22 = vld [vmem:[#allocation8 + $0x4] sm:$0x3]  ;;  %v265_v21 = vrot.slane %v234_v20, 1  ;;  %v250_v25 = vrot.slane %v235_v37, 7  ;;  %v237_v13 = vld [vmem:[#allocation8 + $0x6] sm:$0x3] }
0x1391   :  { %v267_v1 = vrot.slane %v236_v22, 7  ;;  %v252_v14 = vrot.slane %v236_v22, 6  ;;  %v238_v63 = vld [vmem:[#allocation8 + $0x8] sm:$0x3]  ;;  %v269_v12 = vrot.slane %v237_v13, 6  ;;  %v254_v27 = vrot.slane %v237_v13, 5 }
0x1392   :  { %v266_v26 = vsel %vm112_vm0, %v235_v37, %v265_v21  ;;  %v251_v24 = vsel %vm112_vm0, %v250_v25, %v234_v20  ;;  %v239_v30 = vld [vmem:[#allocation8 + $0xa] sm:$0x3]  ;;  %v271_v32 = vrot.slane %v238_v63, 5  ;;  %v256_v39 = vrot.slane %v238_v63, 4  ;;  %v240_v36 = vld [vmem:[#allocation8 + $0xc] sm:$0x3] }
0x1393   :  { %v268_v58 = vsel %vm115_vm1, %v267_v1, %v266_v26  ;;  %v253_v34 = vsel %vm115_vm1, %v252_v14, %v251_v24  ;;  %v273_v41 = vrot.slane %v239_v30, 4  ;;  %v258_v46 = vrot.slane %v239_v30, 3  ;;  %v241_v18 = vld [vmem:[#allocation8 + $0xe] sm:$0x3]  ;;  %v10013_v16 = vld [vmem:[%s12344_s5 + $0x3] ss:$0 sm:$0xff] }
0x1394   :  { %v270_v38 = vsel %vm118_vm2, %v269_v12, %v268_v58  ;;  %v255_v42 = vsel %vm118_vm2, %v254_v27, %v253_v34  ;;  %v275_v50 = vrot.slane %v240_v36, 3  ;;  %v260_v54 = vrot.slane %v240_v36, 2  ;;  %s11313_s5 = smov [#allocation11]  }
0x1395   :  { %v272_v44 = vsel %vm121_vm3, %v271_v32, %v270_v38  ;;  %v257_v31 = vsel %vm121_vm3, %v256_v39, %v255_v42  ;;  %v277_v55 = vrot.slane %v241_v18, 2  ;;  %v11312_v59 = vmov 1966171168   ;;  %s9977_s19 = sshll.u32 %s11313_s5, 4  ;;  %s9978_s19 = int_to_ptr.vmem [resolvable:$true] %s9977_s19 }
0x1396   :  { %v274_v51 = vsel %vm124_vm4, %v273_v41, %v272_v44  ;;  %v9842_v60 = vunpack.c.l.s4 %v11312_v59  ;;  %v259_v62 = vsel %vm124_vm4, %v258_v46, %v257_v31  ;;  %v262_v61 = vrot.slane %v241_v18, 1  ;;  %s11265_s20 = scalar_lea.vmem %s9978_s19, 256  ;;  %p11270_p3 = scmp.lt.s32.totalorder %s9978_s19, %s9978_s19 }
0x1397   :  { %v276_v6 = vsel %vm127_vm5, %v275_v50, %v274_v51  ;;  %v261_v45 = vsel %vm127_vm5, %v260_v54, %v259_v62  ;;  %v9845_v4 = vshrl.u32 %v9844_v9, 7  ;;  %vm9897_vm12 = vcmask 253952   ;;  %p11266_p2 = scmp.ne.s32.totalorder %s9978_s19, %s11265_s20  ;;  %p11271_p4 = scmp.lt.s32.totalorder %s11265_s20, %s11265_s20 }
0x1398   :  { %v278_v23 = vsel %vm130_vm6, %v277_v55, %v276_v6  ;;  %v9843_v28 = vunpack.c.0.s8 %v9842_v60  ;;  %v263_v15 = vsel %vm130_vm6, %v262_v61, %v261_v45 }
0x1399   :  { %v9302_v7 = vadd.f32 %v10013_v16, %v278_v23  ;;  %v9301_v11 = vadd.f32 %v10013_v16, %v263_v15  ;;  %p11272_p5 = por %p11271_p4, %p11270_p3 }
0x139a   :  { %v9846_v5 = vsub.s32 %v9843_v28, %v9845_v4 }
0x139b   :  { %p11273_p6 = pnand %p11272_p5, %p11266_p2 }
0x1433   :  { %v11049_v40 = vpop.f32.mrf.mxu1 }
0x1435   :  { %v9485_v33 = vpop.f32.mrf.mxu1 }
0x143b   :  { %v11071_v56 = vpop.f32.mrf.mxu1 }
0x143c   :  { %v11038_v29 = vpop.f32.mrf.mxu0 }
0x143d   :  { %v9492_v52 = vadd.f32 %v11049_v40, %v11038_v29  ;;  %v9655_v3 = vpop.f32.mrf.mxu1 }
0x143e   :  { %v9384_v43 = vpop.f32.mrf.mxu0 }
0x143f   :  { %v9486_v0 = vadd.f32 %v9485_v33, %v9384_v43 }
0x1444   :  { %v11060_v47 = vpop.f32.mrf.mxu0 }
0x1445   :  { %v9579_v2 = vadd.f32 %v11060_v47, %v9492_v52  ;;  %v11093_v19 = vpop.f32.mrf.mxu1 }
0x1446   :  { %v9571_v57 = vpop.f32.mrf.mxu0 }
0x1447   :  { %v9572_v10 = vadd.f32 %v9571_v57, %v9486_v0  ;;  %v9664_v8 = vadd.f32 %v11071_v56, %v9579_v2  ;;  %v9827_v37 = vpop.f32.mrf.mxu1 }
0x1449   :  { %v9656_v17 = vadd.f32 %v9655_v3, %v9572_v10 }
0x144d   :  { %v11082_v53 = vpop.f32.mrf.mxu0 }
0x144e   :  { %v9753_v48 = vadd.f32 %v11082_v53, %v9664_v8 }
0x144f   :  { %v9746_v35 = vpop.f32.mrf.mxu0 }
0x1450   :  { %v9834_v49 = vadd.f32 %v11093_v19, %v9753_v48  ;;  %v9747_v20 = vadd.f32 %v9746_v35, %v9656_v17 }
0x1452   :  { %v9838_v22 = vadd.f32 %v9834_v49, %v9302_v7  ;;  %v9828_v21 = vadd.f32 %v9827_v37, %v9747_v20 }
0x1454   :  { %v9907_v25 = vcombine.high %v9838_v22, %v9838_v22  ;;  %v9914_v13 = vrot.slane %v9838_v22, %v9846_v5  ;;  %v9837_v1 = vadd.f32 %v9828_v21, %v9301_v11 }
0x1456   :  { %v9921_v26 = vrot.slane %v9907_v25, %v9846_v5  ;;  %v9922_v14 = vcombine.high %v9914_v13, %v9914_v13  ;;  %v9930_v63 = vrot.slane %v9914_v13, %v9846_v5  ;;  %v9840_v12 = vcombine.high %v9837_v1, %v9837_v1 }
0x1457   :  { %v9847_v24 = vrot.slane %v9837_v1, %v9846_v5 }
0x1458   :  { %v9923_v58 = vcombine.high %v9921_v26, %v9921_v26  ;;  %v9937_v27 = vrot.slane %v9921_v26, %v9846_v5  ;;  %v9944_v29 = vrot.slane %v9922_v14, %v9846_v5  ;;  %v9952_v30 = vcombine.high %v9930_v63, %v9930_v63  ;;  %9964 = vst.msk [vmem:[#allocation11 + $0x1] sm:$0x1] %vm9897_vm12, %v9930_v63 }
0x1459   :  { %v9854_v32 = vrot.slane %v9840_v12, %v9846_v5  ;;  %v9855_v34 = vcombine.high %v9847_v24, %v9847_v24  ;;  %v9863_v38 = vrot.slane %v9847_v24, %v9846_v5 }
0x145a   :  { %v9951_v39 = vrot.slane %v9923_v58, %v9846_v5  ;;  %v9953_v40 = vcombine.high %v9937_v27, %v9937_v27  ;;  %v9954_v36 = vcombine.high %v9944_v29, %v9944_v29  ;;  %9965 = vst.msk [vmem:[#allocation11 + $0x3] sm:$0x1] %vm9897_vm12, %v9944_v29  ;;  %9966 = vst.msk [vmem:[#allocation11 + $0x5] sm:$0x1] %vm9897_vm12, %v9952_v30 }
0x145b   :  { %9968 = vst.msk [vmem:[#allocation11 + $0x9] sm:$0x1] %vm9897_vm12, %v9937_v27  ;;  %v9856_v41 = vcombine.high %v9854_v32, %v9854_v32  ;;  %v9870_v42 = vrot.slane %v9854_v32, %v9846_v5  ;;  %v9877_v43 = vrot.slane %v9855_v34, %v9846_v5  ;;  %v9885_v44 = vcombine.high %v9863_v38, %v9863_v38 }
0x145c   :  { %9898 = vst.msk [vmem:[#allocation11] sm:$0x1] %vm9897_vm12, %v9863_v38  ;;  %v9955_v46 = vcombine.high %v9951_v39, %v9951_v39  ;;  %9967 = vst.msk [vmem:[#allocation11 + $0x7] sm:$0x1] %vm9897_vm12, %v9954_v36 }
0x145d   :  { %9969 = vst.msk [vmem:[#allocation11 + $0xb] sm:$0x1] %vm9897_vm12, %v9951_v39  ;;  %9970 = vst.msk [vmem:[#allocation11 + $0xd] sm:$0x1] %vm9897_vm12, %v9953_v40  ;;  %v9884_v47 = vrot.slane %v9856_v41, %v9846_v5  ;;  %v9886_v18 = vcombine.high %v9870_v42, %v9870_v42  ;;  %v9887_v50 = vcombine.high %v9877_v43, %v9877_v43 }
0x145e   :  { %9899 = vst.msk [vmem:[#allocation11 + $0x2] sm:$0x1] %vm9897_vm12, %v9877_v43  ;;  %9900 = vst.msk [vmem:[#allocation11 + $0x4] sm:$0x1] %vm9897_vm12, %v9885_v44 }
0x145f   :  { %9902 = vst.msk [vmem:[#allocation11 + $0x8] sm:$0x1] %vm9897_vm12, %v9870_v42  ;;  %9971 = vst.msk [vmem:[#allocation11 + $0xf] sm:$0x1] %vm9897_vm12, %v9955_v46  ;;  %v9888_v31 = vcombine.high %v9884_v47, %v9884_v47 }
0x1460   :  { %9901 = vst.msk [vmem:[#allocation11 + $0x6] sm:$0x1] %vm9897_vm12, %v9887_v50  ;;  %9903 = vst.msk [vmem:[#allocation11 + $0xa] sm:$0x1] %vm9897_vm12, %v9884_v47 }
0x1461   :  { %9904 = vst.msk [vmem:[#allocation11 + $0xc] sm:$0x1] %vm9897_vm12, %v9886_v18  ;;  %9905 = vst.msk [vmem:[#allocation11 + $0xe] sm:$0x1] %vm9897_vm12, %v9888_v31 }
0x1462   :  { %11276 = shalt.err (!%p11273_p6)
}
0x1463   :  { %9983 = dma.vmem_to_hbm [thread:$0]  %s9978_s19, 256, %s12345_s6, [#allocation4], %s11297_s29, %s11297_s29, %s11298_s30  }
0x1464   :  { %11291 = dma.done.wait [#allocation4], 256  }
0x1465   :  { %11292 = vsyncadd [#allocation4], 4294967040 }
0x1466   :  { %11293 = dma.done.wait [#allocation13], 256  }
0x1467   :  { %11294 = vsyncadd [#allocation13], 4294967040 }
0x1468   :  { %10002 = vsyncpa [#allocation3], 1 }
0x1469   :  { %10003 = vsyncpa [#allocation6], 1 }
0x146a   :  { %10004 = vsyncpa [#allocation9], 1 }
0x146b   :  { %10005 = vsyncpa [#allocation4], 1 }
0x146c   :  { %10006 = vsyncpa [#allocation13], 1 }

</bundles_post_ra>
